<compile_context>
chip_gen: v5e
topology: v5e:2x2
jax: 0.10.0
libtpu: 0.0.40
codegen_flags: <defaults>
</compile_context>

<pallas_src>
import jax
import jax.numpy as jnp
from jax.experimental import pallas as pl
from jax.experimental.pallas import tpu as pltpu

NZ = 6
L = 10            # sequence length implied by Linear(640, 320) with 64 conv channels
L_PAD = 16        # sublane-friendly padded sequence length
C1, C2, C3, C4 = 256, 512, 128, 64
FC1 = 320
OUT = 64          # out_params (free choice for this synthetic instantiation)
OUT_PAD = ((OUT + 127) // 128) * 128   # lane-dense output width
BN_EPS = 1e-5


def _make_kernel(bt):
    """Build the kernel for a batch tile of `bt` samples (slab = bt*L_PAD rows)."""
    M = bt * L_PAD
    f32 = jnp.float32
    bf16 = jnp.bfloat16

    def kernel(x_ref,
               wc1_ref, s1_ref, b1_ref,
               wc2_ref, s2_ref, b2_ref,
               wc3_ref, s3_ref, b3_ref,
               wc4_ref,
               wfc_ref, bfc_ref,
               wfc2_ref, bfc2_ref,
               out_ref):
        # Hoisted validity mask: slab is time-major (row = t*bt + b), so rows
        # [0, L*bt) are real timesteps and the tail rows are zero padding.
        rows = jax.lax.broadcasted_iota(jnp.int32, (M, 1), 0)
        valid = rows < (L * bt)

        def conv_same(h, w_ref):
            # y[t] = h[t-1] @ w[0] + h[t] @ w[1] + h[t+1] @ w[2]
            # Neighbors via XLU rolls by bt rows (batch index preserved); the
            # wrapped rows originate in the zero-masked t >= L region.
            hl = pltpu.roll(h, shift=bt, axis=0)       # h[t-1]
            hr = pltpu.roll(h, shift=M - bt, axis=0)   # h[t+1]
            return (jnp.dot(hl.astype(bf16), w_ref[0], preferred_element_type=f32)
                    + jnp.dot(h.astype(bf16), w_ref[1], preferred_element_type=f32)
                    + jnp.dot(hr.astype(bf16), w_ref[2], preferred_element_type=f32))

        def bn_act_mask(h, s_ref, b_ref, act):
            return jnp.where(valid, act(h * s_ref[...] + b_ref[...]), 0.0)

        x = x_ref[...]                                   # (M, NZ) f32, padding rows zero
        h = conv_same(x, wc1_ref)
        h = bn_act_mask(h, s1_ref, b1_ref, lambda v: jnp.maximum(v, 0.0))
        h = conv_same(h, wc2_ref)
        h = bn_act_mask(h, s2_ref, b2_ref, lambda v: jnp.maximum(v, 0.0))
        h = conv_same(h, wc3_ref)
        h = bn_act_mask(h, s3_ref, b3_ref, jnp.tanh)
        h = conv_same(h, wc4_ref)
        h = jnp.maximum(h, 0.0)                          # (M, C4); t >= L rows unused below

        # Channel-major flatten folded into wfc_ref: fc[b] = sum_t h[t-block] @ wfc[t].
        # Each t is a contiguous, sublane-aligned bt-row block of the slab.
        acc = jnp.zeros((bt, FC1), f32)
        for t in range(L):
            acc = acc + jnp.dot(h[t * bt:(t + 1) * bt, :].astype(bf16), wfc_ref[t],
                                preferred_element_type=f32)
        fc = acc + bfc_ref[...]
        out = jnp.tanh(jnp.dot(fc.astype(bf16), wfc2_ref[...],
                               preferred_element_type=f32) + bfc2_ref[...])
        out_ref[...] = out                               # (bt, OUT_PAD) lane-dense store

    return kernel


def generator_forward(x, params, block_b=None):
    """x: (B, L, NZ) float32  ->  (B, OUT) float32."""
    B = x.shape[0]
    assert x.shape == (B, L, NZ)
    # 256-row slabs (bt=16) fill the v6e/v7x MXU; 128-row slabs suffice on v5e /
    # tiny batches.
    bt = block_b if block_b is not None else (16 if B > 8 else 8)
    nb = -(-B // bt)
    Bp = nb * bt
    M = bt * L_PAD
    bf16 = jnp.bfloat16

    # Input: pad batch, rearrange to time-major slabs: row = s*M + t*bt + b.
    x_p = jnp.zeros((Bp, L, NZ), jnp.float32).at[:B].set(x)
    x_big = jnp.transpose(x_p.reshape(nb, bt, L, NZ), (0, 2, 1, 3))    # (nb, L, bt, NZ)
    x_big = jnp.pad(x_big, ((0, 0), (0, L_PAD - L), (0, 0), (0, 0)))   # zero t >= L
    x_big = x_big.reshape(nb * M, NZ)

    def stack_convt(w):
        # torch ConvTranspose1d weight (Cin, Cout, 3) -> (3, Cin, Cout), kernel flipped so
        # y[t] = x[t-1] @ W[:,:,2] + x[t] @ W[:,:,1] + x[t+1] @ W[:,:,0]
        return jnp.flip(jnp.transpose(w, (2, 0, 1)), axis=0).astype(bf16)

    def bn_fold(gamma, beta, mean, var):
        scale = gamma / jnp.sqrt(var + BN_EPS)
        shift = beta - mean * scale
        return scale.reshape(1, -1), shift.reshape(1, -1)

    wc1 = stack_convt(params["wc1"]); s1, b1 = bn_fold(*params["bn1"])
    wc2 = stack_convt(params["wc2"]); s2, b2 = bn_fold(*params["bn2"])
    wc3 = stack_convt(params["wc3"]); s3, b3 = bn_fold(*params["bn3"])
    wc4 = stack_convt(params["wc4"])

    # wfc[o, c*L + t] -> wfc_r[t, c, o]
    wfc_r = jnp.transpose(params["wfc"].reshape(FC1, C4, L), (2, 1, 0)).astype(bf16)
    bfc = params["bfc"].reshape(1, FC1)
    wfc2_p = (jnp.zeros((FC1, OUT_PAD), jnp.float32)
              .at[:, :OUT].set(params["wfc2"].T).astype(bf16))
    bfc2_p = jnp.zeros((1, OUT_PAD), jnp.float32).at[:, :OUT].set(params["bfc2"].reshape(1, OUT))

    def full(shape):
        n = len(shape)
        return pl.BlockSpec(shape, lambda s, n=n: (0,) * n)

    in_specs = [
        pl.BlockSpec((M, NZ), lambda s: (s, 0)),
        full((3, NZ, C1)), full((1, C1)), full((1, C1)),
        full((3, C1, C2)), full((1, C2)), full((1, C2)),
        full((3, C2, C3)), full((1, C3)), full((1, C3)),
        full((3, C3, C4)),
        full((L, C4, FC1)), full((1, FC1)),
        full((FC1, OUT_PAD)), full((1, OUT_PAD)),
    ]

    out = pl.pallas_call(
        _make_kernel(bt),
        out_shape=jax.ShapeDtypeStruct((nb * bt, OUT_PAD), jnp.float32),
        grid=(nb,),
        in_specs=in_specs,
        out_specs=pl.BlockSpec((bt, OUT_PAD), lambda s: (s, 0)),
        compiler_params=pltpu.CompilerParams(dimension_semantics=("parallel",)),
    )(x_big, wc1, s1, b1, wc2, s2, b2, wc3, s3, b3, wc4, wfc_r, bfc, wfc2_p, bfc2_p)
    return out[:B, :OUT]


def torch_reference(x, params):
    """Pure-JAX mirror of the PyTorch forward (NCW layout), f32, for verification."""
    hi = jax.lax.Precision.HIGHEST

    def convt(h, w):  # h: (B, Cin, L), w: (Cin, Cout, 3); ConvTranspose1d k=3, s=1, p=1
        hp = jnp.pad(h, ((0, 0), (0, 0), (1, 1)))
        return (jnp.einsum("bct,co->bot", hp[:, :, 2:2 + L], w[:, :, 0], precision=hi)
                + jnp.einsum("bct,co->bot", hp[:, :, 1:1 + L], w[:, :, 1], precision=hi)
                + jnp.einsum("bct,co->bot", hp[:, :, 0:0 + L], w[:, :, 2], precision=hi))

    def bn(h, gamma, beta, mean, var):
        return ((h - mean[None, :, None]) / jnp.sqrt(var[None, :, None] + BN_EPS)
                * gamma[None, :, None] + beta[None, :, None])

    h = jnp.transpose(x, (0, 2, 1))                            # (B, NZ, L)
    h = jax.nn.relu(bn(convt(h, params["wc1"]), *params["bn1"]))
    h = jax.nn.relu(bn(convt(h, params["wc2"]), *params["bn2"]))
    h = jnp.tanh(bn(convt(h, params["wc3"]), *params["bn3"]))
    h = jax.nn.relu(convt(h, params["wc4"]))
    flat = h.reshape(h.shape[0], -1)                           # (B, 640), channel-major
    fc = jnp.dot(flat, params["wfc"].T, precision=hi) + params["bfc"]
    return jnp.tanh(jnp.dot(fc, params["wfc2"].T, precision=hi) + params["bfc2"])


def init_params(key):
    ks = jax.random.split(key, 12)

    def conv_w(k, cin, cout):
        return jax.random.normal(k, (cin, cout, 3), jnp.float32) / jnp.sqrt(3.0 * cin)

    def bn_p(k, c):
        k1, k2, k3, k4 = jax.random.split(k, 4)
        gamma = 1.0 + 0.1 * jax.random.normal(k1, (c,), jnp.float32)
        beta = 0.1 * jax.random.normal(k2, (c,), jnp.float32)
        mean = 0.1 * jax.random.normal(k3, (c,), jnp.float32)
        var = jax.random.uniform(k4, (c,), jnp.float32, minval=0.5, maxval=1.5)
        return (gamma, beta, mean, var)

    return {
        "wc1": conv_w(ks[0], NZ, C1), "bn1": bn_p(ks[1], C1),
        "wc2": conv_w(ks[2], C1, C2), "bn2": bn_p(ks[3], C2),
        "wc3": conv_w(ks[4], C2, C3), "bn3": bn_p(ks[5], C3),
        "wc4": conv_w(ks[6], C3, C4),
        "wfc": jax.random.normal(ks[7], (FC1, C4 * L), jnp.float32) / jnp.sqrt(float(C4 * L)),
        "bfc": 0.1 * jax.random.normal(ks[8], (FC1,), jnp.float32),
        "wfc2": jax.random.normal(ks[9], (OUT, FC1), jnp.float32) / jnp.sqrt(float(FC1)),
        "bfc2": 0.1 * jax.random.normal(ks[10], (OUT,), jnp.float32),
    }


if __name__ == "__main__":
    key = jax.random.PRNGKey(0)
    pkey, xkey = jax.random.split(key)
    params = init_params(pkey)
    x = jax.random.normal(xkey, (2, L, NZ), jnp.float32)

    fwd = jax.jit(generator_forward)
    out = jax.block_until_ready(fwd(x, params))

    ref = torch_reference(x, params)
    assert out.shape == (2, OUT)
    if not jnp.allclose(out, ref, atol=2e-2, rtol=2e-2):
        max_err = float(jnp.max(jnp.abs(out - ref)))
        raise AssertionError(f"mismatch vs reference, max abs err = {max_err}")
    print("KERNEL_OK")
</pallas_src>

<mosaic_0001>
module attributes {stable_mosaic.version = 11 : i64} {
  func.func @kernel(%arg0: i32, %arg1: memref<128x6xf32, #tpu.memory_space<vmem>>, %arg2: memref<3x6x256xbf16, #tpu.memory_space<vmem>>, %arg3: memref<1x256xf32, #tpu.memory_space<vmem>>, %arg4: memref<1x256xf32, #tpu.memory_space<vmem>>, %arg5: memref<3x256x512xbf16, #tpu.memory_space<vmem>>, %arg6: memref<1x512xf32, #tpu.memory_space<vmem>>, %arg7: memref<1x512xf32, #tpu.memory_space<vmem>>, %arg8: memref<3x512x128xbf16, #tpu.memory_space<vmem>>, %arg9: memref<1x128xf32, #tpu.memory_space<vmem>>, %arg10: memref<1x128xf32, #tpu.memory_space<vmem>>, %arg11: memref<3x128x64xbf16, #tpu.memory_space<vmem>>, %arg12: memref<10x64x320xbf16, #tpu.memory_space<vmem>>, %arg13: memref<1x320xf32, #tpu.memory_space<vmem>>, %arg14: memref<320x128xbf16, #tpu.memory_space<vmem>>, %arg15: memref<1x128xf32, #tpu.memory_space<vmem>>, %arg16: memref<8x128xf32, #tpu.memory_space<vmem>>) attributes {dimension_semantics = [#tpu.dimension_semantics<parallel>], iteration_bounds = array<i64: 1>, scalar_prefetch = 0 : i64, scratch_operands = 0 : i64, tpu.core_type = #tpu.core_type<tc>, window_params = [{transform_indices = @transform_0, window_bounds = array<i64: 128, 6>}, {pipeline_mode = #tpu.pipeline_mode<synchronous>, transform_indices = @transform_1, window_bounds = array<i64: 3, 6, 256>}, {pipeline_mode = #tpu.pipeline_mode<synchronous>, transform_indices = @transform_2, window_bounds = array<i64: 1, 256>}, {pipeline_mode = #tpu.pipeline_mode<synchronous>, transform_indices = @transform_3, window_bounds = array<i64: 1, 256>}, {pipeline_mode = #tpu.pipeline_mode<synchronous>, transform_indices = @transform_4, window_bounds = array<i64: 3, 256, 512>}, {pipeline_mode = #tpu.pipeline_mode<synchronous>, transform_indices = @transform_5, window_bounds = array<i64: 1, 512>}, {pipeline_mode = #tpu.pipeline_mode<synchronous>, transform_indices = @transform_6, window_bounds = array<i64: 1, 512>}, {pipeline_mode = #tpu.pipeline_mode<synchronous>, transform_indices = @transform_7, window_bounds = array<i64: 3, 512, 128>}, {pipeline_mode = #tpu.pipeline_mode<synchronous>, transform_indices = @transform_8, window_bounds = array<i64: 1, 128>}, {pipeline_mode = #tpu.pipeline_mode<synchronous>, transform_indices = @transform_9, window_bounds = array<i64: 1, 128>}, {pipeline_mode = #tpu.pipeline_mode<synchronous>, transform_indices = @transform_10, window_bounds = array<i64: 3, 128, 64>}, {pipeline_mode = #tpu.pipeline_mode<synchronous>, transform_indices = @transform_11, window_bounds = array<i64: 10, 64, 320>}, {pipeline_mode = #tpu.pipeline_mode<synchronous>, transform_indices = @transform_12, window_bounds = array<i64: 1, 320>}, {pipeline_mode = #tpu.pipeline_mode<synchronous>, transform_indices = @transform_13, window_bounds = array<i64: 320, 128>}, {pipeline_mode = #tpu.pipeline_mode<synchronous>, transform_indices = @transform_14, window_bounds = array<i64: 1, 128>}, {transform_indices = @transform_15, window_bounds = array<i64: 8, 128>}]} {
    %0 = tpu.iota {dimensions = array<i32: 0>} : vector<128x1xi32>
    %c80_i32 = arith.constant 80 : i32
    %1 = vector.broadcast %c80_i32 : i32 to vector<128x1xi32>
    %2 = arith.cmpi slt, %0, %1 : vector<128x1xi32>
    %c0 = arith.constant 0 : index
    %c0_0 = arith.constant 0 : index
    %3 = vector.load %arg1[%c0, %c0_0] : memref<128x6xf32, #tpu.memory_space<vmem>>, vector<128x6xf32>
    %c8_i32 = arith.constant 8 : i32
    %4 = tpu.dynamic_rotate %3 by %c8_i32 dim 0 : vector<128x6xf32>, i32 -> vector<128x6xf32>
    %c120_i32 = arith.constant 120 : i32
    %5 = tpu.dynamic_rotate %3 by %c120_i32 dim 0 : vector<128x6xf32>, i32 -> vector<128x6xf32>
    %6 = arith.truncf %4 : vector<128x6xf32> to vector<128x6xbf16>
    %c0_1 = arith.constant 0 : index
    %c0_2 = arith.constant 0 : index
    %c0_3 = arith.constant 0 : index
    %7 = vector.load %arg2[%c0_1, %c0_2, %c0_3] : memref<3x6x256xbf16, #tpu.memory_space<vmem>>, vector<1x6x256xbf16>
    %8 = vector.shape_cast %7 : vector<1x6x256xbf16> to vector<6x256xbf16>
    %cst = arith.constant dense<0.000000e+00> : vector<128x256xf32>
    %9 = tpu.matmul %6, %8, %cst {dimension_numbers = #tpu.dot_dimension_numbers<[1], [0], [0], [1], [0, 0, 1, 1], [], []>} : vector<128x6xbf16>, vector<6x256xbf16>, vector<128x256xf32> -> vector<128x256xf32>
    %10 = arith.truncf %3 : vector<128x6xf32> to vector<128x6xbf16>
    %c1 = arith.constant 1 : index
    %c0_4 = arith.constant 0 : index
    %c0_5 = arith.constant 0 : index
    %11 = vector.load %arg2[%c1, %c0_4, %c0_5] : memref<3x6x256xbf16, #tpu.memory_space<vmem>>, vector<1x6x256xbf16>
    %12 = vector.shape_cast %11 : vector<1x6x256xbf16> to vector<6x256xbf16>
    %cst_6 = arith.constant dense<0.000000e+00> : vector<128x256xf32>
    %13 = tpu.matmul %10, %12, %cst_6 {dimension_numbers = #tpu.dot_dimension_numbers<[1], [0], [0], [1], [0, 0, 1, 1], [], []>} : vector<128x6xbf16>, vector<6x256xbf16>, vector<128x256xf32> -> vector<128x256xf32>
    %14 = arith.addf %9, %13 : vector<128x256xf32>
    %15 = arith.truncf %5 : vector<128x6xf32> to vector<128x6xbf16>
    %c2 = arith.constant 2 : index
    %c0_7 = arith.constant 0 : index
    %c0_8 = arith.constant 0 : index
    %16 = vector.load %arg2[%c2, %c0_7, %c0_8] : memref<3x6x256xbf16, #tpu.memory_space<vmem>>, vector<1x6x256xbf16>
    %17 = vector.shape_cast %16 : vector<1x6x256xbf16> to vector<6x256xbf16>
    %cst_9 = arith.constant dense<0.000000e+00> : vector<128x256xf32>
    %18 = tpu.matmul %15, %17, %cst_9 {dimension_numbers = #tpu.dot_dimension_numbers<[1], [0], [0], [1], [0, 0, 1, 1], [], []>} : vector<128x6xbf16>, vector<6x256xbf16>, vector<128x256xf32> -> vector<128x256xf32>
    %19 = arith.addf %14, %18 : vector<128x256xf32>
    %c0_10 = arith.constant 0 : index
    %c0_11 = arith.constant 0 : index
    %20 = vector.load %arg3[%c0_10, %c0_11] : memref<1x256xf32, #tpu.memory_space<vmem>>, vector<1x256xf32>
    %21 = vector.broadcast %20 : vector<1x256xf32> to vector<128x256xf32>
    %22 = arith.mulf %19, %21 : vector<128x256xf32>
    %c0_12 = arith.constant 0 : index
    %c0_13 = arith.constant 0 : index
    %23 = vector.load %arg4[%c0_12, %c0_13] : memref<1x256xf32, #tpu.memory_space<vmem>>, vector<1x256xf32>
    %24 = vector.broadcast %23 : vector<1x256xf32> to vector<128x256xf32>
    %25 = arith.addf %22, %24 : vector<128x256xf32>
    %cst_14 = arith.constant 0.000000e+00 : f32
    %26 = vector.broadcast %cst_14 : f32 to vector<128x256xf32>
    %27 = arith.maximumf %25, %26 : vector<128x256xf32>
    %cst_15 = arith.constant 0.000000e+00 : f32
    %28 = vector.shape_cast %2 : vector<128x1xi1> to vector<128x1xi1>
    %29 = vector.broadcast %28 : vector<128x1xi1> to vector<128x256xi1>
    %30 = vector.broadcast %cst_15 : f32 to vector<128x256xf32>
    %31 = arith.select %29, %27, %30 : vector<128x256xi1>, vector<128x256xf32>
    %c8_i32_16 = arith.constant 8 : i32
    %32 = tpu.dynamic_rotate %31 by %c8_i32_16 dim 0 : vector<128x256xf32>, i32 -> vector<128x256xf32>
    %c120_i32_17 = arith.constant 120 : i32
    %33 = tpu.dynamic_rotate %31 by %c120_i32_17 dim 0 : vector<128x256xf32>, i32 -> vector<128x256xf32>
    %34 = arith.truncf %32 : vector<128x256xf32> to vector<128x256xbf16>
    %c0_18 = arith.constant 0 : index
    %c0_19 = arith.constant 0 : index
    %c0_20 = arith.constant 0 : index
    %35 = vector.load %arg5[%c0_18, %c0_19, %c0_20] : memref<3x256x512xbf16, #tpu.memory_space<vmem>>, vector<1x256x512xbf16>
    %36 = vector.shape_cast %35 : vector<1x256x512xbf16> to vector<256x512xbf16>
    %cst_21 = arith.constant dense<0.000000e+00> : vector<128x512xf32>
    %37 = tpu.matmul %34, %36, %cst_21 {dimension_numbers = #tpu.dot_dimension_numbers<[1], [0], [0], [1], [0, 0, 1, 1], [], []>} : vector<128x256xbf16>, vector<256x512xbf16>, vector<128x512xf32> -> vector<128x512xf32>
    %38 = arith.truncf %31 : vector<128x256xf32> to vector<128x256xbf16>
    %c1_22 = arith.constant 1 : index
    %c0_23 = arith.constant 0 : index
    %c0_24 = arith.constant 0 : index
    %39 = vector.load %arg5[%c1_22, %c0_23, %c0_24] : memref<3x256x512xbf16, #tpu.memory_space<vmem>>, vector<1x256x512xbf16>
    %40 = vector.shape_cast %39 : vector<1x256x512xbf16> to vector<256x512xbf16>
    %cst_25 = arith.constant dense<0.000000e+00> : vector<128x512xf32>
    %41 = tpu.matmul %38, %40, %cst_25 {dimension_numbers = #tpu.dot_dimension_numbers<[1], [0], [0], [1], [0, 0, 1, 1], [], []>} : vector<128x256xbf16>, vector<256x512xbf16>, vector<128x512xf32> -> vector<128x512xf32>
    %42 = arith.addf %37, %41 : vector<128x512xf32>
    %43 = arith.truncf %33 : vector<128x256xf32> to vector<128x256xbf16>
    %c2_26 = arith.constant 2 : index
    %c0_27 = arith.constant 0 : index
    %c0_28 = arith.constant 0 : index
    %44 = vector.load %arg5[%c2_26, %c0_27, %c0_28] : memref<3x256x512xbf16, #tpu.memory_space<vmem>>, vector<1x256x512xbf16>
    %45 = vector.shape_cast %44 : vector<1x256x512xbf16> to vector<256x512xbf16>
    %cst_29 = arith.constant dense<0.000000e+00> : vector<128x512xf32>
    %46 = tpu.matmul %43, %45, %cst_29 {dimension_numbers = #tpu.dot_dimension_numbers<[1], [0], [0], [1], [0, 0, 1, 1], [], []>} : vector<128x256xbf16>, vector<256x512xbf16>, vector<128x512xf32> -> vector<128x512xf32>
    %47 = arith.addf %42, %46 : vector<128x512xf32>
    %c0_30 = arith.constant 0 : index
    %c0_31 = arith.constant 0 : index
    %48 = vector.load %arg6[%c0_30, %c0_31] : memref<1x512xf32, #tpu.memory_space<vmem>>, vector<1x512xf32>
    %49 = vector.broadcast %48 : vector<1x512xf32> to vector<128x512xf32>
    %50 = arith.mulf %47, %49 : vector<128x512xf32>
    %c0_32 = arith.constant 0 : index
    %c0_33 = arith.constant 0 : index
    %51 = vector.load %arg7[%c0_32, %c0_33] : memref<1x512xf32, #tpu.memory_space<vmem>>, vector<1x512xf32>
    %52 = vector.broadcast %51 : vector<1x512xf32> to vector<128x512xf32>
    %53 = arith.addf %50, %52 : vector<128x512xf32>
    %cst_34 = arith.constant 0.000000e+00 : f32
    %54 = vector.broadcast %cst_34 : f32 to vector<128x512xf32>
    %55 = arith.maximumf %53, %54 : vector<128x512xf32>
    %cst_35 = arith.constant 0.000000e+00 : f32
    %56 = vector.shape_cast %2 : vector<128x1xi1> to vector<128x1xi1>
    %57 = vector.broadcast %56 : vector<128x1xi1> to vector<128x512xi1>
    %58 = vector.broadcast %cst_35 : f32 to vector<128x512xf32>
    %59 = arith.select %57, %55, %58 : vector<128x512xi1>, vector<128x512xf32>
    %c8_i32_36 = arith.constant 8 : i32
    %60 = tpu.dynamic_rotate %59 by %c8_i32_36 dim 0 : vector<128x512xf32>, i32 -> vector<128x512xf32>
    %c120_i32_37 = arith.constant 120 : i32
    %61 = tpu.dynamic_rotate %59 by %c120_i32_37 dim 0 : vector<128x512xf32>, i32 -> vector<128x512xf32>
    %62 = arith.truncf %60 : vector<128x512xf32> to vector<128x512xbf16>
    %c0_38 = arith.constant 0 : index
    %c0_39 = arith.constant 0 : index
    %c0_40 = arith.constant 0 : index
    %63 = vector.load %arg8[%c0_38, %c0_39, %c0_40] : memref<3x512x128xbf16, #tpu.memory_space<vmem>>, vector<1x512x128xbf16>
    %64 = vector.shape_cast %63 : vector<1x512x128xbf16> to vector<512x128xbf16>
    %cst_41 = arith.constant dense<0.000000e+00> : vector<128x128xf32>
    %65 = tpu.matmul %62, %64, %cst_41 {dimension_numbers = #tpu.dot_dimension_numbers<[1], [0], [0], [1], [0, 0, 1, 1], [], []>} : vector<128x512xbf16>, vector<512x128xbf16>, vector<128x128xf32> -> vector<128x128xf32>
    %66 = arith.truncf %59 : vector<128x512xf32> to vector<128x512xbf16>
    %c1_42 = arith.constant 1 : index
    %c0_43 = arith.constant 0 : index
    %c0_44 = arith.constant 0 : index
    %67 = vector.load %arg8[%c1_42, %c0_43, %c0_44] : memref<3x512x128xbf16, #tpu.memory_space<vmem>>, vector<1x512x128xbf16>
    %68 = vector.shape_cast %67 : vector<1x512x128xbf16> to vector<512x128xbf16>
    %cst_45 = arith.constant dense<0.000000e+00> : vector<128x128xf32>
    %69 = tpu.matmul %66, %68, %cst_45 {dimension_numbers = #tpu.dot_dimension_numbers<[1], [0], [0], [1], [0, 0, 1, 1], [], []>} : vector<128x512xbf16>, vector<512x128xbf16>, vector<128x128xf32> -> vector<128x128xf32>
    %70 = arith.addf %65, %69 : vector<128x128xf32>
    %71 = arith.truncf %61 : vector<128x512xf32> to vector<128x512xbf16>
    %c2_46 = arith.constant 2 : index
    %c0_47 = arith.constant 0 : index
    %c0_48 = arith.constant 0 : index
    %72 = vector.load %arg8[%c2_46, %c0_47, %c0_48] : memref<3x512x128xbf16, #tpu.memory_space<vmem>>, vector<1x512x128xbf16>
    %73 = vector.shape_cast %72 : vector<1x512x128xbf16> to vector<512x128xbf16>
    %cst_49 = arith.constant dense<0.000000e+00> : vector<128x128xf32>
    %74 = tpu.matmul %71, %73, %cst_49 {dimension_numbers = #tpu.dot_dimension_numbers<[1], [0], [0], [1], [0, 0, 1, 1], [], []>} : vector<128x512xbf16>, vector<512x128xbf16>, vector<128x128xf32> -> vector<128x128xf32>
    %75 = arith.addf %70, %74 : vector<128x128xf32>
    %c0_50 = arith.constant 0 : index
    %c0_51 = arith.constant 0 : index
    %76 = vector.load %arg9[%c0_50, %c0_51] : memref<1x128xf32, #tpu.memory_space<vmem>>, vector<1x128xf32>
    %77 = vector.broadcast %76 : vector<1x128xf32> to vector<128x128xf32>
    %78 = arith.mulf %75, %77 : vector<128x128xf32>
    %c0_52 = arith.constant 0 : index
    %c0_53 = arith.constant 0 : index
    %79 = vector.load %arg10[%c0_52, %c0_53] : memref<1x128xf32, #tpu.memory_space<vmem>>, vector<1x128xf32>
    %80 = vector.broadcast %79 : vector<1x128xf32> to vector<128x128xf32>
    %81 = arith.addf %78, %80 : vector<128x128xf32>
    %82 = math.tanh %81 : vector<128x128xf32>
    %cst_54 = arith.constant 0.000000e+00 : f32
    %83 = vector.shape_cast %2 : vector<128x1xi1> to vector<128x1xi1>
    %84 = vector.broadcast %83 : vector<128x1xi1> to vector<128x128xi1>
    %85 = vector.broadcast %cst_54 : f32 to vector<128x128xf32>
    %86 = arith.select %84, %82, %85 : vector<128x128xi1>, vector<128x128xf32>
    %c8_i32_55 = arith.constant 8 : i32
    %87 = tpu.dynamic_rotate %86 by %c8_i32_55 dim 0 : vector<128x128xf32>, i32 -> vector<128x128xf32>
    %c120_i32_56 = arith.constant 120 : i32
    %88 = tpu.dynamic_rotate %86 by %c120_i32_56 dim 0 : vector<128x128xf32>, i32 -> vector<128x128xf32>
    %89 = arith.truncf %87 : vector<128x128xf32> to vector<128x128xbf16>
    %c0_57 = arith.constant 0 : index
    %c0_58 = arith.constant 0 : index
    %c0_59 = arith.constant 0 : index
    %90 = vector.load %arg11[%c0_57, %c0_58, %c0_59] : memref<3x128x64xbf16, #tpu.memory_space<vmem>>, vector<1x128x64xbf16>
    %91 = vector.shape_cast %90 : vector<1x128x64xbf16> to vector<128x64xbf16>
    %cst_60 = arith.constant dense<0.000000e+00> : vector<128x64xf32>
    %92 = tpu.matmul %89, %91, %cst_60 {dimension_numbers = #tpu.dot_dimension_numbers<[1], [0], [0], [1], [0, 0, 1, 1], [], []>} : vector<128x128xbf16>, vector<128x64xbf16>, vector<128x64xf32> -> vector<128x64xf32>
    %93 = arith.truncf %86 : vector<128x128xf32> to vector<128x128xbf16>
    %c1_61 = arith.constant 1 : index
    %c0_62 = arith.constant 0 : index
    %c0_63 = arith.constant 0 : index
    %94 = vector.load %arg11[%c1_61, %c0_62, %c0_63] : memref<3x128x64xbf16, #tpu.memory_space<vmem>>, vector<1x128x64xbf16>
    %95 = vector.shape_cast %94 : vector<1x128x64xbf16> to vector<128x64xbf16>
    %cst_64 = arith.constant dense<0.000000e+00> : vector<128x64xf32>
    %96 = tpu.matmul %93, %95, %cst_64 {dimension_numbers = #tpu.dot_dimension_numbers<[1], [0], [0], [1], [0, 0, 1, 1], [], []>} : vector<128x128xbf16>, vector<128x64xbf16>, vector<128x64xf32> -> vector<128x64xf32>
    %97 = arith.addf %92, %96 : vector<128x64xf32>
    %98 = arith.truncf %88 : vector<128x128xf32> to vector<128x128xbf16>
    %c2_65 = arith.constant 2 : index
    %c0_66 = arith.constant 0 : index
    %c0_67 = arith.constant 0 : index
    %99 = vector.load %arg11[%c2_65, %c0_66, %c0_67] : memref<3x128x64xbf16, #tpu.memory_space<vmem>>, vector<1x128x64xbf16>
    %100 = vector.shape_cast %99 : vector<1x128x64xbf16> to vector<128x64xbf16>
    %cst_68 = arith.constant dense<0.000000e+00> : vector<128x64xf32>
    %101 = tpu.matmul %98, %100, %cst_68 {dimension_numbers = #tpu.dot_dimension_numbers<[1], [0], [0], [1], [0, 0, 1, 1], [], []>} : vector<128x128xbf16>, vector<128x64xbf16>, vector<128x64xf32> -> vector<128x64xf32>
    %102 = arith.addf %97, %101 : vector<128x64xf32>
    %cst_69 = arith.constant 0.000000e+00 : f32
    %103 = vector.broadcast %cst_69 : f32 to vector<128x64xf32>
    %104 = arith.maximumf %102, %103 : vector<128x64xf32>
    %cst_70 = arith.constant 0.000000e+00 : f32
    %105 = vector.broadcast %cst_70 : f32 to vector<8x320xf32>
    %106 = vector.extract_strided_slice %104 {offsets = [0, 0], sizes = [8, 64], strides = [1, 1]} : vector<128x64xf32> to vector<8x64xf32>
    %107 = arith.truncf %106 : vector<8x64xf32> to vector<8x64xbf16>
    %c0_71 = arith.constant 0 : index
    %c0_72 = arith.constant 0 : index
    %c0_73 = arith.constant 0 : index
    %108 = vector.load %arg12[%c0_71, %c0_72, %c0_73] : memref<10x64x320xbf16, #tpu.memory_space<vmem>>, vector<1x64x320xbf16>
    %109 = vector.shape_cast %108 : vector<1x64x320xbf16> to vector<64x320xbf16>
    %cst_74 = arith.constant dense<0.000000e+00> : vector<8x320xf32>
    %110 = tpu.matmul %107, %109, %cst_74 {dimension_numbers = #tpu.dot_dimension_numbers<[1], [0], [0], [1], [0, 0, 1, 1], [], []>} : vector<8x64xbf16>, vector<64x320xbf16>, vector<8x320xf32> -> vector<8x320xf32>
    %111 = arith.addf %105, %110 : vector<8x320xf32>
    %112 = vector.extract_strided_slice %104 {offsets = [8, 0], sizes = [8, 64], strides = [1, 1]} : vector<128x64xf32> to vector<8x64xf32>
    %113 = arith.truncf %112 : vector<8x64xf32> to vector<8x64xbf16>
    %c1_75 = arith.constant 1 : index
    %c0_76 = arith.constant 0 : index
    %c0_77 = arith.constant 0 : index
    %114 = vector.load %arg12[%c1_75, %c0_76, %c0_77] : memref<10x64x320xbf16, #tpu.memory_space<vmem>>, vector<1x64x320xbf16>
    %115 = vector.shape_cast %114 : vector<1x64x320xbf16> to vector<64x320xbf16>
    %cst_78 = arith.constant dense<0.000000e+00> : vector<8x320xf32>
    %116 = tpu.matmul %113, %115, %cst_78 {dimension_numbers = #tpu.dot_dimension_numbers<[1], [0], [0], [1], [0, 0, 1, 1], [], []>} : vector<8x64xbf16>, vector<64x320xbf16>, vector<8x320xf32> -> vector<8x320xf32>
    %117 = arith.addf %111, %116 : vector<8x320xf32>
    %118 = vector.extract_strided_slice %104 {offsets = [16, 0], sizes = [8, 64], strides = [1, 1]} : vector<128x64xf32> to vector<8x64xf32>
    %119 = arith.truncf %118 : vector<8x64xf32> to vector<8x64xbf16>
    %c2_79 = arith.constant 2 : index
    %c0_80 = arith.constant 0 : index
    %c0_81 = arith.constant 0 : index
    %120 = vector.load %arg12[%c2_79, %c0_80, %c0_81] : memref<10x64x320xbf16, #tpu.memory_space<vmem>>, vector<1x64x320xbf16>
    %121 = vector.shape_cast %120 : vector<1x64x320xbf16> to vector<64x320xbf16>
    %cst_82 = arith.constant dense<0.000000e+00> : vector<8x320xf32>
    %122 = tpu.matmul %119, %121, %cst_82 {dimension_numbers = #tpu.dot_dimension_numbers<[1], [0], [0], [1], [0, 0, 1, 1], [], []>} : vector<8x64xbf16>, vector<64x320xbf16>, vector<8x320xf32> -> vector<8x320xf32>
    %123 = arith.addf %117, %122 : vector<8x320xf32>
    %124 = vector.extract_strided_slice %104 {offsets = [24, 0], sizes = [8, 64], strides = [1, 1]} : vector<128x64xf32> to vector<8x64xf32>
    %125 = arith.truncf %124 : vector<8x64xf32> to vector<8x64xbf16>
    %c3 = arith.constant 3 : index
    %c0_83 = arith.constant 0 : index
    %c0_84 = arith.constant 0 : index
    %126 = vector.load %arg12[%c3, %c0_83, %c0_84] : memref<10x64x320xbf16, #tpu.memory_space<vmem>>, vector<1x64x320xbf16>
    %127 = vector.shape_cast %126 : vector<1x64x320xbf16> to vector<64x320xbf16>
    %cst_85 = arith.constant dense<0.000000e+00> : vector<8x320xf32>
    %128 = tpu.matmul %125, %127, %cst_85 {dimension_numbers = #tpu.dot_dimension_numbers<[1], [0], [0], [1], [0, 0, 1, 1], [], []>} : vector<8x64xbf16>, vector<64x320xbf16>, vector<8x320xf32> -> vector<8x320xf32>
    %129 = arith.addf %123, %128 : vector<8x320xf32>
    %130 = vector.extract_strided_slice %104 {offsets = [32, 0], sizes = [8, 64], strides = [1, 1]} : vector<128x64xf32> to vector<8x64xf32>
    %131 = arith.truncf %130 : vector<8x64xf32> to vector<8x64xbf16>
    %c4 = arith.constant 4 : index
    %c0_86 = arith.constant 0 : index
    %c0_87 = arith.constant 0 : index
    %132 = vector.load %arg12[%c4, %c0_86, %c0_87] : memref<10x64x320xbf16, #tpu.memory_space<vmem>>, vector<1x64x320xbf16>
    %133 = vector.shape_cast %132 : vector<1x64x320xbf16> to vector<64x320xbf16>
    %cst_88 = arith.constant dense<0.000000e+00> : vector<8x320xf32>
    %134 = tpu.matmul %131, %133, %cst_88 {dimension_numbers = #tpu.dot_dimension_numbers<[1], [0], [0], [1], [0, 0, 1, 1], [], []>} : vector<8x64xbf16>, vector<64x320xbf16>, vector<8x320xf32> -> vector<8x320xf32>
    %135 = arith.addf %129, %134 : vector<8x320xf32>
    %136 = vector.extract_strided_slice %104 {offsets = [40, 0], sizes = [8, 64], strides = [1, 1]} : vector<128x64xf32> to vector<8x64xf32>
    %137 = arith.truncf %136 : vector<8x64xf32> to vector<8x64xbf16>
    %c5 = arith.constant 5 : index
    %c0_89 = arith.constant 0 : index
    %c0_90 = arith.constant 0 : index
    %138 = vector.load %arg12[%c5, %c0_89, %c0_90] : memref<10x64x320xbf16, #tpu.memory_space<vmem>>, vector<1x64x320xbf16>
    %139 = vector.shape_cast %138 : vector<1x64x320xbf16> to vector<64x320xbf16>
    %cst_91 = arith.constant dense<0.000000e+00> : vector<8x320xf32>
    %140 = tpu.matmul %137, %139, %cst_91 {dimension_numbers = #tpu.dot_dimension_numbers<[1], [0], [0], [1], [0, 0, 1, 1], [], []>} : vector<8x64xbf16>, vector<64x320xbf16>, vector<8x320xf32> -> vector<8x320xf32>
    %141 = arith.addf %135, %140 : vector<8x320xf32>
    %142 = vector.extract_strided_slice %104 {offsets = [48, 0], sizes = [8, 64], strides = [1, 1]} : vector<128x64xf32> to vector<8x64xf32>
    %143 = arith.truncf %142 : vector<8x64xf32> to vector<8x64xbf16>
    %c6 = arith.constant 6 : index
    %c0_92 = arith.constant 0 : index
    %c0_93 = arith.constant 0 : index
    %144 = vector.load %arg12[%c6, %c0_92, %c0_93] : memref<10x64x320xbf16, #tpu.memory_space<vmem>>, vector<1x64x320xbf16>
    %145 = vector.shape_cast %144 : vector<1x64x320xbf16> to vector<64x320xbf16>
    %cst_94 = arith.constant dense<0.000000e+00> : vector<8x320xf32>
    %146 = tpu.matmul %143, %145, %cst_94 {dimension_numbers = #tpu.dot_dimension_numbers<[1], [0], [0], [1], [0, 0, 1, 1], [], []>} : vector<8x64xbf16>, vector<64x320xbf16>, vector<8x320xf32> -> vector<8x320xf32>
    %147 = arith.addf %141, %146 : vector<8x320xf32>
    %148 = vector.extract_strided_slice %104 {offsets = [56, 0], sizes = [8, 64], strides = [1, 1]} : vector<128x64xf32> to vector<8x64xf32>
    %149 = arith.truncf %148 : vector<8x64xf32> to vector<8x64xbf16>
    %c7 = arith.constant 7 : index
    %c0_95 = arith.constant 0 : index
    %c0_96 = arith.constant 0 : index
    %150 = vector.load %arg12[%c7, %c0_95, %c0_96] : memref<10x64x320xbf16, #tpu.memory_space<vmem>>, vector<1x64x320xbf16>
    %151 = vector.shape_cast %150 : vector<1x64x320xbf16> to vector<64x320xbf16>
    %cst_97 = arith.constant dense<0.000000e+00> : vector<8x320xf32>
    %152 = tpu.matmul %149, %151, %cst_97 {dimension_numbers = #tpu.dot_dimension_numbers<[1], [0], [0], [1], [0, 0, 1, 1], [], []>} : vector<8x64xbf16>, vector<64x320xbf16>, vector<8x320xf32> -> vector<8x320xf32>
    %153 = arith.addf %147, %152 : vector<8x320xf32>
    %154 = vector.extract_strided_slice %104 {offsets = [64, 0], sizes = [8, 64], strides = [1, 1]} : vector<128x64xf32> to vector<8x64xf32>
    %155 = arith.truncf %154 : vector<8x64xf32> to vector<8x64xbf16>
    %c8 = arith.constant 8 : index
    %c0_98 = arith.constant 0 : index
    %c0_99 = arith.constant 0 : index
    %156 = vector.load %arg12[%c8, %c0_98, %c0_99] : memref<10x64x320xbf16, #tpu.memory_space<vmem>>, vector<1x64x320xbf16>
    %157 = vector.shape_cast %156 : vector<1x64x320xbf16> to vector<64x320xbf16>
    %cst_100 = arith.constant dense<0.000000e+00> : vector<8x320xf32>
    %158 = tpu.matmul %155, %157, %cst_100 {dimension_numbers = #tpu.dot_dimension_numbers<[1], [0], [0], [1], [0, 0, 1, 1], [], []>} : vector<8x64xbf16>, vector<64x320xbf16>, vector<8x320xf32> -> vector<8x320xf32>
    %159 = arith.addf %153, %158 : vector<8x320xf32>
    %160 = vector.extract_strided_slice %104 {offsets = [72, 0], sizes = [8, 64], strides = [1, 1]} : vector<128x64xf32> to vector<8x64xf32>
    %161 = arith.truncf %160 : vector<8x64xf32> to vector<8x64xbf16>
    %c9 = arith.constant 9 : index
    %c0_101 = arith.constant 0 : index
    %c0_102 = arith.constant 0 : index
    %162 = vector.load %arg12[%c9, %c0_101, %c0_102] : memref<10x64x320xbf16, #tpu.memory_space<vmem>>, vector<1x64x320xbf16>
    %163 = vector.shape_cast %162 : vector<1x64x320xbf16> to vector<64x320xbf16>
    %cst_103 = arith.constant dense<0.000000e+00> : vector<8x320xf32>
    %164 = tpu.matmul %161, %163, %cst_103 {dimension_numbers = #tpu.dot_dimension_numbers<[1], [0], [0], [1], [0, 0, 1, 1], [], []>} : vector<8x64xbf16>, vector<64x320xbf16>, vector<8x320xf32> -> vector<8x320xf32>
    %165 = arith.addf %159, %164 : vector<8x320xf32>
    %c0_104 = arith.constant 0 : index
    %c0_105 = arith.constant 0 : index
    %166 = vector.load %arg13[%c0_104, %c0_105] : memref<1x320xf32, #tpu.memory_space<vmem>>, vector<1x320xf32>
    %167 = vector.broadcast %166 : vector<1x320xf32> to vector<8x320xf32>
    %168 = arith.addf %165, %167 : vector<8x320xf32>
    %169 = arith.truncf %168 : vector<8x320xf32> to vector<8x320xbf16>
    %c0_106 = arith.constant 0 : index
    %c0_107 = arith.constant 0 : index
    %170 = vector.load %arg14[%c0_106, %c0_107] : memref<320x128xbf16, #tpu.memory_space<vmem>>, vector<320x128xbf16>
    %cst_108 = arith.constant dense<0.000000e+00> : vector<8x128xf32>
    %171 = tpu.matmul %169, %170, %cst_108 {dimension_numbers = #tpu.dot_dimension_numbers<[1], [0], [0], [1], [0, 0, 1, 1], [], []>} : vector<8x320xbf16>, vector<320x128xbf16>, vector<8x128xf32> -> vector<8x128xf32>
    %c0_109 = arith.constant 0 : index
    %c0_110 = arith.constant 0 : index
    %172 = vector.load %arg15[%c0_109, %c0_110] : memref<1x128xf32, #tpu.memory_space<vmem>>, vector<1x128xf32>
    %173 = vector.broadcast %172 : vector<1x128xf32> to vector<8x128xf32>
    %174 = arith.addf %171, %173 : vector<8x128xf32>
    %175 = math.tanh %174 : vector<8x128xf32>
    %c0_111 = arith.constant 0 : index
    %c0_112 = arith.constant 0 : index
    %176 = vector.load %arg16[%c0_111, %c0_112] : memref<8x128xf32, #tpu.memory_space<vmem>>, vector<8x128xf32>
    tpu.vector_store %arg16[%c0_111, %c0_112], %175 {strides = array<i32>} : memref<8x128xf32, #tpu.memory_space<vmem>>, vector<8x128xf32>,
    return
  }
  func.func @transform_0(%arg0: i32) -> (i32, i32) {
    %c0_i32 = arith.constant 0 : i32
    %c0_i32_0 = arith.constant 0 : i32
    return %arg0, %c0_i32 : i32, i32
  }
  func.func @transform_1(%arg0: i32) -> (i32, i32, i32) {
    %c0_i32 = arith.constant 0 : i32
    %c0_i32_0 = arith.constant 0 : i32
    %c0_i32_1 = arith.constant 0 : i32
    %c0_i32_2 = arith.constant 0 : i32
    return %c0_i32, %c0_i32_0, %c0_i32_1 : i32, i32, i32
  }
  func.func @transform_2(%arg0: i32) -> (i32, i32) {
    %c0_i32 = arith.constant 0 : i32
    %c0_i32_0 = arith.constant 0 : i32
    %c0_i32_1 = arith.constant 0 : i32
    return %c0_i32, %c0_i32_0 : i32, i32
  }
  func.func @transform_3(%arg0: i32) -> (i32, i32) {
    %c0_i32 = arith.constant 0 : i32
    %c0_i32_0 = arith.constant 0 : i32
    %c0_i32_1 = arith.constant 0 : i32
    return %c0_i32, %c0_i32_0 : i32, i32
  }
  func.func @transform_4(%arg0: i32) -> (i32, i32, i32) {
    %c0_i32 = arith.constant 0 : i32
    %c0_i32_0 = arith.constant 0 : i32
    %c0_i32_1 = arith.constant 0 : i32
    %c0_i32_2 = arith.constant 0 : i32
    return %c0_i32, %c0_i32_0, %c0_i32_1 : i32, i32, i32
  }
  func.func @transform_5(%arg0: i32) -> (i32, i32) {
    %c0_i32 = arith.constant 0 : i32
    %c0_i32_0 = arith.constant 0 : i32
    %c0_i32_1 = arith.constant 0 : i32
    return %c0_i32, %c0_i32_0 : i32, i32
  }
  func.func @transform_6(%arg0: i32) -> (i32, i32) {
    %c0_i32 = arith.constant 0 : i32
    %c0_i32_0 = arith.constant 0 : i32
    %c0_i32_1 = arith.constant 0 : i32
    return %c0_i32, %c0_i32_0 : i32, i32
  }
  func.func @transform_7(%arg0: i32) -> (i32, i32, i32) {
    %c0_i32 = arith.constant 0 : i32
    %c0_i32_0 = arith.constant 0 : i32
    %c0_i32_1 = arith.constant 0 : i32
    %c0_i32_2 = arith.constant 0 : i32
    return %c0_i32, %c0_i32_0, %c0_i32_1 : i32, i32, i32
  }
  func.func @transform_8(%arg0: i32) -> (i32, i32) {
    %c0_i32 = arith.constant 0 : i32
    %c0_i32_0 = arith.constant 0 : i32
    %c0_i32_1 = arith.constant 0 : i32
    return %c0_i32, %c0_i32_0 : i32, i32
  }
  func.func @transform_9(%arg0: i32) -> (i32, i32) {
    %c0_i32 = arith.constant 0 : i32
    %c0_i32_0 = arith.constant 0 : i32
    %c0_i32_1 = arith.constant 0 : i32
    return %c0_i32, %c0_i32_0 : i32, i32
  }
  func.func @transform_10(%arg0: i32) -> (i32, i32, i32) {
    %c0_i32 = arith.constant 0 : i32
    %c0_i32_0 = arith.constant 0 : i32
    %c0_i32_1 = arith.constant 0 : i32
    %c0_i32_2 = arith.constant 0 : i32
    return %c0_i32, %c0_i32_0, %c0_i32_1 : i32, i32, i32
  }
  func.func @transform_11(%arg0: i32) -> (i32, i32, i32) {
    %c0_i32 = arith.constant 0 : i32
    %c0_i32_0 = arith.constant 0 : i32
    %c0_i32_1 = arith.constant 0 : i32
    %c0_i32_2 = arith.constant 0 : i32
    return %c0_i32, %c0_i32_0, %c0_i32_1 : i32, i32, i32
  }
  func.func @transform_12(%arg0: i32) -> (i32, i32) {
    %c0_i32 = arith.constant 0 : i32
    %c0_i32_0 = arith.constant 0 : i32
    %c0_i32_1 = arith.constant 0 : i32
    return %c0_i32, %c0_i32_0 : i32, i32
  }
  func.func @transform_13(%arg0: i32) -> (i32, i32) {
    %c0_i32 = arith.constant 0 : i32
    %c0_i32_0 = arith.constant 0 : i32
    %c0_i32_1 = arith.constant 0 : i32
    return %c0_i32, %c0_i32_0 : i32, i32
  }
  func.func @transform_14(%arg0: i32) -> (i32, i32) {
    %c0_i32 = arith.constant 0 : i32
    %c0_i32_0 = arith.constant 0 : i32
    %c0_i32_1 = arith.constant 0 : i32
    return %c0_i32, %c0_i32_0 : i32, i32
  }
  func.func @transform_15(%arg0: i32) -> (i32, i32) {
    %c0_i32 = arith.constant 0 : i32
    %c0_i32_0 = arith.constant 0 : i32
    return %arg0, %c0_i32 : i32, i32
  }
}

</mosaic_0001>

<bundles_post_ra>
// kernel: generator_forward.1
= control target key start
LH: loop header
LB: loop body
LE: loop exit
PB: predicated region body
PF: predicated region fallthrough
CT: control target
= control target key end

     0   :  { %vm149_vm0 = vcmask 1042432   ;;  %vm124_vm1 = vcmask 48128   ;;  %vm5372_vm2 = vcmask 523264   ;;  %s13314_s1 = inlined_call_operand.vmem [shape: bf16[3,6,256], index: 1, kind: input, shape index: {}]   ;;  %s13315_s0 = inlined_call_operand.vmem [shape: f32[128,6], index: 0, kind: input, shape index: {}]   ;;  %s13316_s4 = inlined_call_operand.vmem [shape: bf16[3,256,512], index: 4, kind: input, shape index: {}]   ;;  %s13317_s2 = inlined_call_operand.vmem [shape: f32[1,256], index: 2, kind: input, shape index: {}]   ;;  %s13318_s3 = inlined_call_operand.vmem [shape: f32[1,256], index: 3, kind: input, shape index: {}]   ;;  %s13319_s7 = inlined_call_operand.vmem [shape: bf16[3,512,128], index: 7, kind: input, shape index: {}]   ;;  %s13320_s5 = inlined_call_operand.vmem [shape: f32[1,512], index: 5, kind: input, shape index: {}]   ;;  %s13321_s6 = inlined_call_operand.vmem [shape: f32[1,512], index: 6, kind: input, shape index: {}]   ;;  %s13322_s10 = inlined_call_operand.vmem [shape: bf16[3,128,64], index: 10, kind: input, shape index: {}]   ;;  %s13323_s8 = inlined_call_operand.vmem [shape: f32[1,128], index: 8, kind: input, shape index: {}]   ;;  %s13324_s9 = inlined_call_operand.vmem [shape: f32[1,128], index: 9, kind: input, shape index: {}]   ;;  %s13325_s11 = inlined_call_operand.vmem [shape: bf16[10,64,320], index: 11, kind: input, shape index: {}]   ;;  %s13326_s13 = inlined_call_operand.vmem [shape: bf16[320,128], index: 13, kind: input, shape index: {}]   ;;  %s13327_s12 = inlined_call_operand.vmem [shape: f32[1,320], index: 12, kind: input, shape index: {}]   ;;  %s13328_s14 = inlined_call_operand.vmem [shape: f32[1,128], index: 14, kind: input, shape index: {}]   ;;  %s13329_s15 = inlined_call_operand.vmem [shape: f32[8,128], index: 15, kind: output, shape index: {}]  }
   0x1   :  { %v6763_v0 = vld [vmem:[%s13314_s1 + $0x8] sm:$0x77]  ;;  %v108_v1 = vld [vmem:[%s13314_s1] sm:$0x77]  ;;  %v6796_v8 = vld [vmem:[%s13314_s1 + $0x10] sm:$0x77] }
   0x2   :  { %v120_v2 = vunpack.c.l.b16 %v6763_v0  ;;  %v121_v3 = vunpack.c.h.b16 %v6763_v0  ;;  %v255_v4 = vunpack.c.l.b16 %v108_v1  ;;  %v256_v5 = vunpack.c.h.b16 %v108_v1  ;;  %v84_v6 = vld [vmem:[%s13315_s0] sm:$0xff]  ;;  %v85_v7 = vld [vmem:[%s13315_s0 + $0x8] sm:$0xff]  ;;  %v9663_v15 = vld [vmem:[%s13315_s0 + $0x78] sm:$0xff] }
   0x3   :  { %v390_v9 = vunpack.c.l.b16 %v6796_v8  ;;  %v391_v10 = vunpack.c.h.b16 %v6796_v8  ;;  %v109_v16 = vpack.c.bf16 %v85_v7, %v84_v6  ;;  %v9670_v23 = vpack.c.bf16 %v84_v6, %v9663_v15  ;;  %v86_v26 = vld [vmem:[%s13315_s0 + $0x10] sm:$0xff]  ;;  %v87_v27 = vld [vmem:[%s13315_s0 + $0x18] sm:$0xff]  ;;  %v88_v30 = vld [vmem:[%s13315_s0 + $0x20] sm:$0xff] }
   0x4   :  { %v122_v11 = vpack.c.b16 %v120_v2, %v120_v2  ;;  %v123_v12 = vpack.c.b16 %v121_v3, %v121_v3  ;;  %v257_v13 = vpack.c.b16 %v255_v4, %v255_v4  ;;  %v258_v14 = vpack.c.b16 %v256_v5, %v256_v5  ;;  %v89_v31 = vld [vmem:[%s13315_s0 + $0x28] sm:$0xff]  ;;  %v90_v34 = vld [vmem:[%s13315_s0 + $0x30] sm:$0xff]  ;;  %v91_v35 = vld [vmem:[%s13315_s0 + $0x38] sm:$0xff] }
   0x5   :  { %v392_v17 = vpack.c.b16 %v390_v9, %v390_v9  ;;  %v393_v18 = vpack.c.b16 %v391_v10, %v391_v10  ;;  %v110_v28 = vpack.c.bf16 %v87_v27, %v86_v26  ;;  %v9686_v29 = vpack.c.bf16 %v86_v26, %v85_v7  ;;  %v92_v38 = vld [vmem:[%s13315_s0 + $0x40] sm:$0xff]  ;;  %v93_v39 = vld [vmem:[%s13315_s0 + $0x48] sm:$0xff]  ;;  %v94_v42 = vld [vmem:[%s13315_s0 + $0x50] sm:$0xff] }
   0x6   :  { %v151_v19 = vsel %vm149_vm0, %v122_v11, 0  ;;  %v154_v20 = vsel %vm149_vm0, %v123_v12, 0  ;;  %v284_v21 = vsel %vm149_vm0, %v257_v13, 0  ;;  %v287_v22 = vsel %vm149_vm0, %v258_v14, 0  ;;  %v95_v43 = vld [vmem:[%s13315_s0 + $0x58] sm:$0xff]  ;;  %v96_v46 = vld [vmem:[%s13315_s0 + $0x60] sm:$0xff] }
   0x7   :  { %163 = vmatpush.bf16.msra.mxu0 %v151_v19  ;;  %212 = vmatpush.bf16.msra.mxu1 %v154_v20  ;;  %v395_v24 = vsel %vm149_vm0, %v392_v17, 0  ;;  %v398_v25 = vsel %vm149_vm0, %v393_v18, 0  ;;  %v111_v32 = vpack.c.bf16 %v89_v31, %v88_v30  ;;  %v9700_v33 = vpack.c.bf16 %v88_v30, %v87_v27  ;;  %v97_v47 = vld [vmem:[%s13315_s0 + $0x68] sm:$0xff]  ;;  %v98_v50 = vld [vmem:[%s13315_s0 + $0x70] sm:$0xff]  ;;  %v6991_v53 = vld [vmem:[%s13316_s4 + $0x2e0] sm:$0xf] }
   0x8   :  { %296 = vmatpush.bf16.msra.mxu2 %v284_v21  ;;  %345 = vmatpush.bf16.msra.mxu3 %v287_v22  ;;  %v112_v36 = vpack.c.bf16 %v91_v35, %v90_v34  ;;  %v9714_v37 = vpack.c.bf16 %v90_v34, %v89_v31  ;;  %v113_v40 = vpack.c.bf16 %v93_v39, %v92_v38  ;;  %v9178_v54 = vld [vmem:[%s13316_s4 + $0x2ec] sm:$0xf0]  ;;  %v7119_v55 = vld [vmem:[%s13316_s4 + $0x3e0] sm:$0xf]  ;;  %v9176_v59 = vld [vmem:[%s13316_s4 + $0x2e4] sm:$0xf] }
   0x9   :  { %v9728_v41 = vpack.c.bf16 %v92_v38, %v91_v35  ;;  %v114_v44 = vpack.c.bf16 %v95_v43, %v94_v42  ;;  %v9742_v45 = vpack.c.bf16 %v94_v42, %v93_v39  ;;  %v115_v48 = vpack.c.bf16 %v97_v47, %v96_v46  ;;  %v9210_v57 = vld [vmem:[%s13316_s4 + $0x3ec] sm:$0xf0]  ;;  %v6993_v60 = vld [vmem:[%s13316_s4 + $0x2f0] sm:$0xf0]  ;;  %v9208_v61 = vld [vmem:[%s13316_s4 + $0x3e4] sm:$0xf] }
   0xa   :  { %6764 = vmatmul.msk.bf16.vlgmr.msra.gmra.mxu0 %vm124_vm1, %v109_v16  ;;  %6772 = vmatmul.msk.bf16.vlgmr.msra.gmra.mxu1 %vm124_vm1, %v109_v16  ;;  %v9756_v49 = vpack.c.bf16 %v96_v46, %v95_v43  ;;  %v116_v51 = vpack.c.bf16 %v9663_v15, %v98_v50  ;;  %v9768_v52 = vpack.c.bf16 %v98_v50, %v97_v47  ;;  %v7121_v63 = vld [vmem:[%s13316_s4 + $0x3f0] sm:$0xf0]  ;;  %v6975_v3 = vld [vmem:[%s13316_s4 + $0x2c0] sm:$0xf]  ;;  %v9174_v4 = vld [vmem:[%s13316_s4 + $0x2cc] sm:$0xf0] }
   0xb   :  { %407 = vmatpush.bf16.msrb.mxu0 %v395_v24  ;;  %456 = vmatpush.bf16.msrb.mxu1 %v398_v25  ;;  %v6992_v56 = vor.u32 %v9178_v54, %v6991_v53  ;;  %v7120_v58 = vor.u32 %v9210_v57, %v7119_v55  ;;  %v6996_v62 = vor.u32 %v9176_v59, %v6993_v60  ;;  %v7103_v5 = vld [vmem:[%s13316_s4 + $0x3c0] sm:$0xf]  ;;  %v9206_v7 = vld [vmem:[%s13316_s4 + $0x3cc] sm:$0xf0]  ;;  %v9172_v15 = vld [vmem:[%s13316_s4 + $0x2c4] sm:$0xf] }
   0xc   :  { %6780 = vmatmul.msk.bf16.vlgmr.msra.gmra.mxu2 %vm124_vm1, %v9670_v23  ;;  %6788 = vmatmul.msk.bf16.vlgmr.msra.gmra.mxu3 %vm124_vm1, %v9670_v23  ;;  %v7124_v0 = vor.u32 %v9208_v61, %v7121_v63  ;;  %v6976_v6 = vor.u32 %v9174_v4, %v6975_v3  ;;  %v7104_v8 = vor.u32 %v9206_v7, %v7103_v5  ;;  %v6977_v16 = vld [vmem:[%s13316_s4 + $0x2d0] sm:$0xf0]  ;;  %v9204_v17 = vld [vmem:[%s13316_s4 + $0x3c4] sm:$0xf]  ;;  %v6959_v26 = vld [vmem:[%s13316_s4 + $0x2a0] sm:$0xf] }
   0xd   :  { %1183 = vmatpush.bf16.msrb.mxu2 %v6992_v56  ;;  %1232 = vmatpush.bf16.msrb.mxu3 %v7120_v58  ;;  %v6980_v18 = vor.u32 %v9172_v15, %v6977_v16  ;;  %v7105_v19 = vld [vmem:[%s13316_s4 + $0x3d0] sm:$0xf0]  ;;  %v9170_v27 = vld [vmem:[%s13316_s4 + $0x2ac] sm:$0xf0]  ;;  %v9168_v39 = vld [vmem:[%s13316_s4 + $0x2a4] sm:$0xf] }
   0xe   :  { %v7108_v20 = vor.u32 %v9204_v17, %v7105_v19  ;;  %v9202_v30 = vld [vmem:[%s13316_s4 + $0x3ac] sm:$0xf0]  ;;  %v9200_v42 = vld [vmem:[%s13316_s4 + $0x3a4] sm:$0xf]  ;;  %v6943_v53 = vld [vmem:[%s13316_s4 + $0x280] sm:$0xf] }
   0xf   :  { %1281 = vmatpush.bf16.msra.mxu0 %v6996_v62  ;;  %1330 = vmatpush.bf16.msra.mxu1 %v7124_v0  ;;  %v9166_v54 = vld [vmem:[%s13316_s4 + $0x28c] sm:$0xf0]  ;;  %v7071_v55 = vld [vmem:[%s13316_s4 + $0x380] sm:$0xf]  ;;  %v9164_v0 = vld [vmem:[%s13316_s4 + $0x284] sm:$0xf] }
  0x10   :  { %v6944_v56 = vor.u32 %v9166_v54, %v6943_v53  ;;  %v9198_v57 = vld [vmem:[%s13316_s4 + $0x38c] sm:$0xf0]  ;;  %v7073_v4 = vld [vmem:[%s13316_s4 + $0x390] sm:$0xf0]  ;;  %v7055_v16 = vld [vmem:[%s13316_s4 + $0x360] sm:$0xf] }
  0x11   :  { %1184 = vmatpush.bf16.msrb.mxu2 %v6976_v6  ;;  %1233 = vmatpush.bf16.msrb.mxu3 %v7104_v8  ;;  %v7072_v58 = vor.u32 %v9198_v57, %v7071_v55  ;;  %v9162_v15 = vld [vmem:[%s13316_s4 + $0x26c] sm:$0xf0] }
  0x12   :  { %v9190_v53 = vld [vmem:[%s13316_s4 + $0x34c] sm:$0xf0] }
  0x13   :  { %1282 = vmatpush.bf16.msra.mxu0 %v6980_v18  ;;  %1331 = vmatpush.bf16.msra.mxu1 %v7108_v20  ;;  %v9194_v18 = vld [vmem:[%s13316_s4 + $0x36c] sm:$0xf0] }
  0x14   :  { %v7056_v19 = vor.u32 %v9194_v18, %v7055_v16  ;;  %v9154_v16 = vld [vmem:[%s13316_s4 + $0x22c] sm:$0xf0] }
  0x1a   :  { %6765 = vmatmul.msk.bf16.gmra.mxu0 %vm124_vm1, %v110_v28  ;;  %6773 = vmatmul.msk.bf16.gmra.mxu1 %vm124_vm1, %v110_v28  ;;  %v7087_v28 = vld [vmem:[%s13316_s4 + $0x3a0] sm:$0xf] }
  0x1b   :  { %v7088_v31 = vor.u32 %v9202_v30, %v7087_v28  ;;  %v9192_v30 = vld [vmem:[%s13316_s4 + $0x364] sm:$0xf] }
  0x1c   :  { %6781 = vmatmul.msk.bf16.gmra.mxu2 %vm124_vm1, %v9686_v29  ;;  %6789 = vmatmul.msk.bf16.gmra.mxu3 %vm124_vm1, %v9686_v29 }
  0x1d   :  { %1234 = vmatpush.bf16.msrb.mxu3 %v7088_v31 }
  0x21   :  { %1235 = vmatpush.bf16.msrb.mxu3 %v7072_v58 }
  0x25   :  { %1236 = vmatpush.bf16.msrb.mxu3 %v7056_v19  ;;  %v9186_v19 = vld [vmem:[%s13316_s4 + $0x32c] sm:$0xf0] }
  0x2a   :  { %6766 = vmatmul.msk.bf16.gmra.mxu0 %vm124_vm1, %v111_v32  ;;  %6774 = vmatmul.msk.bf16.gmra.mxu1 %vm124_vm1, %v111_v32 }
  0x2c   :  { %6782 = vmatmul.msk.bf16.gmra.mxu2 %vm124_vm1, %v9700_v33  ;;  %6790 = vmatmul.msk.bf16.gmra.mxu3 %vm124_vm1, %v9700_v33 }
  0x3a   :  { %6767 = vmatmul.msk.bf16.gmra.mxu0 %vm124_vm1, %v112_v36  ;;  %6775 = vmatmul.msk.bf16.gmra.mxu1 %vm124_vm1, %v112_v36 }
  0x3c   :  { %6783 = vmatmul.msk.bf16.gmra.mxu2 %vm124_vm1, %v9714_v37  ;;  %6791 = vmatmul.msk.bf16.gmra.mxu3 %vm124_vm1, %v9714_v37 }
  0x4a   :  { %6768 = vmatmul.msk.bf16.gmra.mxu0 %vm124_vm1, %v113_v40  ;;  %6776 = vmatmul.msk.bf16.gmra.mxu1 %vm124_vm1, %v113_v40  ;;  %v6961_v40 = vld [vmem:[%s13316_s4 + $0x2b0] sm:$0xf0] }
  0x4b   :  { %v6964_v43 = vor.u32 %v9168_v39, %v6961_v40 }
  0x4c   :  { %6784 = vmatmul.msk.bf16.gmra.mxu2 %vm124_vm1, %v9728_v41  ;;  %6792 = vmatmul.msk.bf16.gmra.mxu3 %vm124_vm1, %v9728_v41 }
  0x4d   :  { %1283 = vmatpush.bf16.msra.mxu0 %v6964_v43 }
  0x5a   :  { %6769 = vmatmul.msk.bf16.gmra.mxu0 %vm124_vm1, %v114_v44  ;;  %6777 = vmatmul.msk.bf16.gmra.mxu1 %vm124_vm1, %v114_v44  ;;  %v7089_v44 = vld [vmem:[%s13316_s4 + $0x3b0] sm:$0xf0] }
  0x5b   :  { %v7092_v46 = vor.u32 %v9200_v42, %v7089_v44  ;;  %v6911_v44 = vld [vmem:[%s13316_s4 + $0x240] sm:$0xf] }
  0x5c   :  { %6785 = vmatmul.msk.bf16.gmra.mxu2 %vm124_vm1, %v9742_v45  ;;  %6793 = vmatmul.msk.bf16.gmra.mxu3 %vm124_vm1, %v9742_v45 }
  0x5d   :  { %1332 = vmatpush.bf16.msra.mxu1 %v7092_v46  ;;  %v9158_v46 = vld [vmem:[%s13316_s4 + $0x24c] sm:$0xf0] }
  0x6a   :  { %6770 = vmatmul.msk.bf16.gmra.mxu0 %vm124_vm1, %v115_v48  ;;  %6778 = vmatmul.msk.bf16.gmra.mxu1 %vm124_vm1, %v115_v48 }
  0x6c   :  { %6786 = vmatmul.msk.bf16.gmra.mxu2 %vm124_vm1, %v9756_v49  ;;  %6794 = vmatmul.msk.bf16.gmra.mxu3 %vm124_vm1, %v9756_v49 }
  0x7a   :  { %6771 = vmatmul.msk.bf16.gmra.mxu0 %vm124_vm1, %v116_v51  ;;  %6779 = vmatmul.msk.bf16.gmra.mxu1 %vm124_vm1, %v116_v51 }
  0x7c   :  { %6787 = vmatmul.msk.bf16.gmra.mxu2 %vm124_vm1, %v9768_v52  ;;  %6795 = vmatmul.msk.bf16.gmra.mxu3 %vm124_vm1, %v9768_v52 }
  0x87   :  { %v165_v1 = vpop.f32.mrf.mxu0  ;;  %v214_v2 = vpop.f32.mrf.mxu1 }
  0x8a   :  { %6797 = vmatmul.msk.bf16.vlgmr.msrb.gmra.mxu0 %vm124_vm1, %v9686_v29  ;;  %6805 = vmatmul.msk.bf16.vlgmr.msrb.gmra.mxu1 %vm124_vm1, %v9686_v29  ;;  %v6960_v29 = vor.u32 %v9170_v27, %v6959_v26 }
  0x8c   :  { %1185 = vmatpush.bf16.msrb.mxu2 %v6960_v29  ;;  %v9160_v29 = vld [vmem:[%s13316_s4 + $0x264] sm:$0xf] }
  0x8f   :  { %v298_v9 = vpop.f32.mrf.mxu2  ;;  %v347_v10 = vpop.f32.mrf.mxu3 }
  0x90   :  { %v9816_v11 = vadd.f32 %v298_v9, %v165_v1  ;;  %v9818_v12 = vadd.f32 %v347_v10, %v214_v2  ;;  %v9820_v13 = vpop.f32.mrf.mxu0  ;;  %v9822_v14 = vpop.f32.mrf.mxu1  ;;  %1186 = vmatpush.bf16.msrb.mxu2 %v6944_v56  ;;  %v6945_v1 = vld [vmem:[%s13316_s4 + $0x290] sm:$0xf0]  ;;  %v9196_v2 = vld [vmem:[%s13316_s4 + $0x384] sm:$0xf]  ;;  %v6927_v10 = vld [vmem:[%s13316_s4 + $0x260] sm:$0xf] }
  0x91   :  { %v6948_v3 = vor.u32 %v9164_v0, %v6945_v1  ;;  %v7076_v5 = vor.u32 %v9196_v2, %v7073_v4  ;;  %v6928_v17 = vor.u32 %v9162_v15, %v6927_v10  ;;  %v9156_v0 = vld [vmem:[%s13316_s4 + $0x244] sm:$0xf]  ;;  %v6895_v15 = vld [vmem:[%s13316_s4 + $0x220] sm:$0xf] }
  0x92   :  { %v9188_v1 = vld [vmem:[%s13316_s4 + $0x344] sm:$0xf]  ;;  %v6896_v18 = vor.u32 %v9154_v16, %v6895_v15  ;;  %v7009_v16 = vld [vmem:[%s13316_s4 + $0x310] sm:$0xf0] }
  0x93   :  { %1284 = vmatpush.bf16.msra.mxu0 %v6948_v3  ;;  %1333 = vmatpush.bf16.msra.mxu1 %v7076_v5  ;;  %v7041_v3 = vld [vmem:[%s13316_s4 + $0x350] sm:$0xf0] }
  0x94   :  { %1187 = vmatpush.bf16.msrb.mxu2 %v6928_v17  ;;  %v7044_v4 = vor.u32 %v9188_v1, %v7041_v3  ;;  %v7023_v17 = vld [vmem:[%s13316_s4 + $0x320] sm:$0xf] }
  0x95   :  { %v7007_v1 = vld [vmem:[%s13316_s4 + $0x300] sm:$0xf] }
  0x97   :  { %v9836_v21 = vpop.f32.mrf.mxu2  ;;  %v9838_v22 = vpop.f32.mrf.mxu3 }
  0x98   :  { %v170_v24 = vpop.f32.mrf.mxu0  ;;  %v219_v25 = vpop.f32.mrf.mxu1 }
  0x9a   :  { %6798 = vmatmul.msk.bf16.gmra.mxu0 %vm124_vm1, %v9700_v33  ;;  %6806 = vmatmul.msk.bf16.gmra.mxu1 %vm124_vm1, %v9700_v33 }
  0x9f   :  { %v303_v32 = vpop.f32.mrf.mxu2  ;;  %v352_v33 = vpop.f32.mrf.mxu3 }
  0xa0   :  { %v9856_v34 = vadd.f32 %v303_v32, %v170_v24  ;;  %v9858_v35 = vadd.f32 %v352_v33, %v219_v25  ;;  %v9860_v36 = vpop.f32.mrf.mxu0  ;;  %v9862_v38 = vpop.f32.mrf.mxu1  ;;  %v7057_v32 = vld [vmem:[%s13316_s4 + $0x370] sm:$0xf0] }
  0xa1   :  { %v7060_v33 = vor.u32 %v9192_v30, %v7057_v32  ;;  %v6897_v32 = vld [vmem:[%s13316_s4 + $0x230] sm:$0xf0] }
  0xa3   :  { %1334 = vmatpush.bf16.msra.mxu1 %v7060_v33  ;;  %v9184_v33 = vld [vmem:[%s13316_s4 + $0x324] sm:$0xf] }
  0xa7   :  { %v9876_v47 = vpop.f32.mrf.mxu2  ;;  %v9878_v48 = vpop.f32.mrf.mxu3  ;;  %1335 = vmatpush.bf16.msra.mxu1 %v7044_v4  ;;  %v9148_v4 = vld [vmem:[%s13316_s4 + $0x204] sm:$0xf] }
  0xa8   :  { %v175_v50 = vpop.f32.mrf.mxu0  ;;  %v224_v51 = vpop.f32.mrf.mxu1 }
  0xaa   :  { %6799 = vmatmul.msk.bf16.gmra.mxu0 %vm124_vm1, %v9714_v37  ;;  %6807 = vmatmul.msk.bf16.gmra.mxu1 %vm124_vm1, %v9714_v37 }
  0xaf   :  { %v308_v37 = vpop.f32.mrf.mxu2  ;;  %v357_v59 = vpop.f32.mrf.mxu3 }
  0xb0   :  { %v9896_v60 = vadd.f32 %v308_v37, %v175_v50  ;;  %v9898_v61 = vadd.f32 %v357_v59, %v224_v51  ;;  %v9900_v62 = vpop.f32.mrf.mxu0  ;;  %v9902_v63 = vpop.f32.mrf.mxu1  ;;  %v7039_v50 = vld [vmem:[%s13316_s4 + $0x340] sm:$0xf]  ;;  %v6912_v51 = vor.u32 %v9158_v46, %v6911_v44 }
  0xb1   :  { %v7040_v54 = vor.u32 %v9190_v53, %v7039_v50 }
  0xb2   :  { %1188 = vmatpush.bf16.msrb.mxu2 %v6912_v51 }
  0xb3   :  { %1237 = vmatpush.bf16.msrb.mxu3 %v7040_v54 }
  0xb6   :  { %1189 = vmatpush.bf16.msrb.mxu2 %v6896_v18 }
  0xb7   :  { %v9916_v6 = vpop.f32.mrf.mxu2  ;;  %v9918_v7 = vpop.f32.mrf.mxu3 }
  0xb8   :  { %v180_v8 = vpop.f32.mrf.mxu0  ;;  %v229_v9 = vpop.f32.mrf.mxu1 }
  0xba   :  { %6800 = vmatmul.msk.bf16.gmra.mxu0 %vm124_vm1, %v9728_v41  ;;  %6808 = vmatmul.msk.bf16.gmra.mxu1 %vm124_vm1, %v9728_v41  ;;  %v6929_v41 = vld [vmem:[%s13316_s4 + $0x270] sm:$0xf0] }
  0xbb   :  { %v6932_v31 = vor.u32 %v9160_v29, %v6929_v41 }
  0xbd   :  { %1285 = vmatpush.bf16.msra.mxu0 %v6932_v31  ;;  %v9152_v31 = vld [vmem:[%s13316_s4 + $0x224] sm:$0xf] }
  0xbf   :  { %v313_v20 = vpop.f32.mrf.mxu2  ;;  %v362_v24 = vpop.f32.mrf.mxu3 }
  0xc0   :  { %v9936_v25 = vadd.f32 %v313_v20, %v180_v8  ;;  %v9938_v26 = vadd.f32 %v362_v24, %v229_v9  ;;  %v9940_v27 = vpop.f32.mrf.mxu0  ;;  %v9942_v28 = vpop.f32.mrf.mxu1  ;;  %v7024_v20 = vor.u32 %v9186_v19, %v7023_v17 }
  0xc2   :  { %1238 = vmatpush.bf16.msrb.mxu3 %v7024_v20 }
  0xc7   :  { %v9956_v39 = vpop.f32.mrf.mxu2  ;;  %v9958_v40 = vpop.f32.mrf.mxu3 }
  0xc8   :  { %v185_v42 = vpop.f32.mrf.mxu0  ;;  %v234_v43 = vpop.f32.mrf.mxu1 }
  0xca   :  { %6801 = vmatmul.msk.bf16.gmra.mxu0 %vm124_vm1, %v9742_v45  ;;  %6809 = vmatmul.msk.bf16.gmra.mxu1 %vm124_vm1, %v9742_v45  ;;  %v6913_v45 = vld [vmem:[%s13316_s4 + $0x250] sm:$0xf0] }
  0xcb   :  { %v6916_v2 = vor.u32 %v9156_v0, %v6913_v45  ;;  %v6879_v0 = vld [vmem:[%s13316_s4 + $0x200] sm:$0xf]  ;;  %v9150_v45 = vld [vmem:[%s13316_s4 + $0x20c] sm:$0xf0] }
  0xcd   :  { %1286 = vmatpush.bf16.msra.mxu0 %v6916_v2  ;;  %v6880_v2 = vor.u32 %v9150_v45, %v6879_v0  ;;  %v7129_v45 = vld [vmem:[%s13316_s4 + $0x3f8] sm:$0xf0] }
  0xcf   :  { %v318_v55 = vpop.f32.mrf.mxu2  ;;  %v367_v56 = vpop.f32.mrf.mxu3  ;;  %1190 = vmatpush.bf16.msrb.mxu2 %v6880_v2 }
  0xd0   :  { %v9976_v57 = vadd.f32 %v318_v55, %v185_v42  ;;  %v9978_v58 = vadd.f32 %v367_v56, %v234_v43  ;;  %v9980_v37 = vpop.f32.mrf.mxu0  ;;  %v9982_v59 = vpop.f32.mrf.mxu1  ;;  %v6900_v42 = vor.u32 %v9152_v31, %v6897_v32  ;;  %v6999_v32 = vld [vmem:[%s13316_s4 + $0x2e8] sm:$0xf] }
  0xd2   :  { %1287 = vmatpush.bf16.msra.mxu0 %v6900_v42  ;;  %v7127_v42 = vld [vmem:[%s13316_s4 + $0x3e8] sm:$0xf] }
  0xd7   :  { %v9996_v5 = vpop.f32.mrf.mxu2  ;;  %v9998_v8 = vpop.f32.mrf.mxu3 }
  0xd8   :  { %v190_v9 = vpop.f32.mrf.mxu0  ;;  %v239_v10 = vpop.f32.mrf.mxu1 }
  0xd9   :  { %v6881_v9 = vld [vmem:[%s13316_s4 + $0x210] sm:$0xf0]  ;;  %v9180_v10 = vld [vmem:[%s13316_s4 + $0x304] sm:$0xf] }
  0xda   :  { %6802 = vmatmul.msk.bf16.gmra.mxu0 %vm124_vm1, %v9756_v49  ;;  %6810 = vmatmul.msk.bf16.gmra.mxu1 %vm124_vm1, %v9756_v49  ;;  %v7025_v49 = vld [vmem:[%s13316_s4 + $0x330] sm:$0xf0]  ;;  %v6884_v15 = vor.u32 %v9148_v4, %v6881_v9  ;;  %v568_v9 = vld [vmem:[%s13318_s3] sm:$0x3] }
  0xdb   :  { %v7028_v43 = vor.u32 %v9184_v33, %v7025_v49  ;;  %v9179_v33 = vld [vmem:[%s13316_s4 + $0x2f4] sm:$0xf0] }
  0xdc   :  { %1288 = vmatpush.bf16.msra.mxu0 %v6884_v15  ;;  %v7000_v49 = vor.u32 %v9179_v33, %v6999_v32  ;;  %v10097_v15 = vperm.slane %v568_v9, 0 }
  0xdd   :  { %1336 = vmatpush.bf16.msra.mxu1 %v7028_v43 }
  0xde   :  { %1379 = vmatpush.bf16.msra.mxu2 %v7000_v49 }
  0xdf   :  { %v323_v24 = vpop.f32.mrf.mxu2  ;;  %v372_v29 = vpop.f32.mrf.mxu3 }
  0xe0   :  { %v192_v41 = vpop.f32.mrf.mxu0  ;;  %v241_v30 = vpop.f32.mrf.mxu1  ;;  %v7012_v24 = vor.u32 %v9180_v10, %v7009_v16 }
  0xe2   :  { %1337 = vmatpush.bf16.msra.mxu1 %v7012_v24 }
  0xe7   :  { %v325_v44 = vpop.f32.mrf.mxu2  ;;  %v374_v46 = vpop.f32.mrf.mxu3 }
  0xe8   :  { %v195_v50 = vpop.f32.mrf.mxu0  ;;  %v244_v51 = vpop.f32.mrf.mxu1  ;;  %v530_v44 = vld [vmem:[%s13317_s2] sm:$0x3]  ;;  %v9177_v46 = vld [vmem:[%s13316_s4 + $0x2ec] sm:$0xf] }
  0xe9   :  { %v7001_v50 = vld [vmem:[%s13316_s4 + $0x2f8] sm:$0xf0]  ;;  %v9209_v51 = vld [vmem:[%s13316_s4 + $0x3ec] sm:$0xf]  ;;  %v10091_v4 = vperm.slane %v530_v44, 1 }
  0xea   :  { %6803 = vmatmul.msk.bf16.gmra.mxu0 %vm124_vm1, %v9768_v52  ;;  %6811 = vmatmul.msk.bf16.gmra.mxu1 %vm124_vm1, %v9768_v52  ;;  %v9182_v52 = vld [vmem:[%s13316_s4 + $0x30c] sm:$0xf0]  ;;  %v7004_v0 = vor.u32 %v9177_v46, %v7001_v50  ;;  %v9173_v50 = vld [vmem:[%s13316_s4 + $0x2cc] sm:$0xf] }
  0xeb   :  { %v7008_v3 = vor.u32 %v9182_v52, %v7007_v1  ;;  %v7132_v1 = vor.u32 %v9209_v51, %v7129_v45  ;;  %v10088_v52 = vperm.slane %v530_v44, 0  ;;  %v6985_v51 = vld [vmem:[%s13316_s4 + $0x2d8] sm:$0xf0] }
  0xec   :  { %1477 = vmatpush.bf16.msrb.mxu0 %v7004_v0  ;;  %v7113_v0 = vld [vmem:[%s13316_s4 + $0x3d8] sm:$0xf0] }
  0xed   :  { %1239 = vmatpush.bf16.msrb.mxu3 %v7008_v3  ;;  %1526 = vmatpush.bf16.msrb.mxu1 %v7132_v1 }
  0xef   :  { %v328_v53 = vpop.f32.mrf.mxu2  ;;  %v377_v54 = vpop.f32.mrf.mxu3 }
  0xf0   :  { %v197_v55 = vpop.f32.mrf.mxu0  ;;  %v246_v56 = vpop.f32.mrf.mxu1 }
  0xf7   :  { %v330_v17 = vpop.f32.mrf.mxu2  ;;  %v379_v18 = vpop.f32.mrf.mxu3 }
  0xf8   :  { %v200_v19 = vpop.f32.mrf.mxu0  ;;  %v249_v20 = vpop.f32.mrf.mxu1  ;;  %v10100_v17 = vperm.slane %v568_v9, 1 }
  0xfa   :  { %6804 = vmatmul.msk.bf16.gmra.mxu0 %vm124_vm1, %v9670_v23  ;;  %6812 = vmatmul.msk.bf16.gmra.mxu1 %vm124_vm1, %v9670_v23  ;;  %v9211_v23 = vld [vmem:[%s13316_s4 + $0x3f4] sm:$0xf0] }
  0xfb   :  { %v7128_v43 = vor.u32 %v9211_v23, %v7127_v42 }
  0xfd   :  { %1428 = vmatpush.bf16.msra.mxu3 %v7128_v43 }
  0xff   :  { %v333_v29 = vpop.f32.mrf.mxu2  ;;  %v382_v41 = vpop.f32.mrf.mxu3 }
 0x100   :  { %v202_v30 = vpop.f32.mrf.mxu0  ;;  %v251_v31 = vpop.f32.mrf.mxu1  ;;  %v6983_v29 = vld [vmem:[%s13316_s4 + $0x2c8] sm:$0xf]  ;;  %v9175_v41 = vld [vmem:[%s13316_s4 + $0x2d4] sm:$0xf0] }
 0x101   :  { %v7111_v30 = vld [vmem:[%s13316_s4 + $0x3c8] sm:$0xf] }
 0x107   :  { %v335_v53 = vpop.f32.mrf.mxu2  ;;  %v384_v54 = vpop.f32.mrf.mxu3 }
 0x108   :  { %v409_v55 = vpop.f32.mrf.mxu0  ;;  %v458_v56 = vpop.f32.mrf.mxu1 }
 0x109   :  { %v498_v2 = vadd.f32 %v409_v55, %v9816_v11  ;;  %v499_v3 = vadd.f32 %v458_v56, %v9818_v12  ;;  %v301_v11 = vadd.f32 %v9836_v21, %v9820_v13  ;;  %v350_v12 = vadd.f32 %v9838_v22, %v9822_v14  ;;  %v9207_v22 = vld [vmem:[%s13316_s4 + $0x3d4] sm:$0xf0]  ;;  %v9205_v56 = vld [vmem:[%s13316_s4 + $0x3cc] sm:$0xf] }
 0x10a   :  { %v6984_v21 = vor.u32 %v9175_v41, %v6983_v29  ;;  %v7112_v33 = vor.u32 %v9207_v22, %v7111_v30  ;;  %v6988_v55 = vor.u32 %v9173_v50, %v6985_v51  ;;  %v7116_v9 = vor.u32 %v9205_v56, %v7113_v0  ;;  %v6967_v22 = vld [vmem:[%s13316_s4 + $0x2a8] sm:$0xf]  ;;  %v9169_v50 = vld [vmem:[%s13316_s4 + $0x2ac] sm:$0xf]  ;;  %v6969_v51 = vld [vmem:[%s13316_s4 + $0x2b8] sm:$0xf0] }
 0x10b   :  { %v536_v10 = vmul.f32 %v10088_v52, %v498_v2  ;;  %v537_v16 = vmul.f32 %v10091_v4, %v499_v3  ;;  %v9201_v56 = vld [vmem:[%s13316_s4 + $0x3ac] sm:$0xf]  ;;  %v7097_v0 = vld [vmem:[%s13316_s4 + $0x3b8] sm:$0xf0] }
 0x10c   :  { %1380 = vmatpush.bf16.msra.mxu2 %v6984_v21  ;;  %1429 = vmatpush.bf16.msra.mxu3 %v7112_v33 }
 0x10d   :  { %v10116_v13 = vadd.f32 %v10097_v15, %v536_v10  ;;  %v10119_v14 = vadd.f32 %v10100_v17, %v537_v16  ;;  %1478 = vmatpush.bf16.msrb.mxu0 %v6988_v55  ;;  %1527 = vmatpush.bf16.msrb.mxu1 %v7116_v9  ;;  %v6972_v55 = vor.u32 %v9169_v50, %v6969_v51 }
 0x10f   :  { %v606_v23 = vmax.f32 %v10116_v13, 0.0  ;;  %v607_v43 = vmax.f32 %v10119_v14, 0.0  ;;  %v7223_v13 = vld [vmem:[%s13316_s4 + $0xa8] sm:$0xf]  ;;  %v9107_v14 = vld [vmem:[%s13316_s4 + $0xb4] sm:$0xf0] }
 0x110   :  { %v411_v18 = vpop.f32.mrf.mxu0  ;;  %v460_v19 = vpop.f32.mrf.mxu1 }
 0x111   :  { %v500_v20 = vadd.f32 %v411_v18, %v301_v11  ;;  %v501_v24 = vadd.f32 %v460_v19, %v350_v12  ;;  %v306_v11 = vadd.f32 %v9876_v47, %v9860_v36  ;;  %v355_v12 = vadd.f32 %v9878_v48, %v9862_v38  ;;  %v9171_v36 = vld [vmem:[%s13316_s4 + $0x2b4] sm:$0xf0]  ;;  %v7095_v38 = vld [vmem:[%s13316_s4 + $0x3a8] sm:$0xf]  ;;  %1479 = vmatpush.bf16.msrb.mxu0 %v6972_v55  ;;  %v9165_v55 = vld [vmem:[%s13316_s4 + $0x28c] sm:$0xf] }
 0x112   :  { %v6968_v47 = vor.u32 %v9171_v36, %v6967_v22  ;;  %v9203_v48 = vld [vmem:[%s13316_s4 + $0x3b4] sm:$0xf0] }
 0x113   :  { %v538_v31 = vmul.f32 %v10088_v52, %v500_v20  ;;  %v539_v32 = vmul.f32 %v10091_v4, %v501_v24  ;;  %v7096_v33 = vor.u32 %v9203_v48, %v7095_v38  ;;  %v6951_v38 = vld [vmem:[%s13316_s4 + $0x288] sm:$0xf] }
 0x114   :  { %1381 = vmatpush.bf16.msra.mxu2 %v6968_v47 }
 0x115   :  { %v576_v42 = vadd.f32 %v10097_v15, %v538_v31  ;;  %v577_v49 = vadd.f32 %v10100_v17, %v539_v32  ;;  %1430 = vmatpush.bf16.msra.mxu3 %v7096_v33 }
 0x117   :  { %v608_v44 = vmax.f32 %v576_v42, 0.0  ;;  %v609_v46 = vmax.f32 %v577_v49, 0.0 }
 0x118   :  { %v414_v53 = vpop.f32.mrf.mxu0  ;;  %v463_v54 = vpop.f32.mrf.mxu1 }
 0x119   :  { %v502_v45 = vadd.f32 %v414_v53, %v9856_v34  ;;  %v503_v1 = vadd.f32 %v463_v54, %v9858_v35  ;;  %v10146_v2 = vpack.c.bf16 %v608_v44, %v606_v23  ;;  %v10150_v3 = vpack.c.bf16 %v609_v46, %v607_v43 }
 0x11b   :  { %v540_v10 = vmul.f32 %v10088_v52, %v502_v45  ;;  %v541_v16 = vmul.f32 %v10091_v4, %v503_v1  ;;  %1191 = vmatmul.bf16.vlgmr.msrb.gmra.mxu2 %v10146_v2  ;;  %1240 = vmatmul.bf16.vlgmr.msrb.gmra.mxu3 %v10150_v3 }
 0x11c   :  { %1289 = vmatmul.bf16.vlgmr.msra.gmra.mxu0 %v10146_v2  ;;  %1338 = vmatmul.bf16.vlgmr.msra.gmra.mxu1 %v10150_v3 }
 0x11d   :  { %v578_v34 = vadd.f32 %v10097_v15, %v540_v10  ;;  %v579_v35 = vadd.f32 %v10100_v17, %v541_v16  ;;  %v7100_v16 = vor.u32 %v9201_v56, %v7097_v0  ;;  %v6953_v56 = vld [vmem:[%s13316_s4 + $0x298] sm:$0xf0]  ;;  %v9197_v0 = vld [vmem:[%s13316_s4 + $0x38c] sm:$0xf] }
 0x11f   :  { %v610_v18 = vmax.f32 %v578_v34, 0.0  ;;  %v611_v19 = vmax.f32 %v579_v35, 0.0  ;;  %1528 = vmatpush.bf16.msrb.mxu1 %v7100_v16 }
 0x120   :  { %v416_v20 = vpop.f32.mrf.mxu0  ;;  %v465_v24 = vpop.f32.mrf.mxu1 }
 0x121   :  { %v10164_v29 = vpack.c.bf16 %v610_v18, %v608_v44  ;;  %v10166_v41 = vpack.c.bf16 %v611_v19, %v609_v46  ;;  %v504_v30 = vadd.f32 %v416_v20, %v306_v11  ;;  %v505_v21 = vadd.f32 %v465_v24, %v355_v12 }
 0x122   :  { %v311_v11 = vadd.f32 %v9916_v6, %v9900_v62  ;;  %v360_v12 = vadd.f32 %v9918_v7, %v9902_v63  ;;  %v9167_v62 = vld [vmem:[%s13316_s4 + $0x294] sm:$0xf0]  ;;  %v7079_v63 = vld [vmem:[%s13316_s4 + $0x388] sm:$0xf] }
 0x123   :  { %v542_v31 = vmul.f32 %v10088_v52, %v504_v30  ;;  %v543_v32 = vmul.f32 %v10091_v4, %v505_v21  ;;  %v6952_v6 = vor.u32 %v9167_v62, %v6951_v38  ;;  %v9199_v7 = vld [vmem:[%s13316_s4 + $0x394] sm:$0xf0]  ;;  %v9193_v38 = vld [vmem:[%s13316_s4 + $0x36c] sm:$0xf]  ;;  %v7065_v62 = vld [vmem:[%s13316_s4 + $0x378] sm:$0xf0] }
 0x125   :  { %v580_v42 = vadd.f32 %v10097_v15, %v542_v31  ;;  %v581_v49 = vadd.f32 %v10100_v17, %v543_v32  ;;  %v7080_v31 = vor.u32 %v9199_v7, %v7079_v63  ;;  %1382 = vmatpush.bf16.msra.mxu2 %v6952_v6  ;;  %v365_v63 = vadd.f32 %v9958_v40, %v9942_v28 }
 0x127   :  { %v612_v44 = vmax.f32 %v580_v42, 0.0  ;;  %v613_v46 = vmax.f32 %v581_v49, 0.0  ;;  %1431 = vmatpush.bf16.msra.mxu3 %v7080_v31 }
 0x128   :  { %v419_v53 = vpop.f32.mrf.mxu0  ;;  %v468_v54 = vpop.f32.mrf.mxu1 }
 0x129   :  { %v506_v45 = vadd.f32 %v419_v53, %v9896_v60  ;;  %v507_v1 = vadd.f32 %v468_v54, %v9898_v61  ;;  %v10198_v9 = vpack.c.bf16 %v612_v44, %v610_v18  ;;  %v10200_v10 = vpack.c.bf16 %v613_v46, %v611_v19 }
 0x12b   :  { %v544_v34 = vmul.f32 %v10088_v52, %v506_v45  ;;  %v545_v35 = vmul.f32 %v10091_v4, %v507_v1  ;;  %1196 = vmatmul.bf16.gmra.mxu2 %v10198_v9  ;;  %1245 = vmatmul.bf16.gmra.mxu3 %v10200_v10  ;;  %v6956_v45 = vor.u32 %v9165_v55, %v6953_v56 }
 0x12c   :  { %1294 = vmatmul.bf16.gmra.mxu0 %v10198_v9  ;;  %1343 = vmatmul.bf16.gmra.mxu1 %v10200_v10 }
 0x12d   :  { %v582_v60 = vadd.f32 %v10097_v15, %v544_v34  ;;  %v583_v61 = vadd.f32 %v10100_v17, %v545_v35  ;;  %v6935_v34 = vld [vmem:[%s13316_s4 + $0x268] sm:$0xf]  ;;  %v9163_v35 = vld [vmem:[%s13316_s4 + $0x274] sm:$0xf0]  ;;  %1480 = vmatpush.bf16.msrb.mxu0 %v6956_v45 }
 0x12f   :  { %v614_v18 = vmax.f32 %v582_v60, 0.0  ;;  %v615_v19 = vmax.f32 %v583_v61, 0.0  ;;  %v7063_v60 = vld [vmem:[%s13316_s4 + $0x368] sm:$0xf] }
 0x130   :  { %v421_v20 = vpop.f32.mrf.mxu0  ;;  %v470_v24 = vpop.f32.mrf.mxu1 }
 0x131   :  { %v10214_v30 = vpack.c.bf16 %v614_v18, %v612_v44  ;;  %v10216_v21 = vpack.c.bf16 %v615_v19, %v613_v46  ;;  %v508_v22 = vadd.f32 %v421_v20, %v311_v11  ;;  %v509_v36 = vadd.f32 %v470_v24, %v360_v12  ;;  %v6937_v20 = vld [vmem:[%s13316_s4 + $0x278] sm:$0xf0] }
 0x132   :  { %v6936_v12 = vor.u32 %v9163_v35, %v6935_v34  ;;  %v316_v24 = vadd.f32 %v9956_v39, %v9940_v27 }
 0x133   :  { %v546_v47 = vmul.f32 %v10088_v52, %v508_v22  ;;  %v547_v48 = vmul.f32 %v10091_v4, %v509_v36 }
 0x134   :  { %1383 = vmatpush.bf16.msra.mxu2 %v6936_v12  ;;  %v321_v12 = vadd.f32 %v9996_v5, %v9980_v37 }
 0x135   :  { %v584_v32 = vadd.f32 %v10097_v15, %v546_v47  ;;  %v585_v33 = vadd.f32 %v10100_v17, %v547_v48  ;;  %v7068_v47 = vor.u32 %v9193_v38, %v7065_v62 }
 0x137   :  { %v616_v42 = vmax.f32 %v584_v32, 0.0  ;;  %v617_v49 = vmax.f32 %v585_v33, 0.0 }
 0x138   :  { %v424_v44 = vpop.f32.mrf.mxu0  ;;  %v473_v46 = vpop.f32.mrf.mxu1 }
 0x139   :  { %v510_v50 = vadd.f32 %v424_v44, %v9936_v25  ;;  %v511_v51 = vadd.f32 %v473_v46, %v9938_v26  ;;  %v10236_v53 = vpack.c.bf16 %v616_v42, %v614_v18  ;;  %v10238_v54 = vpack.c.bf16 %v617_v49, %v615_v19  ;;  %v7081_v25 = vld [vmem:[%s13316_s4 + $0x398] sm:$0xf0]  ;;  %v9195_v18 = vld [vmem:[%s13316_s4 + $0x374] sm:$0xf0]  ;;  %v9161_v19 = vld [vmem:[%s13316_s4 + $0x26c] sm:$0xf] }
 0x13a   :  { %v7084_v16 = vor.u32 %v9197_v0, %v7081_v25  ;;  %v7064_v22 = vor.u32 %v9195_v18, %v7063_v60  ;;  %v6940_v36 = vor.u32 %v9161_v19, %v6937_v20  ;;  %v9191_v60 = vld [vmem:[%s13316_s4 + $0x354] sm:$0xf0]  ;;  %v9189_v20 = vld [vmem:[%s13316_s4 + $0x34c] sm:$0xf] }
 0x13b   :  { %v548_v26 = vmul.f32 %v10088_v52, %v510_v50  ;;  %v549_v1 = vmul.f32 %v10091_v4, %v511_v51  ;;  %1201 = vmatmul.bf16.gmra.mxu2 %v10236_v53  ;;  %1250 = vmatmul.bf16.gmra.mxu3 %v10238_v54 }
 0x13c   :  { %1299 = vmatmul.bf16.gmra.mxu0 %v10236_v53  ;;  %1348 = vmatmul.bf16.gmra.mxu1 %v10238_v54 }
 0x13d   :  { %v586_v61 = vadd.f32 %v10097_v15, %v548_v26  ;;  %v587_v11 = vadd.f32 %v10100_v17, %v549_v1  ;;  %1529 = vmatpush.bf16.msrb.mxu1 %v7084_v16  ;;  %1432 = vmatpush.bf16.msra.mxu3 %v7064_v22  ;;  %v7047_v1 = vld [vmem:[%s13316_s4 + $0x348] sm:$0xf]  ;;  %v370_v22 = vadd.f32 %v9998_v8, %v9982_v59 }
 0x13e   :  { %1481 = vmatpush.bf16.msrb.mxu0 %v6940_v36  ;;  %v7048_v18 = vor.u32 %v9191_v60, %v7047_v1  ;;  %v9151_v60 = vld [vmem:[%s13316_s4 + $0x214] sm:$0xf0] }
 0x13f   :  { %v618_v6 = vmax.f32 %v586_v61, 0.0  ;;  %v619_v7 = vmax.f32 %v587_v11, 0.0  ;;  %v9157_v61 = vld [vmem:[%s13316_s4 + $0x24c] sm:$0xf]  ;;  %v6921_v11 = vld [vmem:[%s13316_s4 + $0x258] sm:$0xf0] }
 0x140   :  { %v426_v48 = vpop.f32.mrf.mxu0  ;;  %v475_v31 = vpop.f32.mrf.mxu1  ;;  %v6924_v19 = vor.u32 %v9157_v61, %v6921_v11  ;;  %v7015_v61 = vld [vmem:[%s13316_s4 + $0x308] sm:$0xf] }
 0x141   :  { %v10288_v27 = vpack.c.bf16 %v618_v6, %v616_v42  ;;  %v10290_v39 = vpack.c.bf16 %v619_v7, %v617_v49  ;;  %v512_v32 = vadd.f32 %v426_v48, %v316_v24  ;;  %v513_v33 = vadd.f32 %v475_v31, %v365_v63  ;;  %1530 = vmatpush.bf16.msrb.mxu1 %v7068_v47  ;;  %v7049_v24 = vld [vmem:[%s13316_s4 + $0x358] sm:$0xf0] }
 0x142   :  { %v7052_v62 = vor.u32 %v9189_v20, %v7049_v24  ;;  %1433 = vmatpush.bf16.msra.mxu3 %v7048_v18  ;;  %1482 = vmatpush.bf16.msrb.mxu0 %v6924_v19  ;;  %v9149_v18 = vld [vmem:[%s13316_s4 + $0x20c] sm:$0xf]  ;;  %v6889_v19 = vld [vmem:[%s13316_s4 + $0x218] sm:$0xf0] }
 0x143   :  { %v550_v44 = vmul.f32 %v10088_v52, %v512_v32  ;;  %v551_v46 = vmul.f32 %v10091_v4, %v513_v33  ;;  %v6892_v24 = vor.u32 %v9149_v18, %v6889_v19 }
 0x145   :  { %v588_v28 = vadd.f32 %v10097_v15, %v550_v44  ;;  %v589_v40 = vadd.f32 %v10100_v17, %v551_v46  ;;  %1531 = vmatpush.bf16.msrb.mxu1 %v7052_v62 }
 0x147   :  { %v620_v50 = vmax.f32 %v588_v28, 0.0  ;;  %v621_v51 = vmax.f32 %v589_v40, 0.0 }
 0x148   :  { %v429_v55 = vpop.f32.mrf.mxu0  ;;  %v478_v56 = vpop.f32.mrf.mxu1 }
 0x149   :  { %v514_v42 = vadd.f32 %v429_v55, %v9976_v57  ;;  %v515_v49 = vadd.f32 %v478_v56, %v9978_v58  ;;  %v10298_v0 = vpack.c.bf16 %v620_v50, %v618_v6  ;;  %v10300_v45 = vpack.c.bf16 %v621_v51, %v619_v7  ;;  %v6919_v57 = vld [vmem:[%s13316_s4 + $0x248] sm:$0xf]  ;;  %v9159_v58 = vld [vmem:[%s13316_s4 + $0x254] sm:$0xf0]  ;;  %v6905_v55 = vld [vmem:[%s13316_s4 + $0x238] sm:$0xf0] }
 0x14a   :  { %v6920_v35 = vor.u32 %v9159_v58, %v6919_v57 }
 0x14b   :  { %v552_v25 = vmul.f32 %v10088_v52, %v514_v42  ;;  %v553_v26 = vmul.f32 %v10091_v4, %v515_v49  ;;  %1206 = vmatmul.bf16.gmra.mxu2 %v10298_v0  ;;  %1255 = vmatmul.bf16.gmra.mxu3 %v10300_v45  ;;  %v9185_v49 = vld [vmem:[%s13316_s4 + $0x32c] sm:$0xf] }
 0x14c   :  { %1304 = vmatmul.bf16.gmra.mxu0 %v10298_v0  ;;  %1353 = vmatmul.bf16.gmra.mxu1 %v10300_v45 }
 0x14d   :  { %v590_v16 = vadd.f32 %v10097_v15, %v552_v25  ;;  %v591_v34 = vadd.f32 %v10100_v17, %v553_v26  ;;  %1384 = vmatpush.bf16.msra.mxu2 %v6920_v35  ;;  %v7033_v25 = vld [vmem:[%s13316_s4 + $0x338] sm:$0xf0]  ;;  %v6887_v35 = vld [vmem:[%s13316_s4 + $0x208] sm:$0xf] }
 0x14e   :  { %v7036_v26 = vor.u32 %v9185_v49, %v7033_v25  ;;  %v6888_v11 = vor.u32 %v9151_v60, %v6887_v35  ;;  %v7231_v49 = vld [vmem:[%s13316_s4 + $0xc0] sm:$0xf]  ;;  %v9110_v25 = vld [vmem:[%s13316_s4 + $0xcc] sm:$0xf0]  ;;  %v7233_v35 = vld [vmem:[%s13316_s4 + $0xd0] sm:$0xf0] }
 0x14f   :  { %v622_v36 = vmax.f32 %v590_v16, 0.0  ;;  %v623_v38 = vmax.f32 %v591_v34, 0.0  ;;  %v13332_v34 = vmov 0.0|0.0   ;;  %v9140_v60 = vld [vmem:[%s13316_s4 + $0x1c4] sm:$0xf] }
 0x150   :  { %v431_v63 = vpop.f32.mrf.mxu0  ;;  %v480_v6 = vpop.f32.mrf.mxu1  ;;  %1532 = vmatpush.bf16.msrb.mxu1 %v7036_v26  ;;  %v7359_v26 = vld [vmem:[%s13316_s4 + $0x1c0] sm:$0xf] }
 0x151   :  { %v10338_v37 = vpack.c.bf16 %v622_v36, %v620_v50  ;;  %v10340_v5 = vpack.c.bf16 %v623_v38, %v621_v51  ;;  %v516_v7 = vadd.f32 %v431_v63, %v321_v12  ;;  %v517_v47 = vadd.f32 %v480_v6, %v370_v22  ;;  %v9187_v50 = vld [vmem:[%s13316_s4 + $0x334] sm:$0xf0]  ;;  %v9153_v51 = vld [vmem:[%s13316_s4 + $0x22c] sm:$0xf] }
 0x152   :  { %v6908_v42 = vor.u32 %v9153_v51, %v6905_v55  ;;  %v9183_v12 = vld [vmem:[%s13316_s4 + $0x314] sm:$0xf0]  ;;  %v9181_v22 = vld [vmem:[%s13316_s4 + $0x30c] sm:$0xf]  ;;  %v9144_v51 = vld [vmem:[%s13316_s4 + $0x1e4] sm:$0xf] }
 0x153   :  { %v554_v48 = vmul.f32 %v10088_v52, %v516_v7  ;;  %v555_v31 = vmul.f32 %v10091_v4, %v517_v47  ;;  %v6903_v4 = vld [vmem:[%s13316_s4 + $0x228] sm:$0xf]  ;;  %v7016_v20 = vor.u32 %v9183_v12, %v7015_v61  ;;  %v7247_v47 = vld [vmem:[%s13316_s4 + $0xe0] sm:$0xf] }
 0x154   :  { %1483 = vmatpush.bf16.msrb.mxu0 %v6908_v42 }
 0x155   :  { %v10345_v59 = vadd.f32 %v10097_v15, %v554_v48  ;;  %v10348_v8 = vadd.f32 %v10100_v17, %v555_v31  ;;  %v9155_v15 = vld [vmem:[%s13316_s4 + $0x234] sm:$0xf0]  ;;  %v7031_v17 = vld [vmem:[%s13316_s4 + $0x328] sm:$0xf]  ;;  %v9114_v48 = vld [vmem:[%s13316_s4 + $0xec] sm:$0xf0] }
 0x156   :  { %v6904_v40 = vor.u32 %v9155_v15, %v6903_v4  ;;  %v7032_v56 = vor.u32 %v9187_v50, %v7031_v17  ;;  %v7375_v31 = vld [vmem:[%s13316_s4 + $0x1e0] sm:$0xf]  ;;  %v7249_v50 = vld [vmem:[%s13316_s4 + $0xf0] sm:$0xf0] }
 0x157   :  { %v624_v32 = vmax.f32 %v10345_v59, 0.0  ;;  %v13334_v33 = vmax.f32 %v10348_v8, 0.0  ;;  %v7143_v59 = vld [vmem:[%s13316_s4 + $0x8] sm:$0xf] }
 0x158   :  { %v434_v44 = vpop.f32.mrf.mxu0  ;;  %v483_v46 = vpop.f32.mrf.mxu1  ;;  %1385 = vmatpush.bf16.msra.mxu2 %v6904_v40  ;;  %1434 = vmatpush.bf16.msra.mxu3 %v7032_v56  ;;  %v9112_v40 = vld [vmem:[%s13316_s4 + $0xe4] sm:$0xf]  ;;  %v7377_v56 = vld [vmem:[%s13316_s4 + $0x1f0] sm:$0xf0] }
 0x159   :  { %v10354_v28 = vpack.c.bf16 %v624_v32, %v622_v36  ;;  %v10358_v52 = vpack.c.bf16 %v13334_v33, %v623_v38  ;;  %v7017_v36 = vld [vmem:[%s13316_s4 + $0x318] sm:$0xf0]  ;;  %1484 = vmatpush.bf16.msrb.mxu0 %v6892_v24  ;;  %v7248_v44 = vor.u32 %v9114_v48, %v7247_v47  ;;  %v9146_v46 = vld [vmem:[%s13316_s4 + $0x1ec] sm:$0xf0]  ;;  %v7252_v55 = vor.u32 %v9112_v40, %v7249_v50  ;;  %v7215_v24 = vld [vmem:[%s13316_s4 + $0xa0] sm:$0xf] }
 0x15a   :  { %v7020_v38 = vor.u32 %v9181_v22, %v7017_v36  ;;  %v7376_v4 = vor.u32 %v9146_v46, %v7375_v31  ;;  %v7380_v42 = vor.u32 %v9144_v51, %v7377_v56  ;;  %v9106_v22 = vld [vmem:[%s13316_s4 + $0xac] sm:$0xf0]  ;;  %v7343_v36 = vld [vmem:[%s13316_s4 + $0x1a0] sm:$0xf]  ;;  %v9104_v31 = vld [vmem:[%s13316_s4 + $0xa4] sm:$0xf] }
 0x15b   :  { %1211 = vmatmul.bf16.gmra.mxu2 %v10354_v28  ;;  %1260 = vmatmul.bf16.gmra.mxu3 %v10358_v52  ;;  %v9136_v46 = vld [vmem:[%s13316_s4 + $0x1a4] sm:$0xf]  ;;  %v10928_v33 = vpack.c.bf16 0.0, %v624_v32  ;;  %v7271_v32 = vld [vmem:[%s13316_s4 + $0x108] sm:$0xf] }
 0x15c   :  { %1309 = vmatmul.bf16.gmra.mxu0 %v10354_v28  ;;  %1358 = vmatmul.bf16.gmra.mxu1 %v10358_v52 }
 0x15d   :  { %1386 = vmatpush.bf16.msra.mxu2 %v6888_v11  ;;  %1435 = vmatpush.bf16.msra.mxu3 %v7016_v20  ;;  %v7361_v11 = vld [vmem:[%s13316_s4 + $0x1d0] sm:$0xf0] }
 0x15e   :  { %1533 = vmatpush.bf16.msrb.mxu1 %v7020_v38  ;;  %1993 = vmatpush.bf16.msra.mxu0 %v7252_v55  ;;  %v7364_v12 = vor.u32 %v9140_v60, %v7361_v11  ;;  %v7216_v38 = vor.u32 %v9106_v22, %v7215_v24  ;;  %v9100_v11 = vld [vmem:[%s13316_s4 + $0x84] sm:$0xf]  ;;  %v7329_v24 = vld [vmem:[%s13316_s4 + $0x190] sm:$0xf0] }
 0x160   :  { %v436_v57 = vpop.f32.mrf.mxu0  ;;  %v485_v58 = vpop.f32.mrf.mxu1 }
 0x161   :  { %1895 = vmatpush.bf16.msrb.mxu2 %v7248_v44  ;;  %1944 = vmatpush.bf16.msrb.mxu3 %v7376_v4  ;;  %v7232_v57 = vor.u32 %v9110_v25, %v7231_v49  ;;  %v9142_v58 = vld [vmem:[%s13316_s4 + $0x1cc] sm:$0xf0]  ;;  %v7217_v44 = vld [vmem:[%s13316_s4 + $0xb0] sm:$0xf0]  ;;  %v7199_v49 = vld [vmem:[%s13316_s4 + $0x80] sm:$0xf] }
 0x162   :  { %2042 = vmatpush.bf16.msra.mxu1 %v7380_v42  ;;  %v7220_v4 = vor.u32 %v9104_v31, %v7217_v44  ;;  %v9102_v25 = vld [vmem:[%s13316_s4 + $0x8c] sm:$0xf0]  ;;  %v7311_v31 = vld [vmem:[%s13316_s4 + $0x160] sm:$0xf] }
 0x165   :  { %1896 = vmatpush.bf16.msrb.mxu2 %v7232_v57  ;;  %v7200_v57 = vor.u32 %v9102_v25, %v7199_v49  ;;  %v9128_v49 = vld [vmem:[%s13316_s4 + $0x164] sm:$0xf] }
 0x166   :  { %2043 = vmatpush.bf16.msra.mxu1 %v7364_v12  ;;  %v7201_v12 = vld [vmem:[%s13316_s4 + $0x90] sm:$0xf0] }
 0x168   :  { %v439_v1 = vpop.f32.mrf.mxu0  ;;  %v488_v16 = vpop.f32.mrf.mxu1 }
 0x169   :  { %v7360_v1 = vor.u32 %v9142_v58, %v7359_v26  ;;  %v9108_v16 = vld [vmem:[%s13316_s4 + $0xc4] sm:$0xf]  ;;  %1897 = vmatpush.bf16.msrb.mxu2 %v7216_v38  ;;  %v7327_v26 = vld [vmem:[%s13316_s4 + $0x180] sm:$0xf]  ;;  %v9134_v58 = vld [vmem:[%s13316_s4 + $0x18c] sm:$0xf0] }
 0x16a   :  { %v7236_v61 = vor.u32 %v9108_v16, %v7233_v35 }
 0x16b   :  { %1216 = vmatmul.bf16.gmra.mxu2 %v13332_v34  ;;  %1265 = vmatmul.bf16.gmra.mxu3 %v13332_v34 }
 0x16c   :  { %1314 = vmatmul.bf16.gmra.mxu0 %v13332_v34  ;;  %1363 = vmatmul.bf16.gmra.mxu1 %v13332_v34 }
 0x16d   :  { %1945 = vmatpush.bf16.msrb.mxu3 %v7360_v1  ;;  %1994 = vmatpush.bf16.msra.mxu0 %v7236_v61 }
 0x16e   :  { %1898 = vmatpush.bf16.msrb.mxu2 %v7200_v57 }
 0x170   :  { %v441_v62 = vpop.f32.mrf.mxu0  ;;  %v490_v63 = vpop.f32.mrf.mxu1 }
 0x171   :  { %v9138_v62 = vld [vmem:[%s13316_s4 + $0x1ac] sm:$0xf0]  ;;  %1995 = vmatpush.bf16.msra.mxu0 %v7220_v4 }
 0x178   :  { %v444_v6 = vpop.f32.mrf.mxu0  ;;  %v493_v7 = vpop.f32.mrf.mxu1 }
 0x17b   :  { %1221 = vmatmul.bf16.gmra.mxu2 %v13332_v34  ;;  %1270 = vmatmul.bf16.gmra.mxu3 %v13332_v34 }
 0x17c   :  { %1319 = vmatmul.bf16.gmra.mxu0 %v13332_v34  ;;  %1368 = vmatmul.bf16.gmra.mxu1 %v13332_v34 }
 0x180   :  { %v446_v15 = vpop.f32.mrf.mxu0  ;;  %v495_v17 = vpop.f32.mrf.mxu1 }
 0x181   :  { %v7345_v15 = vld [vmem:[%s13316_s4 + $0x1b0] sm:$0xf0] }
 0x182   :  { %v7348_v17 = vor.u32 %v9136_v46, %v7345_v15  ;;  %v9130_v46 = vld [vmem:[%s13316_s4 + $0x16c] sm:$0xf0] }
 0x184   :  { %2044 = vmatpush.bf16.msra.mxu1 %v7348_v17 }
 0x18b   :  { %1226 = vmatmul.bf16.gmra.mxu2 %v13332_v34  ;;  %1275 = vmatmul.bf16.gmra.mxu3 %v13332_v34 }
 0x18c   :  { %1324 = vmatmul.bf16.gmra.mxu0 %v13332_v34  ;;  %1373 = vmatmul.bf16.gmra.mxu1 %v13332_v34 }
 0x199   :  { %v1290_v18 = vpop.f32.mrf.mxu0  ;;  %v1339_v19 = vpop.f32.mrf.mxu1 }
 0x19a   :  { %v10472_v20 = vadd.f32 %v1339_v19, %v1290_v18  ;;  %v9132_v18 = vld [vmem:[%s13316_s4 + $0x184] sm:$0xf]  ;;  %v7204_v19 = vor.u32 %v9100_v11, %v7201_v12  ;;  %v7167_v11 = vld [vmem:[%s13316_s4 + $0x40] sm:$0xf]  ;;  %v9094_v12 = vld [vmem:[%s13316_s4 + $0x4c] sm:$0xf0] }
 0x19b   :  { %1387 = vmatmul.bf16.vlgmr.msra.gmra.mxu2 %v10146_v2  ;;  %1436 = vmatmul.bf16.vlgmr.msra.gmra.mxu3 %v10150_v3  ;;  %v7332_v22 = vor.u32 %v9132_v18, %v7329_v24  ;;  %v7295_v18 = vld [vmem:[%s13316_s4 + $0x140] sm:$0xf]  ;;  %v9126_v24 = vld [vmem:[%s13316_s4 + $0x14c] sm:$0xf0] }
 0x19c   :  { %1485 = vmatmul.bf16.vlgmr.msrb.gmra.mxu0 %v10146_v2  ;;  %1534 = vmatmul.bf16.vlgmr.msrb.gmra.mxu1 %v10150_v3  ;;  %v7344_v3 = vor.u32 %v9138_v62, %v7343_v36 }
 0x19d   :  { %1996 = vmatpush.bf16.msra.mxu0 %v7204_v19  ;;  %2045 = vmatpush.bf16.msra.mxu1 %v7332_v22  ;;  %v7168_v19 = vor.u32 %v9094_v12, %v7167_v11  ;;  %v9088_v12 = vld [vmem:[%s13316_s4 + $0x24] sm:$0xf] }
 0x19e   :  { %v1192_v2 = vpop.f32.mrf.mxu2  ;;  %v1241_v63 = vpop.f32.mrf.mxu3  ;;  %1946 = vmatpush.bf16.msrb.mxu3 %v7344_v3 }
 0x19f   :  { %v10490_v6 = vadd.f32 %v1241_v63, %v1192_v2 }
 0x1a1   :  { %v1292_v7 = vpop.f32.mrf.mxu0  ;;  %v1341_v47 = vpop.f32.mrf.mxu1 }
 0x1a2   :  { %v10492_v48 = vadd.f32 %v1341_v47, %v1292_v7  ;;  %v7183_v7 = vld [vmem:[%s13316_s4 + $0x60] sm:$0xf]  ;;  %v9098_v47 = vld [vmem:[%s13316_s4 + $0x6c] sm:$0xf0] }
 0x1a3   :  { %v7184_v44 = vor.u32 %v9098_v47, %v7183_v7  ;;  %v7169_v7 = vld [vmem:[%s13316_s4 + $0x50] sm:$0xf0]  ;;  %v9124_v47 = vld [vmem:[%s13316_s4 + $0x144] sm:$0xf] }
 0x1a5   :  { %1899 = vmatpush.bf16.msrb.mxu2 %v7184_v44 }
 0x1a6   :  { %v1194_v40 = vpop.f32.mrf.mxu2  ;;  %v1243_v50 = vpop.f32.mrf.mxu3 }
 0x1a7   :  { %v10506_v51 = vadd.f32 %v1243_v50, %v1194_v40 }
 0x1a9   :  { %v1295_v55 = vpop.f32.mrf.mxu0  ;;  %v1344_v56 = vpop.f32.mrf.mxu1  ;;  %1900 = vmatpush.bf16.msrb.mxu2 %v7168_v19  ;;  %v9120_v19 = vld [vmem:[%s13316_s4 + $0x124] sm:$0xf] }
 0x1aa   :  { %v10508_v42 = vadd.f32 %v1344_v56, %v1295_v55  ;;  %v9096_v55 = vld [vmem:[%s13316_s4 + $0x64] sm:$0xf]  ;;  %v7185_v56 = vld [vmem:[%s13316_s4 + $0x70] sm:$0xf0] }
 0x1ab   :  { %1392 = vmatmul.bf16.gmra.mxu2 %v10198_v9  ;;  %1441 = vmatmul.bf16.gmra.mxu3 %v10200_v10  ;;  %v7188_v25 = vor.u32 %v9096_v55, %v7185_v56 }
 0x1ac   :  { %1490 = vmatmul.bf16.gmra.mxu0 %v10198_v9  ;;  %1539 = vmatmul.bf16.gmra.mxu1 %v10200_v10  ;;  %v7328_v10 = vor.u32 %v9134_v58, %v7327_v26  ;;  %v7313_v26 = vld [vmem:[%s13316_s4 + $0x170] sm:$0xf0] }
 0x1ad   :  { %v7316_v57 = vor.u32 %v9128_v49, %v7313_v26  ;;  %1997 = vmatpush.bf16.msra.mxu0 %v7188_v25  ;;  %v7151_v49 = vld [vmem:[%s13316_s4 + $0x20] sm:$0xf]  ;;  %v9090_v25 = vld [vmem:[%s13316_s4 + $0x2c] sm:$0xf0] }
 0x1ae   :  { %v1197_v9 = vpop.f32.mrf.mxu2  ;;  %v1246_v1 = vpop.f32.mrf.mxu3  ;;  %1947 = vmatpush.bf16.msrb.mxu3 %v7328_v10  ;;  %v7279_v26 = vld [vmem:[%s13316_s4 + $0x120] sm:$0xf] }
 0x1af   :  { %v10526_v16 = vadd.f32 %v1246_v1, %v1197_v9  ;;  %2046 = vmatpush.bf16.msra.mxu1 %v7316_v57  ;;  %v7152_v57 = vor.u32 %v9090_v25, %v7151_v49 }
 0x1b1   :  { %v1297_v35 = vpop.f32.mrf.mxu0  ;;  %v1346_v60 = vpop.f32.mrf.mxu1  ;;  %1901 = vmatpush.bf16.msrb.mxu2 %v7152_v57  ;;  %v9084_v57 = vld [vmem:[%s13316_s4 + $0x4] sm:$0xf] }
 0x1b2   :  { %v10528_v61 = vadd.f32 %v1346_v60, %v1297_v35 }
 0x1b6   :  { %v1199_v36 = vpop.f32.mrf.mxu2  ;;  %v1248_v38 = vpop.f32.mrf.mxu3 }
 0x1b7   :  { %v10542_v62 = vadd.f32 %v1248_v38, %v1199_v36 }
 0x1b9   :  { %v1300_v2 = vpop.f32.mrf.mxu0  ;;  %v1349_v63 = vpop.f32.mrf.mxu1 }
 0x1ba   :  { %v10544_v3 = vadd.f32 %v1349_v63, %v1300_v2  ;;  %v9092_v63 = vld [vmem:[%s13316_s4 + $0x44] sm:$0xf] }
 0x1bb   :  { %1397 = vmatmul.bf16.gmra.mxu2 %v10236_v53  ;;  %1446 = vmatmul.bf16.gmra.mxu3 %v10238_v54  ;;  %v7172_v44 = vor.u32 %v9092_v63, %v7169_v7 }
 0x1bc   :  { %1495 = vmatmul.bf16.gmra.mxu0 %v10236_v53  ;;  %1544 = vmatmul.bf16.gmra.mxu1 %v10238_v54  ;;  %v7312_v54 = vor.u32 %v9130_v46, %v7311_v31  ;;  %v7297_v46 = vld [vmem:[%s13316_s4 + $0x150] sm:$0xf0] }
 0x1bd   :  { %1998 = vmatpush.bf16.msra.mxu0 %v7172_v44  ;;  %v7135_v44 = vld [vmem:[%s13316_s4] sm:$0xf] }
 0x1be   :  { %v1202_v53 = vpop.f32.mrf.mxu2  ;;  %v1251_v4 = vpop.f32.mrf.mxu3  ;;  %1948 = vmatpush.bf16.msrb.mxu3 %v7312_v54 }
 0x1bf   :  { %v10562_v15 = vadd.f32 %v1251_v4, %v1202_v53  ;;  %v7300_v53 = vor.u32 %v9124_v47, %v7297_v46  ;;  %v9086_v46 = vld [vmem:[%s13316_s4 + $0xc] sm:$0xf0] }
 0x1c1   :  { %v1302_v17 = vpop.f32.mrf.mxu0  ;;  %v1351_v40 = vpop.f32.mrf.mxu1  ;;  %2047 = vmatpush.bf16.msra.mxu1 %v7300_v53  ;;  %v7263_v53 = vld [vmem:[%s13316_s4 + $0x100] sm:$0xf] }
 0x1c2   :  { %v10564_v50 = vadd.f32 %v1351_v40, %v1302_v17 }
 0x1c6   :  { %v1204_v58 = vpop.f32.mrf.mxu2  ;;  %v1253_v9 = vpop.f32.mrf.mxu3 }
 0x1c7   :  { %v10578_v1 = vadd.f32 %v1253_v9, %v1204_v58  ;;  %v9122_v58 = vld [vmem:[%s13316_s4 + $0x12c] sm:$0xf0] }
 0x1c9   :  { %v1305_v10 = vpop.f32.mrf.mxu0  ;;  %v1354_v35 = vpop.f32.mrf.mxu1 }
 0x1ca   :  { %v10580_v60 = vadd.f32 %v1354_v35, %v1305_v10 }
 0x1cb   :  { %1402 = vmatmul.bf16.gmra.mxu2 %v10298_v0  ;;  %1451 = vmatmul.bf16.gmra.mxu3 %v10300_v45 }
 0x1cc   :  { %1500 = vmatmul.bf16.gmra.mxu0 %v10298_v0  ;;  %1549 = vmatmul.bf16.gmra.mxu1 %v10300_v45  ;;  %v7296_v45 = vor.u32 %v9126_v24, %v7295_v18  ;;  %v7153_v18 = vld [vmem:[%s13316_s4 + $0x30] sm:$0xf0] }
 0x1ce   :  { %v1207_v0 = vpop.f32.mrf.mxu2  ;;  %v1256_v22 = vpop.f32.mrf.mxu3  ;;  %1949 = vmatpush.bf16.msrb.mxu3 %v7296_v45 }
 0x1cf   :  { %v10598_v36 = vadd.f32 %v1256_v22, %v1207_v0  ;;  %v7156_v0 = vor.u32 %v9088_v12, %v7153_v18  ;;  %v7281_v22 = vld [vmem:[%s13316_s4 + $0x130] sm:$0xf0] }
 0x1d0   :  { %v7284_v45 = vor.u32 %v9120_v19, %v7281_v22  ;;  %v9115_v22 = vld [vmem:[%s13316_s4 + $0xf4] sm:$0xf0] }
 0x1d1   :  { %v1307_v38 = vpop.f32.mrf.mxu0  ;;  %v1356_v2 = vpop.f32.mrf.mxu1  ;;  %1999 = vmatpush.bf16.msra.mxu0 %v7156_v0  ;;  %v7255_v0 = vld [vmem:[%s13316_s4 + $0xe8] sm:$0xf] }
 0x1d2   :  { %v10609_v31 = vadd.f32 %v1356_v2, %v1307_v38  ;;  %2048 = vmatpush.bf16.msra.mxu1 %v7284_v45  ;;  %v7383_v45 = vld [vmem:[%s13316_s4 + $0x1e8] sm:$0xf] }
 0x1d6   :  { %v1209_v4 = vpop.f32.mrf.mxu2  ;;  %v1258_v54 = vpop.f32.mrf.mxu3 }
 0x1d7   :  { %v10614_v17 = vadd.f32 %v1258_v54, %v1209_v4  ;;  %v7136_v4 = vor.u32 %v9086_v46, %v7135_v44  ;;  %v9118_v54 = vld [vmem:[%s13316_s4 + $0x10c] sm:$0xf0] }
 0x1d8   :  { %v7264_v49 = vor.u32 %v9118_v54, %v7263_v53  ;;  %v7257_v54 = vld [vmem:[%s13316_s4 + $0xf8] sm:$0xf0] }
 0x1d9   :  { %v1310_v40 = vpop.f32.mrf.mxu0  ;;  %v1359_v55 = vpop.f32.mrf.mxu1  ;;  %1902 = vmatpush.bf16.msrb.mxu2 %v7136_v4  ;;  %v9113_v4 = vld [vmem:[%s13316_s4 + $0xec] sm:$0xf] }
 0x1da   :  { %v10616_v56 = vadd.f32 %v1359_v55, %v1310_v40 }
 0x1db   :  { %1407 = vmatmul.bf16.gmra.mxu2 %v10354_v28  ;;  %1456 = vmatmul.bf16.gmra.mxu3 %v10358_v52 }
 0x1dc   :  { %1505 = vmatmul.bf16.gmra.mxu0 %v10354_v28  ;;  %1554 = vmatmul.bf16.gmra.mxu1 %v10358_v52  ;;  %v7280_v52 = vor.u32 %v9122_v58, %v7279_v26  ;;  %v7137_v58 = vld [vmem:[%s13316_s4 + $0x10] sm:$0xf0] }
 0x1de   :  { %v1212_v28 = vpop.f32.mrf.mxu2  ;;  %v1261_v9 = vpop.f32.mrf.mxu3  ;;  %1950 = vmatpush.bf16.msrb.mxu3 %v7280_v52  ;;  %v7265_v52 = vld [vmem:[%s13316_s4 + $0x110] sm:$0xf0] }
 0x1df   :  { %v10634_v10 = vadd.f32 %v1261_v9, %v1212_v28  ;;  %v9116_v28 = vld [vmem:[%s13316_s4 + $0x104] sm:$0xf]  ;;  %v7140_v9 = vor.u32 %v9084_v57, %v7137_v58 }
 0x1e1   :  { %v1312_v35 = vpop.f32.mrf.mxu0  ;;  %v1361_v11 = vpop.f32.mrf.mxu1  ;;  %2000 = vmatpush.bf16.msra.mxu0 %v7140_v9  ;;  %v7239_v9 = vld [vmem:[%s13316_s4 + $0xc8] sm:$0xf] }
 0x1e2   :  { %v10645_v24 = vadd.f32 %v1361_v11, %v1312_v35  ;;  %1951 = vmatpush.bf16.msrb.mxu3 %v7264_v49  ;;  %v7268_v35 = vor.u32 %v9116_v28, %v7265_v52  ;;  %v7385_v49 = vld [vmem:[%s13316_s4 + $0x1f8] sm:$0xf0]  ;;  %v9111_v52 = vld [vmem:[%s13316_s4 + $0xd4] sm:$0xf0] }
 0x1e4   :  { %2049 = vmatpush.bf16.msra.mxu1 %v7268_v35  ;;  %v7367_v35 = vld [vmem:[%s13316_s4 + $0x1c8] sm:$0xf] }
 0x1e6   :  { %v1214_v38 = vpop.f32.mrf.mxu2  ;;  %v1263_v2 = vpop.f32.mrf.mxu3 }
 0x1e7   :  { %v10650_v63 = vadd.f32 %v1263_v2, %v1214_v38  ;;  %v7256_v38 = vor.u32 %v9115_v22, %v7255_v0  ;;  %v9147_v2 = vld [vmem:[%s13316_s4 + $0x1f4] sm:$0xf0] }
 0x1e8   :  { %v7384_v44 = vor.u32 %v9147_v2, %v7383_v45  ;;  %v7241_v2 = vld [vmem:[%s13316_s4 + $0xd8] sm:$0xf0] }
 0x1e9   :  { %v1315_v7 = vpop.f32.mrf.mxu0  ;;  %v1364_v47 = vpop.f32.mrf.mxu1  ;;  %2091 = vmatpush.bf16.msra.mxu2 %v7256_v38  ;;  %v9109_v38 = vld [vmem:[%s13316_s4 + $0xcc] sm:$0xf] }
 0x1ea   :  { %2140 = vmatpush.bf16.msra.mxu3 %v7384_v44  ;;  %v7369_v44 = vld [vmem:[%s13316_s4 + $0x1d8] sm:$0xf0] }
 0x1eb   :  { %1412 = vmatmul.bf16.gmra.mxu2 %v13332_v34  ;;  %1461 = vmatmul.bf16.gmra.mxu3 %v13332_v34 }
 0x1ec   :  { %1510 = vmatmul.bf16.gmra.mxu0 %v13332_v34  ;;  %1559 = vmatmul.bf16.gmra.mxu1 %v13332_v34 }
 0x1ee   :  { %v1217_v40 = vpop.f32.mrf.mxu2  ;;  %v1266_v55 = vpop.f32.mrf.mxu3 }
 0x1ef   :  { %v9145_v40 = vld [vmem:[%s13316_s4 + $0x1ec] sm:$0xf]  ;;  %v7260_v55 = vor.u32 %v9113_v4, %v7257_v54  ;;  %v13330_v54 = vmov 0.0  }
 0x1f1   :  { %v1317_v25 = vpop.f32.mrf.mxu0  ;;  %v1366_v26 = vpop.f32.mrf.mxu1  ;;  %2189 = vmatpush.bf16.msrb.mxu0 %v7260_v55  ;;  %v10744_v55 = vpack.c.bf16 %v607_v43, %v13330_v54  ;;  %v7224_v43 = vor.u32 %v9107_v14, %v7223_v13  ;;  %v9135_v14 = vld [vmem:[%s13316_s4 + $0x194] sm:$0xf0] }
 0x1f2   :  { %v7388_v25 = vor.u32 %v9145_v40, %v7385_v49  ;;  %v10739_v40 = vpack.c.bf16 %v606_v23, %v13330_v54  ;;  %v7351_v23 = vld [vmem:[%s13316_s4 + $0x1a8] sm:$0xf] }
 0x1f3   :  { %13339 = vst [vmem:[#allocation2_spill] sm:$0xff] %v10744_v55 }
 0x1f4   :  { %2238 = vmatpush.bf16.msrb.mxu1 %v7388_v25 }
 0x1f6   :  { %v1219_v11 = vpop.f32.mrf.mxu2  ;;  %v1268_v12 = vpop.f32.mrf.mxu3 }
 0x1f7   :  { %v7240_v11 = vor.u32 %v9111_v52, %v7239_v9  ;;  %v9143_v12 = vld [vmem:[%s13316_s4 + $0x1d4] sm:$0xf0] }
 0x1f8   :  { %v7368_v0 = vor.u32 %v9143_v12, %v7367_v35 }
 0x1f9   :  { %v1320_v18 = vpop.f32.mrf.mxu0  ;;  %v1369_v19 = vpop.f32.mrf.mxu1  ;;  %2092 = vmatpush.bf16.msra.mxu2 %v7240_v11 }
 0x1fa   :  { %2141 = vmatpush.bf16.msra.mxu3 %v7368_v0  ;;  %v9137_v0 = vld [vmem:[%s13316_s4 + $0x1ac] sm:$0xf] }
 0x1fb   :  { %1417 = vmatmul.bf16.gmra.mxu2 %v13332_v34  ;;  %1466 = vmatmul.bf16.gmra.mxu3 %v13332_v34 }
 0x1fc   :  { %1515 = vmatmul.bf16.gmra.mxu0 %v13332_v34  ;;  %1564 = vmatmul.bf16.gmra.mxu1 %v13332_v34 }
 0x1fd   :  { %2093 = vmatpush.bf16.msra.mxu2 %v7224_v43 }
 0x1fe   :  { %v1222_v7 = vpop.f32.mrf.mxu2  ;;  %v1271_v47 = vpop.f32.mrf.mxu3 }
 0x1ff   :  { %v9141_v7 = vld [vmem:[%s13316_s4 + $0x1cc] sm:$0xf]  ;;  %v7244_v47 = vor.u32 %v9109_v38, %v7241_v2 }
 0x201   :  { %v1322_v46 = vpop.f32.mrf.mxu0  ;;  %v1371_v53 = vpop.f32.mrf.mxu1  ;;  %2190 = vmatpush.bf16.msrb.mxu0 %v7244_v47 }
 0x202   :  { %v7372_v46 = vor.u32 %v9141_v7, %v7369_v44 }
 0x204   :  { %2239 = vmatpush.bf16.msrb.mxu1 %v7372_v46 }
 0x206   :  { %v1224_v26 = vpop.f32.mrf.mxu2  ;;  %v1273_v57 = vpop.f32.mrf.mxu3 }
 0x207   :  { %v9139_v57 = vld [vmem:[%s13316_s4 + $0x1b4] sm:$0xf0] }
 0x208   :  { %v7352_v9 = vor.u32 %v9139_v57, %v7351_v23 }
 0x209   :  { %v1325_v58 = vpop.f32.mrf.mxu0  ;;  %v1374_v28 = vpop.f32.mrf.mxu1 }
 0x20a   :  { %2142 = vmatpush.bf16.msra.mxu3 %v7352_v9 }
 0x20b   :  { %1422 = vmatmul.bf16.gmra.mxu2 %v13332_v34  ;;  %1471 = vmatmul.bf16.gmra.mxu3 %v13332_v34 }
 0x20c   :  { %1520 = vmatmul.bf16.gmra.mxu0 %v13332_v34  ;;  %1569 = vmatmul.bf16.gmra.mxu1 %v13332_v34 }
 0x20e   :  { %v1227_v18 = vpop.f32.mrf.mxu2  ;;  %v1276_v19 = vpop.f32.mrf.mxu3 }
 0x20f   :  { %v9105_v18 = vld [vmem:[%s13316_s4 + $0xac] sm:$0xf]  ;;  %v7225_v19 = vld [vmem:[%s13316_s4 + $0xb8] sm:$0xf0] }
 0x211   :  { %v1327_v22 = vpop.f32.mrf.mxu0  ;;  %v1376_v45 = vpop.f32.mrf.mxu1 }
 0x212   :  { %v7228_v22 = vor.u32 %v9105_v18, %v7225_v19  ;;  %v7353_v45 = vld [vmem:[%s13316_s4 + $0x1b8] sm:$0xf0]  ;;  %v9133_v19 = vld [vmem:[%s13316_s4 + $0x18c] sm:$0xf] }
 0x213   :  { %v7356_v38 = vor.u32 %v9137_v0, %v7353_v45  ;;  %v7209_v18 = vld [vmem:[%s13316_s4 + $0x98] sm:$0xf0] }
 0x214   :  { %2191 = vmatpush.bf16.msrb.mxu0 %v7228_v22  ;;  %v7337_v22 = vld [vmem:[%s13316_s4 + $0x198] sm:$0xf0] }
 0x215   :  { %2240 = vmatpush.bf16.msrb.mxu1 %v7356_v38  ;;  %v7340_v45 = vor.u32 %v9133_v19, %v7337_v22  ;;  %v7193_v22 = vld [vmem:[%s13316_s4 + $0x78] sm:$0xf0] }
 0x216   :  { %v1229_v53 = vpop.f32.mrf.mxu2  ;;  %v1278_v4 = vpop.f32.mrf.mxu3 }
 0x217   :  { %v7207_v4 = vld [vmem:[%s13316_s4 + $0x88] sm:$0xf] }
 0x219   :  { %v1486_v49 = vpop.f32.mrf.mxu0  ;;  %v1535_v25 = vpop.f32.mrf.mxu1  ;;  %2241 = vmatpush.bf16.msrb.mxu1 %v7340_v45  ;;  %v9129_v45 = vld [vmem:[%s13316_s4 + $0x16c] sm:$0xf] }
 0x21a   :  { %v10746_v26 = vadd.f32 %v1535_v25, %v1486_v49  ;;  %v9103_v49 = vld [vmem:[%s13316_s4 + $0x94] sm:$0xf0]  ;;  %v7335_v25 = vld [vmem:[%s13316_s4 + $0x188] sm:$0xf] }
 0x21b   :  { %1903 = vmatmul.bf16.vlgmr.msrb.gmra.mxu2 %v10739_v40  ;;  %1952 = vmatmul.bf16.vlgmr.msrb.gmra.mxu3 %v10744_v55  ;;  %v7208_v13 = vor.u32 %v9103_v49, %v7207_v4  ;;  %v7336_v57 = vor.u32 %v9135_v14, %v7335_v25  ;;  %v7191_v49 = vld [vmem:[%s13316_s4 + $0x68] sm:$0xf]  ;;  %v9099_v25 = vld [vmem:[%s13316_s4 + $0x74] sm:$0xf0] }
 0x21c   :  { %2001 = vmatmul.bf16.vlgmr.msra.gmra.mxu0 %v10739_v40  ;;  %2050 = vmatmul.bf16.vlgmr.msra.gmra.mxu1 %v10744_v55  ;;  %v7192_v14 = vor.u32 %v9099_v25, %v7191_v49 }
 0x21d   :  { %2094 = vmatpush.bf16.msra.mxu2 %v7208_v13  ;;  %2143 = vmatpush.bf16.msra.mxu3 %v7336_v57  ;;  %v7319_v13 = vld [vmem:[%s13316_s4 + $0x168] sm:$0xf] }
 0x21e   :  { %v1388_v58 = vpop.f32.mrf.mxu2  ;;  %v1437_v28 = vpop.f32.mrf.mxu3 }
 0x21f   :  { %v10764_v52 = vadd.f32 %v1437_v28, %v1388_v58 }
 0x221   :  { %v1488_v35 = vpop.f32.mrf.mxu0  ;;  %v1537_v11 = vpop.f32.mrf.mxu1  ;;  %2095 = vmatpush.bf16.msra.mxu2 %v7192_v14 }
 0x222   :  { %v10766_v12 = vadd.f32 %v1537_v11, %v1488_v35  ;;  %v9101_v11 = vld [vmem:[%s13316_s4 + $0x8c] sm:$0xf] }
 0x223   :  { %v7212_v0 = vor.u32 %v9101_v11, %v7209_v18 }
 0x225   :  { %2192 = vmatpush.bf16.msrb.mxu0 %v7212_v0  ;;  %v9097_v0 = vld [vmem:[%s13316_s4 + $0x6c] sm:$0xf] }
 0x226   :  { %v1390_v2 = vpop.f32.mrf.mxu2  ;;  %v1439_v7 = vpop.f32.mrf.mxu3 }
 0x227   :  { %v10780_v47 = vadd.f32 %v1439_v7, %v1390_v2 }
 0x229   :  { %v1491_v44 = vpop.f32.mrf.mxu0  ;;  %v1540_v46 = vpop.f32.mrf.mxu1 }
 0x22a   :  { %v10782_v53 = vadd.f32 %v1540_v46, %v1491_v44 }
 0x22b   :  { %1908 = vmatmul.bf16.gmra.mxu2 %v10164_v29  ;;  %1957 = vmatmul.bf16.gmra.mxu3 %v10166_v41 }
 0x22c   :  { %2006 = vmatmul.bf16.gmra.mxu0 %v10164_v29  ;;  %2055 = vmatmul.bf16.gmra.mxu1 %v10166_v41 }
 0x22e   :  { %v1393_v23 = vpop.f32.mrf.mxu2  ;;  %v1442_v43 = vpop.f32.mrf.mxu3 }
 0x22f   :  { %v10800_v58 = vadd.f32 %v1442_v43, %v1393_v23  ;;  %v9131_v23 = vld [vmem:[%s13316_s4 + $0x174] sm:$0xf0] }
 0x231   :  { %v1493_v28 = vpop.f32.mrf.mxu0  ;;  %v1542_v9 = vpop.f32.mrf.mxu1 }
 0x232   :  { %v10802_v35 = vadd.f32 %v1542_v9, %v1493_v28  ;;  %v7320_v28 = vor.u32 %v9131_v23, %v7319_v13 }
 0x234   :  { %2144 = vmatpush.bf16.msra.mxu3 %v7320_v28  ;;  %v7303_v28 = vld [vmem:[%s13316_s4 + $0x148] sm:$0xf] }
 0x236   :  { %v1395_v38 = vpop.f32.mrf.mxu2  ;;  %v1444_v2 = vpop.f32.mrf.mxu3 }
 0x237   :  { %v10816_v7 = vadd.f32 %v1444_v2, %v1395_v38  ;;  %v7196_v38 = vor.u32 %v9097_v0, %v7193_v22  ;;  %v7321_v2 = vld [vmem:[%s13316_s4 + $0x178] sm:$0xf0] }
 0x239   :  { %v1496_v44 = vpop.f32.mrf.mxu0  ;;  %v1545_v46 = vpop.f32.mrf.mxu1  ;;  %2193 = vmatpush.bf16.msrb.mxu0 %v7196_v38 }
 0x23a   :  { %v10818_v4 = vadd.f32 %v1545_v46, %v1496_v44  ;;  %v7324_v44 = vor.u32 %v9129_v45, %v7321_v2 }
 0x23b   :  { %1913 = vmatmul.bf16.gmra.mxu2 %v10214_v30  ;;  %1962 = vmatmul.bf16.gmra.mxu3 %v10216_v21 }
 0x23c   :  { %2011 = vmatmul.bf16.gmra.mxu0 %v10214_v30  ;;  %2060 = vmatmul.bf16.gmra.mxu1 %v10216_v21 }
 0x23d   :  { %2242 = vmatpush.bf16.msrb.mxu1 %v7324_v44 }
 0x23e   :  { %v1398_v43 = vpop.f32.mrf.mxu2  ;;  %v1447_v57 = vpop.f32.mrf.mxu3 }
 0x23f   :  { %v10836_v9 = vadd.f32 %v1447_v57, %v1398_v43  ;;  %v7175_v43 = vld [vmem:[%s13316_s4 + $0x48] sm:$0xf]  ;;  %v9095_v57 = vld [vmem:[%s13316_s4 + $0x54] sm:$0xf0] }
 0x241   :  { %v1498_v11 = vpop.f32.mrf.mxu0  ;;  %v1547_v18 = vpop.f32.mrf.mxu1 }
 0x242   :  { %v10838_v19 = vadd.f32 %v1547_v18, %v1498_v11  ;;  %v7176_v11 = vor.u32 %v9095_v57, %v7175_v43  ;;  %v9127_v18 = vld [vmem:[%s13316_s4 + $0x154] sm:$0xf0]  ;;  %v7305_v57 = vld [vmem:[%s13316_s4 + $0x158] sm:$0xf0] }
 0x243   :  { %v7304_v45 = vor.u32 %v9127_v18, %v7303_v28 }
 0x244   :  { %2096 = vmatpush.bf16.msra.mxu2 %v7176_v11 }
 0x245   :  { %2145 = vmatpush.bf16.msra.mxu3 %v7304_v45 }
 0x246   :  { %v1400_v46 = vpop.f32.mrf.mxu2  ;;  %v1449_v49 = vpop.f32.mrf.mxu3 }
 0x247   :  { %v10852_v25 = vadd.f32 %v1449_v49, %v1400_v46  ;;  %v9093_v46 = vld [vmem:[%s13316_s4 + $0x4c] sm:$0xf]  ;;  %v7177_v49 = vld [vmem:[%s13316_s4 + $0x58] sm:$0xf0] }
 0x248   :  { %v7180_v43 = vor.u32 %v9093_v46, %v7177_v49  ;;  %v7287_v46 = vld [vmem:[%s13316_s4 + $0x128] sm:$0xf] }
 0x249   :  { %v1501_v13 = vpop.f32.mrf.mxu0  ;;  %v1550_v14 = vpop.f32.mrf.mxu1 }
 0x24a   :  { %v10854_v23 = vadd.f32 %v1550_v14, %v1501_v13  ;;  %v9125_v13 = vld [vmem:[%s13316_s4 + $0x14c] sm:$0xf]  ;;  %2194 = vmatpush.bf16.msrb.mxu0 %v7180_v43 }
 0x24b   :  { %1918 = vmatmul.bf16.gmra.mxu2 %v10288_v27  ;;  %1967 = vmatmul.bf16.gmra.mxu3 %v10290_v39  ;;  %v7308_v28 = vor.u32 %v9125_v13, %v7305_v57  ;;  %v9123_v13 = vld [vmem:[%s13316_s4 + $0x134] sm:$0xf0] }
 0x24c   :  { %2016 = vmatmul.bf16.gmra.mxu0 %v10288_v27  ;;  %2065 = vmatmul.bf16.gmra.mxu1 %v10290_v39 }
 0x24d   :  { %2243 = vmatpush.bf16.msrb.mxu1 %v7308_v28  ;;  %v7288_v28 = vor.u32 %v9123_v13, %v7287_v46 }
 0x24e   :  { %v1403_v0 = vpop.f32.mrf.mxu2  ;;  %v1452_v22 = vpop.f32.mrf.mxu3 }
 0x24f   :  { %v10872_v38 = vadd.f32 %v1452_v22, %v1403_v0  ;;  %2146 = vmatpush.bf16.msra.mxu3 %v7288_v28 }
 0x251   :  { %v1503_v2 = vpop.f32.mrf.mxu0  ;;  %v1552_v44 = vpop.f32.mrf.mxu1 }
 0x252   :  { %v10883_v14 = vadd.f32 %v1552_v44, %v1503_v2  ;;  %v7159_v2 = vld [vmem:[%s13316_s4 + $0x28] sm:$0xf]  ;;  %v9091_v44 = vld [vmem:[%s13316_s4 + $0x34] sm:$0xf0] }
 0x253   :  { %v7160_v49 = vor.u32 %v9091_v44, %v7159_v2  ;;  %v7161_v2 = vld [vmem:[%s13316_s4 + $0x38] sm:$0xf0]  ;;  %v9121_v44 = vld [vmem:[%s13316_s4 + $0x12c] sm:$0xf] }
 0x255   :  { %2097 = vmatpush.bf16.msra.mxu2 %v7160_v49  ;;  %v7289_v49 = vld [vmem:[%s13316_s4 + $0x138] sm:$0xf0] }
 0x256   :  { %v1405_v11 = vpop.f32.mrf.mxu2  ;;  %v1454_v18 = vpop.f32.mrf.mxu3  ;;  %v7292_v13 = vor.u32 %v9121_v44, %v7289_v49 }
 0x257   :  { %v10888_v0 = vadd.f32 %v1454_v18, %v1405_v11 }
 0x258   :  { %2244 = vmatpush.bf16.msrb.mxu1 %v7292_v13 }
 0x259   :  { %v1506_v22 = vpop.f32.mrf.mxu0  ;;  %v1555_v45 = vpop.f32.mrf.mxu1 }
 0x25a   :  { %v10890_v54 = vadd.f32 %v1555_v45, %v1506_v22  ;;  %v9089_v45 = vld [vmem:[%s13316_s4 + $0x2c] sm:$0xf] }
 0x25b   :  { %1923 = vmatmul.bf16.gmra.mxu2 %v10338_v37  ;;  %1972 = vmatmul.bf16.gmra.mxu3 %v10340_v5  ;;  %v7164_v46 = vor.u32 %v9089_v45, %v7161_v2  ;;  %v9119_v2 = vld [vmem:[%s13316_s4 + $0x114] sm:$0xf0] }
 0x25c   :  { %2021 = vmatmul.bf16.gmra.mxu0 %v10338_v37  ;;  %2070 = vmatmul.bf16.gmra.mxu1 %v10340_v5  ;;  %v7272_v49 = vor.u32 %v9119_v2, %v7271_v32 }
 0x25d   :  { %2195 = vmatpush.bf16.msrb.mxu0 %v7164_v46 }
 0x25e   :  { %v1408_v43 = vpop.f32.mrf.mxu2  ;;  %v1457_v57 = vpop.f32.mrf.mxu3  ;;  %2147 = vmatpush.bf16.msra.mxu3 %v7272_v49  ;;  %v13342_v49 = vmov 0.0|0.0  }
 0x25f   :  { %v10908_v11 = vadd.f32 %v1457_v57, %v1408_v43 }
 0x261   :  { %13340 = vst [vmem:[#allocation3_spill] sm:$0xff] %v10908_v11  ;;  %v1508_v18 = vpop.f32.mrf.mxu0  ;;  %v1557_v22 = vpop.f32.mrf.mxu1  ;;  %v13341_v11 = vmax.f32 %v10348_v8, 0.0  ;;  %v9087_v8 = vld [vmem:[%s13316_s4 + $0x14] sm:$0xf0] }
 0x262   :  { %v10919_v34 = vadd.f32 %v1557_v22, %v1508_v18 }
 0x263   :  { %v10932_v18 = vpack.c.bf16 0.0, %v13341_v11  ;;  %v7144_v11 = vor.u32 %v9087_v8, %v7143_v59  ;;  %v7273_v8 = vld [vmem:[%s13316_s4 + $0x118] sm:$0xf0] }
 0x265   :  { %2098 = vmatpush.bf16.msra.mxu2 %v7144_v11 }
 0x266   :  { %v1410_v43 = vpop.f32.mrf.mxu2  ;;  %v1459_v57 = vpop.f32.mrf.mxu3 }
 0x267   :  { %v10924_v28 = vadd.f32 %v1459_v57, %v1410_v43  ;;  %v9085_v57 = vld [vmem:[%s13316_s4 + $0xc] sm:$0xf] }
 0x269   :  { %v1511_v22 = vpop.f32.mrf.mxu0  ;;  %v1560_v45 = vpop.f32.mrf.mxu1 }
 0x26a   :  { %v7145_v22 = vld [vmem:[%s13316_s4 + $0x18] sm:$0xf0]  ;;  %v9117_v45 = vld [vmem:[%s13316_s4 + $0x10c] sm:$0xf] }
 0x26b   :  { %1928 = vmatmul.bf16.gmra.mxu2 %v10928_v33  ;;  %1977 = vmatmul.bf16.gmra.mxu3 %v10932_v18  ;;  %v7148_v59 = vor.u32 %v9085_v57, %v7145_v22  ;;  %v7276_v32 = vor.u32 %v9117_v45, %v7273_v8  ;;  %v7695_v57 = vld [vmem:[%s13316_s4 + $0x5e0] sm:$0xf]  ;;  %v9274_v45 = vld [vmem:[%s13316_s4 + $0x5ec] sm:$0xf0] }
 0x26c   :  { %2026 = vmatmul.bf16.gmra.mxu0 %v10928_v33  ;;  %2075 = vmatmul.bf16.gmra.mxu1 %v10932_v18 }
 0x26d   :  { %2196 = vmatpush.bf16.msrb.mxu0 %v7148_v59  ;;  %2245 = vmatpush.bf16.msrb.mxu1 %v7276_v32  ;;  %v7696_v32 = vor.u32 %v9274_v45, %v7695_v57  ;;  %v7697_v57 = vld [vmem:[%s13316_s4 + $0x5f0] sm:$0xf0] }
 0x26e   :  { %v1413_v44 = vpop.f32.mrf.mxu2  ;;  %v1462_v46 = vpop.f32.mrf.mxu3 }
 0x26f   :  { %2721 = vmatpush.bf16.msrb.mxu3 %v7696_v32 }
 0x271   :  { %v1513_v13 = vpop.f32.mrf.mxu0  ;;  %v1562_v43 = vpop.f32.mrf.mxu1 }
 0x272   :  { %v7567_v13 = vld [vmem:[%s13316_s4 + $0x4e0] sm:$0xf]  ;;  %v9242_v43 = vld [vmem:[%s13316_s4 + $0x4ec] sm:$0xf0] }
 0x273   :  { %v7568_v22 = vor.u32 %v9242_v43, %v7567_v13  ;;  %v9272_v13 = vld [vmem:[%s13316_s4 + $0x5e4] sm:$0xf] }
 0x275   :  { %2672 = vmatpush.bf16.msrb.mxu2 %v7568_v22 }
 0x276   :  { %v1415_v11 = vpop.f32.mrf.mxu2  ;;  %v1464_v2 = vpop.f32.mrf.mxu3 }
 0x279   :  { %v1516_v44 = vpop.f32.mrf.mxu0  ;;  %v1565_v46 = vpop.f32.mrf.mxu1 }
 0x27a   :  { %v9240_v44 = vld [vmem:[%s13316_s4 + $0x4e4] sm:$0xf]  ;;  %v7569_v46 = vld [vmem:[%s13316_s4 + $0x4f0] sm:$0xf0] }
 0x27b   :  { %1933 = vmatmul.bf16.gmra.mxu2 %v13342_v49  ;;  %1982 = vmatmul.bf16.gmra.mxu3 %v13342_v49  ;;  %v7572_v43 = vor.u32 %v9240_v44, %v7569_v46  ;;  %v7679_v44 = vld [vmem:[%s13316_s4 + $0x5c0] sm:$0xf] }
 0x27c   :  { %2031 = vmatmul.bf16.gmra.mxu0 %v13342_v49  ;;  %2080 = vmatmul.bf16.gmra.mxu1 %v13342_v49 }
 0x27d   :  { %2770 = vmatpush.bf16.msra.mxu0 %v7572_v43 }
 0x27e   :  { %v1418_v59 = vpop.f32.mrf.mxu2  ;;  %v1467_v8 = vpop.f32.mrf.mxu3 }
 0x27f   :  { %v7700_v59 = vor.u32 %v9272_v13, %v7697_v57  ;;  %v9270_v13 = vld [vmem:[%s13316_s4 + $0x5cc] sm:$0xf0] }
 0x281   :  { %v1518_v11 = vpop.f32.mrf.mxu0  ;;  %v1567_v2 = vpop.f32.mrf.mxu1  ;;  %2819 = vmatpush.bf16.msra.mxu1 %v7700_v59 }
 0x282   :  { %v7551_v11 = vld [vmem:[%s13316_s4 + $0x4c0] sm:$0xf]  ;;  %v9238_v2 = vld [vmem:[%s13316_s4 + $0x4cc] sm:$0xf0] }
 0x283   :  { %v7552_v46 = vor.u32 %v9238_v2, %v7551_v11  ;;  %v9268_v11 = vld [vmem:[%s13316_s4 + $0x5c4] sm:$0xf] }
 0x285   :  { %2673 = vmatpush.bf16.msrb.mxu2 %v7552_v46 }
 0x286   :  { %v1420_v22 = vpop.f32.mrf.mxu2  ;;  %v1469_v45 = vpop.f32.mrf.mxu3 }
 0x287   :  { %v7680_v22 = vor.u32 %v9270_v13, %v7679_v44  ;;  %v7681_v44 = vld [vmem:[%s13316_s4 + $0x5d0] sm:$0xf0] }
 0x289   :  { %v1521_v8 = vpop.f32.mrf.mxu0  ;;  %v1570_v32 = vpop.f32.mrf.mxu1  ;;  %2722 = vmatpush.bf16.msrb.mxu3 %v7680_v22 }
 0x28a   :  { %v9236_v8 = vld [vmem:[%s13316_s4 + $0x4c4] sm:$0xf]  ;;  %v7553_v32 = vld [vmem:[%s13316_s4 + $0x4d0] sm:$0xf0] }
 0x28b   :  { %1938 = vmatmul.bf16.gmra.mxu2 %v13342_v49  ;;  %1987 = vmatmul.bf16.gmra.mxu3 %v13342_v49  ;;  %v7556_v2 = vor.u32 %v9236_v8, %v7553_v32  ;;  %v7535_v8 = vld [vmem:[%s13316_s4 + $0x4a0] sm:$0xf]  ;;  %v9234_v32 = vld [vmem:[%s13316_s4 + $0x4ac] sm:$0xf0] }
 0x28c   :  { %2036 = vmatmul.bf16.gmra.mxu0 %v13342_v49  ;;  %2085 = vmatmul.bf16.gmra.mxu1 %v13342_v49 }
 0x28d   :  { %2771 = vmatpush.bf16.msra.mxu0 %v7556_v2  ;;  %v9266_v2 = vld [vmem:[%s13316_s4 + $0x5ac] sm:$0xf0] }
 0x28e   :  { %v1423_v43 = vpop.f32.mrf.mxu2  ;;  %v1472_v57 = vpop.f32.mrf.mxu3 }
 0x28f   :  { %v7684_v43 = vor.u32 %v9268_v11, %v7681_v44  ;;  %v7536_v11 = vor.u32 %v9234_v32, %v7535_v8  ;;  %v9232_v8 = vld [vmem:[%s13316_s4 + $0x4a4] sm:$0xf]  ;;  %v7537_v32 = vld [vmem:[%s13316_s4 + $0x4b0] sm:$0xf0] }
 0x291   :  { %v1523_v45 = vpop.f32.mrf.mxu0  ;;  %v1572_v59 = vpop.f32.mrf.mxu1  ;;  %2820 = vmatpush.bf16.msra.mxu1 %v7684_v43  ;;  %2674 = vmatpush.bf16.msrb.mxu2 %v7536_v11  ;;  %v7665_v11 = vld [vmem:[%s13316_s4 + $0x5b0] sm:$0xf0] }
 0x296   :  { %v1425_v46 = vpop.f32.mrf.mxu2  ;;  %v1474_v13 = vpop.f32.mrf.mxu3 }
 0x299   :  { %v2002_v57 = vpop.f32.mrf.mxu0  ;;  %v2051_v22 = vpop.f32.mrf.mxu1 }
 0x29a   :  { %v2003_v45 = vadd.f32 %v2002_v57, %v10472_v20  ;;  %v7663_v20 = vld [vmem:[%s13316_s4 + $0x5a0] sm:$0xf] }
 0x29b   :  { %2099 = vmatmul.bf16.vlgmr.msra.gmra.mxu2 %v10739_v40  ;;  %2148 = vmatmul.bf16.vlgmr.msra.gmra.mxu3 %v10744_v55  ;;  %v7664_v13 = vor.u32 %v9266_v2, %v7663_v20  ;;  %v7540_v20 = vor.u32 %v9232_v8, %v7537_v32  ;;  %v9230_v8 = vld [vmem:[%s13316_s4 + $0x48c] sm:$0xf0] }
 0x29c   :  { %v11021_v59 = vadd.f32 %v2051_v22, %v2003_v45  ;;  %2197 = vmatmul.bf16.vlgmr.msrb.gmra.mxu0 %v10739_v40  ;;  %2246 = vmatmul.bf16.vlgmr.msrb.gmra.mxu1 %v10744_v55 }
 0x29d   :  { %2723 = vmatpush.bf16.msrb.mxu3 %v7664_v13  ;;  %2772 = vmatpush.bf16.msra.mxu0 %v7540_v20 }
 0x29e   :  { %13343 = vst [vmem:[#allocation4_spill] sm:$0xff] %v11021_v59  ;;  %v1904_v44 = vpop.f32.mrf.mxu2  ;;  %v1953_v46 = vpop.f32.mrf.mxu3 }
 0x29f   :  { %v1905_v43 = vadd.f32 %v1904_v44, %v10490_v6  ;;  %v9264_v6 = vld [vmem:[%s13316_s4 + $0x5a4] sm:$0xf] }
 0x2a0   :  { %v7668_v2 = vor.u32 %v9264_v6, %v7665_v11  ;;  %v9262_v6 = vld [vmem:[%s13316_s4 + $0x58c] sm:$0xf0] }
 0x2a1   :  { %v11038_v57 = vadd.f32 %v1953_v46, %v1905_v43  ;;  %v2004_v22 = vpop.f32.mrf.mxu0  ;;  %v2053_v45 = vpop.f32.mrf.mxu1 }
 0x2a2   :  { %v2005_v59 = vadd.f32 %v2004_v22, %v10492_v48  ;;  %2821 = vmatpush.bf16.msra.mxu1 %v7668_v2 }
 0x2a4   :  { %v11041_v55 = vadd.f32 %v2053_v45, %v2005_v59 }
 0x2a6   :  { %v1906_v48 = vpop.f32.mrf.mxu2  ;;  %v1955_v59 = vpop.f32.mrf.mxu3 }
 0x2a7   :  { %v1907_v44 = vadd.f32 %v1906_v48, %v10506_v51  ;;  %v7519_v51 = vld [vmem:[%s13316_s4 + $0x480] sm:$0xf] }
 0x2a8   :  { %v7520_v32 = vor.u32 %v9230_v8, %v7519_v51  ;;  %v9228_v51 = vld [vmem:[%s13316_s4 + $0x484] sm:$0xf]  ;;  %v7521_v8 = vld [vmem:[%s13316_s4 + $0x490] sm:$0xf0] }
 0x2a9   :  { %v11056_v46 = vadd.f32 %v1955_v59, %v1907_v44  ;;  %v2007_v13 = vpop.f32.mrf.mxu0  ;;  %v2056_v43 = vpop.f32.mrf.mxu1 }
 0x2aa   :  { %v2008_v22 = vadd.f32 %v2007_v13, %v10508_v42  ;;  %v7647_v42 = vld [vmem:[%s13316_s4 + $0x580] sm:$0xf]  ;;  %2675 = vmatpush.bf16.msrb.mxu2 %v7520_v32  ;;  %v7649_v32 = vld [vmem:[%s13316_s4 + $0x590] sm:$0xf0] }
 0x2ab   :  { %2104 = vmatmul.bf16.gmra.mxu2 %v10164_v29  ;;  %2153 = vmatmul.bf16.gmra.mxu3 %v10166_v41  ;;  %v7648_v48 = vor.u32 %v9262_v6, %v7647_v42  ;;  %v7524_v42 = vor.u32 %v9228_v51, %v7521_v8  ;;  %v9226_v51 = vld [vmem:[%s13316_s4 + $0x46c] sm:$0xf0] }
 0x2ac   :  { %v11061_v45 = vadd.f32 %v2056_v43, %v2008_v22  ;;  %2202 = vmatmul.bf16.gmra.mxu0 %v10164_v29  ;;  %2251 = vmatmul.bf16.gmra.mxu1 %v10166_v41 }
 0x2ad   :  { %2724 = vmatpush.bf16.msrb.mxu3 %v7648_v48  ;;  %2773 = vmatpush.bf16.msra.mxu0 %v7524_v42 }
 0x2ae   :  { %v1909_v20 = vpop.f32.mrf.mxu2  ;;  %v1958_v11 = vpop.f32.mrf.mxu3 }
 0x2af   :  { %v1910_v59 = vadd.f32 %v1909_v20, %v10526_v16  ;;  %v9260_v16 = vld [vmem:[%s13316_s4 + $0x584] sm:$0xf] }
 0x2b0   :  { %v7652_v20 = vor.u32 %v9260_v16, %v7649_v32  ;;  %v9258_v16 = vld [vmem:[%s13316_s4 + $0x56c] sm:$0xf0] }
 0x2b1   :  { %v11078_v2 = vadd.f32 %v1958_v11, %v1910_v59  ;;  %v2009_v44 = vpop.f32.mrf.mxu0  ;;  %v2058_v13 = vpop.f32.mrf.mxu1 }
 0x2b2   :  { %v2010_v43 = vadd.f32 %v2009_v44, %v10528_v61  ;;  %2822 = vmatpush.bf16.msra.mxu1 %v7652_v20 }
 0x2b4   :  { %v11081_v22 = vadd.f32 %v2058_v13, %v2010_v43 }
 0x2b6   :  { %v1911_v61 = vpop.f32.mrf.mxu2  ;;  %v1960_v6 = vpop.f32.mrf.mxu3 }
 0x2b7   :  { %v1912_v11 = vadd.f32 %v1911_v61, %v10542_v62  ;;  %v7503_v62 = vld [vmem:[%s13316_s4 + $0x460] sm:$0xf] }
 0x2b8   :  { %v7504_v8 = vor.u32 %v9226_v51, %v7503_v62  ;;  %v9224_v62 = vld [vmem:[%s13316_s4 + $0x464] sm:$0xf]  ;;  %v7505_v51 = vld [vmem:[%s13316_s4 + $0x470] sm:$0xf0] }
 0x2b9   :  { %v11096_v48 = vadd.f32 %v1960_v6, %v1912_v11  ;;  %v2012_v59 = vpop.f32.mrf.mxu0  ;;  %v2061_v44 = vpop.f32.mrf.mxu1 }
 0x2ba   :  { %v2013_v13 = vadd.f32 %v2012_v59, %v10544_v3  ;;  %v7631_v3 = vld [vmem:[%s13316_s4 + $0x560] sm:$0xf]  ;;  %2676 = vmatpush.bf16.msrb.mxu2 %v7504_v8  ;;  %v7633_v8 = vld [vmem:[%s13316_s4 + $0x570] sm:$0xf0] }
 0x2bb   :  { %2109 = vmatmul.bf16.gmra.mxu2 %v10214_v30  ;;  %2158 = vmatmul.bf16.gmra.mxu3 %v10216_v21  ;;  %v7632_v61 = vor.u32 %v9258_v16, %v7631_v3  ;;  %v7508_v3 = vor.u32 %v9224_v62, %v7505_v51  ;;  %v9222_v62 = vld [vmem:[%s13316_s4 + $0x44c] sm:$0xf0] }
 0x2bc   :  { %v11101_v43 = vadd.f32 %v2061_v44, %v2013_v13  ;;  %2207 = vmatmul.bf16.gmra.mxu0 %v10214_v30  ;;  %2256 = vmatmul.bf16.gmra.mxu1 %v10216_v21 }
 0x2bd   :  { %2725 = vmatpush.bf16.msrb.mxu3 %v7632_v61  ;;  %2774 = vmatpush.bf16.msra.mxu0 %v7508_v3 }
 0x2be   :  { %v1914_v42 = vpop.f32.mrf.mxu2  ;;  %v1963_v32 = vpop.f32.mrf.mxu3 }
 0x2bf   :  { %v1915_v6 = vadd.f32 %v1914_v42, %v10562_v15  ;;  %v9256_v15 = vld [vmem:[%s13316_s4 + $0x564] sm:$0xf] }
 0x2c0   :  { %v7636_v42 = vor.u32 %v9256_v15, %v7633_v8  ;;  %v9254_v15 = vld [vmem:[%s13316_s4 + $0x54c] sm:$0xf0] }
 0x2c1   :  { %v11118_v20 = vadd.f32 %v1963_v32, %v1915_v6  ;;  %v2014_v11 = vpop.f32.mrf.mxu0  ;;  %v2063_v59 = vpop.f32.mrf.mxu1 }
 0x2c2   :  { %v2015_v44 = vadd.f32 %v2014_v11, %v10564_v50  ;;  %2823 = vmatpush.bf16.msra.mxu1 %v7636_v42 }
 0x2c4   :  { %v11121_v13 = vadd.f32 %v2063_v59, %v2015_v44 }
 0x2c6   :  { %v1916_v50 = vpop.f32.mrf.mxu2  ;;  %v1965_v16 = vpop.f32.mrf.mxu3 }
 0x2c7   :  { %v1917_v32 = vadd.f32 %v1916_v50, %v10578_v1  ;;  %v7487_v1 = vld [vmem:[%s13316_s4 + $0x440] sm:$0xf] }
 0x2c8   :  { %v7488_v51 = vor.u32 %v9222_v62, %v7487_v1  ;;  %v9252_v1 = vld [vmem:[%s13316_s4 + $0x544] sm:$0xf] }
 0x2c9   :  { %v11136_v61 = vadd.f32 %v1965_v16, %v1917_v32  ;;  %v2017_v6 = vpop.f32.mrf.mxu0  ;;  %v2066_v11 = vpop.f32.mrf.mxu1 }
 0x2ca   :  { %v2018_v59 = vadd.f32 %v2017_v6, %v10580_v60  ;;  %v7615_v60 = vld [vmem:[%s13316_s4 + $0x540] sm:$0xf]  ;;  %2677 = vmatpush.bf16.msrb.mxu2 %v7488_v51 }
 0x2cb   :  { %2114 = vmatmul.bf16.gmra.mxu2 %v10288_v27  ;;  %2163 = vmatmul.bf16.gmra.mxu3 %v10290_v39  ;;  %v7616_v50 = vor.u32 %v9254_v15, %v7615_v60  ;;  %v7617_v60 = vld [vmem:[%s13316_s4 + $0x550] sm:$0xf0] }
 0x2cc   :  { %v11141_v44 = vadd.f32 %v2066_v11, %v2018_v59  ;;  %2212 = vmatmul.bf16.gmra.mxu0 %v10288_v27  ;;  %2261 = vmatmul.bf16.gmra.mxu1 %v10290_v39  ;;  %v9220_v11 = vld [vmem:[%s13316_s4 + $0x444] sm:$0xf]  ;;  %v7489_v59 = vld [vmem:[%s13316_s4 + $0x450] sm:$0xf0]  ;;  %v7620_v51 = vor.u32 %v9252_v1, %v7617_v60 }
 0x2cd   :  { %2726 = vmatpush.bf16.msrb.mxu3 %v7616_v50  ;;  %v7492_v62 = vor.u32 %v9220_v11, %v7489_v59 }
 0x2ce   :  { %13344 = vst [vmem:[#allocation5_spill] sm:$0xff] %v11141_v44  ;;  %v1919_v3 = vpop.f32.mrf.mxu2  ;;  %v1968_v8 = vpop.f32.mrf.mxu3  ;;  %2824 = vmatpush.bf16.msra.mxu1 %v7620_v51 }
 0x2cf   :  { %v1920_v16 = vadd.f32 %v1919_v3, %v10598_v36  ;;  %2775 = vmatpush.bf16.msra.mxu0 %v7492_v62 }
 0x2d1   :  { %v11158_v42 = vadd.f32 %v1968_v8, %v1920_v16  ;;  %v2019_v32 = vpop.f32.mrf.mxu0  ;;  %v2068_v6 = vpop.f32.mrf.mxu1 }
 0x2d2   :  { %v2020_v36 = vadd.f32 %v2019_v32, %v10609_v31 }
 0x2d3   :  { %13345 = vst [vmem:[#allocation6_spill] sm:$0xff] %v11158_v42 }
 0x2d4   :  { %v11173_v15 = vadd.f32 %v2068_v6, %v2020_v36  ;;  %v9218_v6 = vld [vmem:[%s13316_s4 + $0x42c] sm:$0xf0] }
 0x2d6   :  { %v1921_v3 = vpop.f32.mrf.mxu2  ;;  %v1970_v8 = vpop.f32.mrf.mxu3 }
 0x2d7   :  { %v1922_v50 = vadd.f32 %v1921_v3, %v10614_v17  ;;  %v7471_v17 = vld [vmem:[%s13316_s4 + $0x420] sm:$0xf]  ;;  %v9216_v3 = vld [vmem:[%s13316_s4 + $0x424] sm:$0xf] }
 0x2d9   :  { %v11176_v16 = vadd.f32 %v1970_v8, %v1922_v50  ;;  %v2022_v42 = vpop.f32.mrf.mxu0  ;;  %v2071_v44 = vpop.f32.mrf.mxu1  ;;  %v7473_v8 = vld [vmem:[%s13316_s4 + $0x430] sm:$0xf0]  ;;  %v9248_v50 = vld [vmem:[%s13316_s4 + $0x524] sm:$0xf] }
 0x2da   :  { %v2023_v31 = vadd.f32 %v2022_v42, %v10616_v56  ;;  %v7599_v56 = vld [vmem:[%s13316_s4 + $0x520] sm:$0xf]  ;;  %v7472_v42 = vor.u32 %v9218_v6, %v7471_v17  ;;  %v7601_v17 = vld [vmem:[%s13316_s4 + $0x530] sm:$0xf0] }
 0x2db   :  { %2119 = vmatmul.bf16.gmra.mxu2 %v10338_v37  ;;  %2168 = vmatmul.bf16.gmra.mxu3 %v10340_v5  ;;  %v7604_v6 = vor.u32 %v9248_v50, %v7601_v17 }
 0x2dc   :  { %v11181_v32 = vadd.f32 %v2071_v44, %v2023_v31  ;;  %2217 = vmatmul.bf16.gmra.mxu0 %v10338_v37  ;;  %2266 = vmatmul.bf16.gmra.mxu1 %v10340_v5  ;;  %v9250_v44 = vld [vmem:[%s13316_s4 + $0x52c] sm:$0xf0]  ;;  %v7476_v31 = vor.u32 %v9216_v3, %v7473_v8 }
 0x2dd   :  { %v7600_v1 = vor.u32 %v9250_v44, %v7599_v56  ;;  %2678 = vmatpush.bf16.msrb.mxu2 %v7472_v42  ;;  %2825 = vmatpush.bf16.msra.mxu1 %v7604_v6  ;;  %v9246_v3 = vld [vmem:[%s13316_s4 + $0x50c] sm:$0xf0]  ;;  %v9212_v6 = vld [vmem:[%s13316_s4 + $0x404] sm:$0xf] }
 0x2de   :  { %v1924_v11 = vpop.f32.mrf.mxu2  ;;  %v1973_v59 = vpop.f32.mrf.mxu3  ;;  %2776 = vmatpush.bf16.msra.mxu0 %v7476_v31 }
 0x2df   :  { %v1925_v36 = vadd.f32 %v1924_v11, %v10634_v10  ;;  %2727 = vmatpush.bf16.msrb.mxu3 %v7600_v1 }
 0x2e1   :  { %v11198_v62 = vadd.f32 %v1973_v59, %v1925_v36  ;;  %v2024_v60 = vpop.f32.mrf.mxu0  ;;  %v2073_v51 = vpop.f32.mrf.mxu1 }
 0x2e2   :  { %v2025_v10 = vadd.f32 %v2024_v60, %v10645_v24  ;;  %v7455_v24 = vld [vmem:[%s13316_s4 + $0x400] sm:$0xf] }
 0x2e3   :  { %v7583_v60 = vld [vmem:[%s13316_s4 + $0x500] sm:$0xf] }
 0x2e4   :  { %v11213_v56 = vadd.f32 %v2073_v51, %v2025_v10  ;;  %v7584_v10 = vor.u32 %v9246_v3, %v7583_v60  ;;  %v7575_v3 = vld [vmem:[%s13316_s4 + $0x4e8] sm:$0xf] }
 0x2e6   :  { %v1926_v42 = vpop.f32.mrf.mxu2  ;;  %v1975_v44 = vpop.f32.mrf.mxu3  ;;  %2728 = vmatpush.bf16.msrb.mxu3 %v7584_v10 }
 0x2e7   :  { %v1927_v11 = vadd.f32 %v1926_v42, %v10650_v63  ;;  %v9214_v63 = vld [vmem:[%s13316_s4 + $0x40c] sm:$0xf0]  ;;  %v7457_v42 = vld [vmem:[%s13316_s4 + $0x410] sm:$0xf0] }
 0x2e8   :  { %v7456_v51 = vor.u32 %v9214_v63, %v7455_v24 }
 0x2e9   :  { %v11216_v59 = vadd.f32 %v1975_v44, %v1927_v11  ;;  %v2027_v1 = vpop.f32.mrf.mxu0  ;;  %v2076_v36 = vpop.f32.mrf.mxu1  ;;  %v9244_v44 = vld [vmem:[%s13316_s4 + $0x504] sm:$0xf]  ;;  %v7460_v11 = vor.u32 %v9212_v6, %v7457_v42 }
 0x2ea   :  { %2679 = vmatpush.bf16.msrb.mxu2 %v7456_v51  ;;  %v7585_v1 = vld [vmem:[%s13316_s4 + $0x510] sm:$0xf0] }
 0x2eb   :  { %2124 = vmatmul.bf16.gmra.mxu2 %v10928_v33  ;;  %2173 = vmatmul.bf16.gmra.mxu3 %v10932_v18  ;;  %v7588_v36 = vor.u32 %v9244_v44, %v7585_v1  ;;  %v9241_v1 = vld [vmem:[%s13316_s4 + $0x4ec] sm:$0xf] }
 0x2ec   :  { %2222 = vmatmul.bf16.gmra.mxu0 %v10928_v33  ;;  %2271 = vmatmul.bf16.gmra.mxu1 %v10932_v18 }
 0x2ed   :  { %2777 = vmatpush.bf16.msra.mxu0 %v7460_v11  ;;  %2826 = vmatpush.bf16.msra.mxu1 %v7588_v36  ;;  %v7577_v36 = vld [vmem:[%s13316_s4 + $0x4f8] sm:$0xf0] }
 0x2ee   :  { %v1929_v8 = vpop.f32.mrf.mxu2  ;;  %v1978_v50 = vpop.f32.mrf.mxu3 }
 0x2ef   :  { %v9243_v8 = vld [vmem:[%s13316_s4 + $0x4f4] sm:$0xf0]  ;;  %v7703_v50 = vld [vmem:[%s13316_s4 + $0x5e8] sm:$0xf] }
 0x2f0   :  { %v7576_v10 = vor.u32 %v9243_v8, %v7575_v3 }
 0x2f1   :  { %v2029_v31 = vpop.f32.mrf.mxu0  ;;  %v2078_v17 = vpop.f32.mrf.mxu1 }
 0x2f2   :  { %v9275_v31 = vld [vmem:[%s13316_s4 + $0x5f4] sm:$0xf0]  ;;  %2868 = vmatpush.bf16.msra.mxu2 %v7576_v10 }
 0x2f3   :  { %v7704_v42 = vor.u32 %v9275_v31, %v7703_v50  ;;  %v7559_v31 = vld [vmem:[%s13316_s4 + $0x4c8] sm:$0xf] }
 0x2f5   :  { %2917 = vmatpush.bf16.msra.mxu3 %v7704_v42 }
 0x2f6   :  { %v1931_v24 = vpop.f32.mrf.mxu2  ;;  %v1980_v63 = vpop.f32.mrf.mxu3 }
 0x2f7   :  { %v9273_v24 = vld [vmem:[%s13316_s4 + $0x5ec] sm:$0xf]  ;;  %v7580_v63 = vor.u32 %v9241_v1, %v7577_v36 }
 0x2f9   :  { %v2032_v60 = vpop.f32.mrf.mxu0  ;;  %v2081_v51 = vpop.f32.mrf.mxu1  ;;  %2966 = vmatpush.bf16.msrb.mxu0 %v7580_v63 }
 0x2fa   :  { %v7705_v60 = vld [vmem:[%s13316_s4 + $0x5f8] sm:$0xf0] }
 0x2fb   :  { %2129 = vmatmul.bf16.gmra.mxu2 %v13342_v49  ;;  %2178 = vmatmul.bf16.gmra.mxu3 %v13342_v49  ;;  %v7708_v8 = vor.u32 %v9273_v24, %v7705_v60  ;;  %v9237_v60 = vld [vmem:[%s13316_s4 + $0x4cc] sm:$0xf] }
 0x2fc   :  { %2227 = vmatmul.bf16.gmra.mxu0 %v13342_v49  ;;  %2276 = vmatmul.bf16.gmra.mxu1 %v13342_v49 }
 0x2fd   :  { %3015 = vmatpush.bf16.msrb.mxu1 %v7708_v8 }
 0x2fe   :  { %v1934_v17 = vpop.f32.mrf.mxu2  ;;  %v1983_v6 = vpop.f32.mrf.mxu3 }
 0x2ff   :  { %v9239_v17 = vld [vmem:[%s13316_s4 + $0x4d4] sm:$0xf0]  ;;  %v7687_v6 = vld [vmem:[%s13316_s4 + $0x5c8] sm:$0xf] }
 0x300   :  { %v7560_v42 = vor.u32 %v9239_v17, %v7559_v31 }
 0x301   :  { %v2034_v44 = vpop.f32.mrf.mxu0  ;;  %v2083_v11 = vpop.f32.mrf.mxu1 }
 0x302   :  { %v9271_v44 = vld [vmem:[%s13316_s4 + $0x5d4] sm:$0xf0]  ;;  %2869 = vmatpush.bf16.msra.mxu2 %v7560_v42 }
 0x303   :  { %v7688_v36 = vor.u32 %v9271_v44, %v7687_v6 }
 0x305   :  { %2918 = vmatpush.bf16.msra.mxu3 %v7688_v36  ;;  %v9235_v36 = vld [vmem:[%s13316_s4 + $0x4b4] sm:$0xf0] }
 0x306   :  { %v1936_v51 = vpop.f32.mrf.mxu2  ;;  %v1985_v3 = vpop.f32.mrf.mxu3 }
 0x307   :  { %v7561_v51 = vld [vmem:[%s13316_s4 + $0x4d8] sm:$0xf0]  ;;  %v9269_v3 = vld [vmem:[%s13316_s4 + $0x5cc] sm:$0xf] }
 0x308   :  { %v7564_v8 = vor.u32 %v9237_v60, %v7561_v51 }
 0x309   :  { %v2037_v50 = vpop.f32.mrf.mxu0  ;;  %v2086_v10 = vpop.f32.mrf.mxu1 }
 0x30a   :  { %v7689_v50 = vld [vmem:[%s13316_s4 + $0x5d8] sm:$0xf0]  ;;  %2967 = vmatpush.bf16.msrb.mxu0 %v7564_v8 }
 0x30b   :  { %2134 = vmatmul.bf16.gmra.mxu2 %v13342_v49  ;;  %2183 = vmatmul.bf16.gmra.mxu3 %v13342_v49  ;;  %v7692_v17 = vor.u32 %v9269_v3, %v7689_v50 }
 0x30c   :  { %2232 = vmatmul.bf16.gmra.mxu0 %v13342_v49  ;;  %2281 = vmatmul.bf16.gmra.mxu1 %v13342_v49 }
 0x30d   :  { %3016 = vmatpush.bf16.msrb.mxu1 %v7692_v17 }
 0x30e   :  { %v1939_v11 = vpop.f32.mrf.mxu2  ;;  %v1988_v1 = vpop.f32.mrf.mxu3 }
 0x30f   :  { %v7543_v1 = vld [vmem:[%s13316_s4 + $0x4a8] sm:$0xf] }
 0x311   :  { %v2039_v24 = vpop.f32.mrf.mxu0  ;;  %v2088_v63 = vpop.f32.mrf.mxu1 }
 0x312   :  { %v7544_v24 = vor.u32 %v9235_v36, %v7543_v1  ;;  %v9267_v63 = vld [vmem:[%s13316_s4 + $0x5b4] sm:$0xf0]  ;;  %v7673_v36 = vld [vmem:[%s13316_s4 + $0x5b8] sm:$0xf0] }
 0x314   :  { %2870 = vmatpush.bf16.msra.mxu2 %v7544_v24 }
 0x316   :  { %v1941_v10 = vpop.f32.mrf.mxu2  ;;  %v1990_v31 = vpop.f32.mrf.mxu3 }
 0x319   :  { %v2198_v6 = vpop.f32.mrf.mxu0  ;;  %v2247_v42 = vpop.f32.mrf.mxu1 }
 0x31a   :  { %v2199_v44 = vadd.f32 %v2198_v6, %v10746_v26  ;;  %v7671_v26 = vld [vmem:[%s13316_s4 + $0x5a8] sm:$0xf] }
 0x31b   :  { %2680 = vmatmul.bf16.vlgmr.msrb.gmra.mxu2 %v10164_v29  ;;  %2729 = vmatmul.bf16.vlgmr.msrb.gmra.mxu3 %v10166_v41  ;;  %v7672_v3 = vor.u32 %v9267_v63, %v7671_v26 }
 0x31c   :  { %v11305_v11 = vadd.f32 %v2247_v42, %v2199_v44  ;;  %2778 = vmatmul.bf16.vlgmr.msra.gmra.mxu0 %v10164_v29  ;;  %2827 = vmatmul.bf16.vlgmr.msra.gmra.mxu1 %v10166_v41  ;;  %v9233_v42 = vld [vmem:[%s13316_s4 + $0x4ac] sm:$0xf]  ;;  %v7545_v44 = vld [vmem:[%s13316_s4 + $0x4b8] sm:$0xf0] }
 0x31d   :  { %2919 = vmatpush.bf16.msra.mxu3 %v7672_v3  ;;  %v7548_v1 = vor.u32 %v9233_v42, %v7545_v44  ;;  %v9263_v42 = vld [vmem:[%s13316_s4 + $0x594] sm:$0xf0] }
 0x31e   :  { %v2100_v60 = vpop.f32.mrf.mxu2  ;;  %v2149_v51 = vpop.f32.mrf.mxu3 }
 0x31f   :  { %v2101_v8 = vadd.f32 %v2100_v60, %v10764_v52  ;;  %v9265_v52 = vld [vmem:[%s13316_s4 + $0x5ac] sm:$0xf]  ;;  %2968 = vmatpush.bf16.msrb.mxu0 %v7548_v1 }
 0x320   :  { %v7676_v24 = vor.u32 %v9265_v52, %v7673_v36 }
 0x321   :  { %v11322_v50 = vadd.f32 %v2149_v51, %v2101_v8  ;;  %v2200_v10 = vpop.f32.mrf.mxu0  ;;  %v2249_v31 = vpop.f32.mrf.mxu1 }
 0x322   :  { %v2201_v17 = vadd.f32 %v2200_v10, %v10766_v12  ;;  %3017 = vmatpush.bf16.msrb.mxu1 %v7676_v24 }
 0x324   :  { %v11325_v6 = vadd.f32 %v2249_v31, %v2201_v17  ;;  %v9231_v31 = vld [vmem:[%s13316_s4 + $0x494] sm:$0xf0] }
 0x326   :  { %v2102_v12 = vpop.f32.mrf.mxu2  ;;  %v2151_v26 = vpop.f32.mrf.mxu3 }
 0x327   :  { %v2103_v63 = vadd.f32 %v2102_v12, %v10780_v47  ;;  %v7527_v47 = vld [vmem:[%s13316_s4 + $0x488] sm:$0xf] }
 0x328   :  { %v7528_v17 = vor.u32 %v9231_v31, %v7527_v47  ;;  %v7657_v31 = vld [vmem:[%s13316_s4 + $0x598] sm:$0xf0] }
 0x329   :  { %v11340_v60 = vadd.f32 %v2151_v26, %v2103_v63  ;;  %v2203_v51 = vpop.f32.mrf.mxu0  ;;  %v2252_v3 = vpop.f32.mrf.mxu1 }
 0x32a   :  { %v2204_v8 = vadd.f32 %v2203_v51, %v10782_v53  ;;  %v7655_v53 = vld [vmem:[%s13316_s4 + $0x588] sm:$0xf]  ;;  %2871 = vmatpush.bf16.msra.mxu2 %v7528_v17 }
 0x32b   :  { %2685 = vmatmul.bf16.gmra.mxu2 %v10214_v30  ;;  %2734 = vmatmul.bf16.gmra.mxu3 %v10216_v21  ;;  %v7656_v1 = vor.u32 %v9263_v42, %v7655_v53 }
 0x32c   :  { %v11345_v10 = vadd.f32 %v2252_v3, %v2204_v8  ;;  %2783 = vmatmul.bf16.gmra.mxu0 %v10214_v30  ;;  %2832 = vmatmul.bf16.gmra.mxu1 %v10216_v21  ;;  %v9229_v3 = vld [vmem:[%s13316_s4 + $0x48c] sm:$0xf]  ;;  %v7529_v8 = vld [vmem:[%s13316_s4 + $0x498] sm:$0xf0] }
 0x32d   :  { %2920 = vmatpush.bf16.msra.mxu3 %v7656_v1  ;;  %v7532_v47 = vor.u32 %v9229_v3, %v7529_v8  ;;  %v9259_v3 = vld [vmem:[%s13316_s4 + $0x574] sm:$0xf0] }
 0x32e   :  { %v2105_v44 = vpop.f32.mrf.mxu2  ;;  %v2154_v52 = vpop.f32.mrf.mxu3 }
 0x32f   :  { %v2106_v36 = vadd.f32 %v2105_v44, %v10800_v58  ;;  %v9261_v58 = vld [vmem:[%s13316_s4 + $0x58c] sm:$0xf]  ;;  %2969 = vmatpush.bf16.msrb.mxu0 %v7532_v47 }
 0x330   :  { %v7660_v17 = vor.u32 %v9261_v58, %v7657_v31 }
 0x331   :  { %v11362_v12 = vadd.f32 %v2154_v52, %v2106_v36  ;;  %v2205_v26 = vpop.f32.mrf.mxu0  ;;  %v2254_v24 = vpop.f32.mrf.mxu1 }
 0x332   :  { %v2206_v63 = vadd.f32 %v2205_v26, %v10802_v35  ;;  %3018 = vmatpush.bf16.msrb.mxu1 %v7660_v17 }
 0x334   :  { %v11365_v51 = vadd.f32 %v2254_v24, %v2206_v63  ;;  %v9227_v24 = vld [vmem:[%s13316_s4 + $0x474] sm:$0xf0] }
 0x336   :  { %v2107_v35 = vpop.f32.mrf.mxu2  ;;  %v2156_v53 = vpop.f32.mrf.mxu3 }
 0x337   :  { %v2108_v42 = vadd.f32 %v2107_v35, %v10816_v7  ;;  %v7511_v7 = vld [vmem:[%s13316_s4 + $0x468] sm:$0xf] }
 0x338   :  { %v7512_v63 = vor.u32 %v9227_v24, %v7511_v7  ;;  %v7641_v24 = vld [vmem:[%s13316_s4 + $0x578] sm:$0xf0] }
 0x339   :  { %v11380_v44 = vadd.f32 %v2156_v53, %v2108_v42  ;;  %v2208_v52 = vpop.f32.mrf.mxu0  ;;  %v2257_v1 = vpop.f32.mrf.mxu1 }
 0x33a   :  { %v2209_v36 = vadd.f32 %v2208_v52, %v10818_v4  ;;  %v7639_v4 = vld [vmem:[%s13316_s4 + $0x568] sm:$0xf]  ;;  %2872 = vmatpush.bf16.msra.mxu2 %v7512_v63 }
 0x33b   :  { %2690 = vmatmul.bf16.gmra.mxu2 %v10288_v27  ;;  %2739 = vmatmul.bf16.gmra.mxu3 %v10290_v39  ;;  %v7640_v47 = vor.u32 %v9259_v3, %v7639_v4 }
 0x33c   :  { %v11385_v26 = vadd.f32 %v2257_v1, %v2209_v36  ;;  %2788 = vmatmul.bf16.gmra.mxu0 %v10288_v27  ;;  %2837 = vmatmul.bf16.gmra.mxu1 %v10290_v39  ;;  %v9225_v1 = vld [vmem:[%s13316_s4 + $0x46c] sm:$0xf]  ;;  %v7513_v36 = vld [vmem:[%s13316_s4 + $0x478] sm:$0xf0] }
 0x33d   :  { %2921 = vmatpush.bf16.msra.mxu3 %v7640_v47  ;;  %v7516_v7 = vor.u32 %v9225_v1, %v7513_v36  ;;  %v9255_v1 = vld [vmem:[%s13316_s4 + $0x554] sm:$0xf0] }
 0x33e   :  { %v2110_v8 = vpop.f32.mrf.mxu2  ;;  %v2159_v58 = vpop.f32.mrf.mxu3 }
 0x33f   :  { %v2111_v31 = vadd.f32 %v2110_v8, %v10836_v9  ;;  %v9257_v9 = vld [vmem:[%s13316_s4 + $0x56c] sm:$0xf]  ;;  %2970 = vmatpush.bf16.msrb.mxu0 %v7516_v7 }
 0x340   :  { %v7644_v63 = vor.u32 %v9257_v9, %v7641_v24 }
 0x341   :  { %v11402_v35 = vadd.f32 %v2159_v58, %v2111_v31  ;;  %v2210_v53 = vpop.f32.mrf.mxu0  ;;  %v2259_v17 = vpop.f32.mrf.mxu1 }
 0x342   :  { %v2211_v42 = vadd.f32 %v2210_v53, %v10838_v19  ;;  %3019 = vmatpush.bf16.msrb.mxu1 %v7644_v63 }
 0x344   :  { %v11405_v52 = vadd.f32 %v2259_v17, %v2211_v42  ;;  %v9223_v17 = vld [vmem:[%s13316_s4 + $0x454] sm:$0xf0] }
 0x346   :  { %v2112_v19 = vpop.f32.mrf.mxu2  ;;  %v2161_v4 = vpop.f32.mrf.mxu3 }
 0x347   :  { %v2113_v3 = vadd.f32 %v2112_v19, %v10852_v25  ;;  %v7495_v25 = vld [vmem:[%s13316_s4 + $0x448] sm:$0xf] }
 0x348   :  { %v7496_v42 = vor.u32 %v9223_v17, %v7495_v25  ;;  %v7625_v25 = vld [vmem:[%s13316_s4 + $0x558] sm:$0xf0] }
 0x349   :  { %v11420_v8 = vadd.f32 %v2161_v4, %v2113_v3  ;;  %v2213_v58 = vpop.f32.mrf.mxu0  ;;  %v2262_v47 = vpop.f32.mrf.mxu1  ;;  %v9221_v3 = vld [vmem:[%s13316_s4 + $0x44c] sm:$0xf] }
 0x34a   :  { %v2214_v31 = vadd.f32 %v2213_v58, %v10854_v23  ;;  %v7623_v23 = vld [vmem:[%s13316_s4 + $0x548] sm:$0xf]  ;;  %2873 = vmatpush.bf16.msra.mxu2 %v7496_v42  ;;  %v7497_v58 = vld [vmem:[%s13316_s4 + $0x458] sm:$0xf0] }
 0x34b   :  { %2695 = vmatmul.bf16.gmra.mxu2 %v10338_v37  ;;  %2744 = vmatmul.bf16.gmra.mxu3 %v10340_v5  ;;  %v7624_v7 = vor.u32 %v9255_v1, %v7623_v23 }
 0x34c   :  { %v11425_v53 = vadd.f32 %v2262_v47, %v2214_v31  ;;  %2793 = vmatmul.bf16.gmra.mxu0 %v10338_v37  ;;  %2842 = vmatmul.bf16.gmra.mxu1 %v10340_v5  ;;  %v9253_v47 = vld [vmem:[%s13316_s4 + $0x54c] sm:$0xf]  ;;  %v7500_v31 = vor.u32 %v9221_v3, %v7497_v58  ;;  %v9251_v58 = vld [vmem:[%s13316_s4 + $0x534] sm:$0xf0] }
 0x34d   :  { %2922 = vmatpush.bf16.msra.mxu3 %v7624_v7  ;;  %v7628_v17 = vor.u32 %v9253_v47, %v7625_v25  ;;  %v13348_v25 = vld [vmem:[#allocation3_spill] sm:$0xff] }
 0x34e   :  { %v2115_v36 = vpop.f32.mrf.mxu2  ;;  %v2164_v9 = vpop.f32.mrf.mxu3  ;;  %2971 = vmatpush.bf16.msrb.mxu0 %v7500_v31 }
 0x34f   :  { %v2116_v24 = vadd.f32 %v2115_v36, %v10872_v38  ;;  %3020 = vmatpush.bf16.msrb.mxu1 %v7628_v17 }
 0x351   :  { %v11442_v19 = vadd.f32 %v2164_v9, %v2116_v24  ;;  %v2215_v4 = vpop.f32.mrf.mxu0  ;;  %v2264_v63 = vpop.f32.mrf.mxu1 }
 0x352   :  { %v2216_v38 = vadd.f32 %v2215_v4, %v10883_v14 }
 0x354   :  { %v11457_v23 = vadd.f32 %v2264_v63, %v2216_v38  ;;  %v9219_v63 = vld [vmem:[%s13316_s4 + $0x434] sm:$0xf0] }
 0x356   :  { %v2117_v42 = vpop.f32.mrf.mxu2  ;;  %v2166_v1 = vpop.f32.mrf.mxu3 }
 0x357   :  { %v2118_v36 = vadd.f32 %v2117_v42, %v10888_v0  ;;  %v7479_v0 = vld [vmem:[%s13316_s4 + $0x428] sm:$0xf] }
 0x358   :  { %v7480_v3 = vor.u32 %v9219_v63, %v7479_v0 }
 0x359   :  { %v11460_v9 = vadd.f32 %v2166_v1, %v2118_v36  ;;  %v2218_v7 = vpop.f32.mrf.mxu0  ;;  %v2267_v24 = vpop.f32.mrf.mxu1 }
 0x35a   :  { %v2219_v14 = vadd.f32 %v2218_v7, %v10890_v54  ;;  %v7607_v54 = vld [vmem:[%s13316_s4 + $0x528] sm:$0xf]  ;;  %2874 = vmatpush.bf16.msra.mxu2 %v7480_v3  ;;  %v9217_v7 = vld [vmem:[%s13316_s4 + $0x42c] sm:$0xf] }
 0x35b   :  { %13346 = vst [vmem:[#allocation7_spill] sm:$0xff] %v11460_v9  ;;  %2700 = vmatmul.bf16.gmra.mxu2 %v10928_v33  ;;  %2749 = vmatmul.bf16.gmra.mxu3 %v10932_v18  ;;  %v7608_v31 = vor.u32 %v9251_v58, %v7607_v54  ;;  %v7609_v54 = vld [vmem:[%s13316_s4 + $0x538] sm:$0xf0] }
 0x35c   :  { %v11465_v4 = vadd.f32 %v2267_v24, %v2219_v14  ;;  %2798 = vmatmul.bf16.gmra.mxu0 %v10928_v33  ;;  %2847 = vmatmul.bf16.gmra.mxu1 %v10932_v18  ;;  %v7481_v24 = vld [vmem:[%s13316_s4 + $0x438] sm:$0xf0]  ;;  %v9249_v14 = vld [vmem:[%s13316_s4 + $0x52c] sm:$0xf] }
 0x35d   :  { %2923 = vmatpush.bf16.msra.mxu3 %v7608_v31  ;;  %v7484_v63 = vor.u32 %v9217_v7, %v7481_v24  ;;  %v7612_v3 = vor.u32 %v9249_v14, %v7609_v54  ;;  %v9213_v54 = vld [vmem:[%s13316_s4 + $0x40c] sm:$0xf] }
 0x35e   :  { %13347 = vst [vmem:[#allocation8_spill] sm:$0xff] %v11465_v4  ;;  %v2120_v47 = vpop.f32.mrf.mxu2  ;;  %v2169_v38 = vpop.f32.mrf.mxu3 }
 0x35f   :  { %v2121_v17 = vadd.f32 %v2120_v47, %v13348_v25  ;;  %2972 = vmatpush.bf16.msrb.mxu0 %v7484_v63  ;;  %3021 = vmatpush.bf16.msrb.mxu1 %v7612_v3  ;;  %v7465_v3 = vld [vmem:[%s13316_s4 + $0x418] sm:$0xf0] }
 0x361   :  { %v11482_v42 = vadd.f32 %v2169_v38, %v2121_v17  ;;  %v2220_v1 = vpop.f32.mrf.mxu0  ;;  %v2269_v36 = vpop.f32.mrf.mxu1 }
 0x362   :  { %v2221_v0 = vadd.f32 %v2220_v1, %v10919_v34  ;;  %v7463_v34 = vld [vmem:[%s13316_s4 + $0x408] sm:$0xf] }
 0x363   :  { %13349 = vst [vmem:[#allocation3_spill] sm:$0xff] %v11482_v42 }
 0x364   :  { %v11497_v58 = vadd.f32 %v2269_v36, %v2221_v0  ;;  %v9247_v36 = vld [vmem:[%s13316_s4 + $0x514] sm:$0xf0] }
 0x366   :  { %13350 = vst [vmem:[#allocation9_spill] sm:$0xff] %v11497_v58  ;;  %v2122_v47 = vpop.f32.mrf.mxu2  ;;  %v2171_v38 = vpop.f32.mrf.mxu3 }
 0x367   :  { %v2123_v31 = vadd.f32 %v2122_v47, %v10924_v28  ;;  %v9215_v28 = vld [vmem:[%s13316_s4 + $0x414] sm:$0xf0]  ;;  %v9245_v47 = vld [vmem:[%s13316_s4 + $0x50c] sm:$0xf] }
 0x368   :  { %v7464_v1 = vor.u32 %v9215_v28, %v7463_v34 }
 0x369   :  { %v11500_v25 = vadd.f32 %v2171_v38, %v2123_v31  ;;  %v2223_v17 = vpop.f32.mrf.mxu0  ;;  %v2272_v42 = vpop.f32.mrf.mxu1  ;;  %v7468_v38 = vor.u32 %v9213_v54, %v7465_v3  ;;  %v7593_v31 = vld [vmem:[%s13316_s4 + $0x518] sm:$0xf0] }
 0x36a   :  { %v7591_v42 = vld [vmem:[%s13316_s4 + $0x508] sm:$0xf]  ;;  %2875 = vmatpush.bf16.msra.mxu2 %v7464_v1  ;;  %v7596_v17 = vor.u32 %v9245_v47, %v7593_v31  ;;  %v13352_v47 = vld [vmem:[#allocation2_spill] sm:$0xff] }
 0x36b   :  { %13351 = vst [vmem:[#allocation10_spill] sm:$0xff] %v11500_v25  ;;  %2705 = vmatmul.bf16.gmra.mxu2 %v13342_v49  ;;  %2754 = vmatmul.bf16.gmra.mxu3 %v13342_v49  ;;  %v7592_v14 = vor.u32 %v9247_v36, %v7591_v42 }
 0x36c   :  { %2803 = vmatmul.bf16.gmra.mxu0 %v13342_v49  ;;  %2852 = vmatmul.bf16.gmra.mxu1 %v13342_v49 }
 0x36d   :  { %2924 = vmatpush.bf16.msra.mxu3 %v7592_v14  ;;  %2973 = vmatpush.bf16.msrb.mxu0 %v7468_v38 }
 0x36e   :  { %v2125_v7 = vpop.f32.mrf.mxu2  ;;  %v2174_v24 = vpop.f32.mrf.mxu3  ;;  %3022 = vmatpush.bf16.msrb.mxu1 %v7596_v17 }
 0x371   :  { %v2225_v0 = vpop.f32.mrf.mxu0  ;;  %v2274_v63 = vpop.f32.mrf.mxu1 }
 0x376   :  { %v2127_v34 = vpop.f32.mrf.mxu2  ;;  %v2176_v28 = vpop.f32.mrf.mxu3 }
 0x377   :  { %v9315_v28 = vld [vmem:[%s13319_s7 + $0x138] sm:$0xff] }
 0x378   :  { %3789 = vmatpush.bf16.msrb.mxu2 %v9315_v28  ;;  %v9314_v28 = vld [vmem:[%s13319_s7 + $0x130] sm:$0xff] }
 0x379   :  { %v2228_v42 = vpop.f32.mrf.mxu0  ;;  %v2277_v1 = vpop.f32.mrf.mxu1 }
 0x37a   :  { %v9323_v42 = vld [vmem:[%s13319_s7 + $0x178] sm:$0xff] }
 0x37b   :  { %2710 = vmatmul.bf16.gmra.mxu2 %v13342_v49  ;;  %2759 = vmatmul.bf16.gmra.mxu3 %v13342_v49 }
 0x37c   :  { %2808 = vmatmul.bf16.gmra.mxu0 %v13342_v49  ;;  %2857 = vmatmul.bf16.gmra.mxu1 %v13342_v49 }
 0x37d   :  { %3838 = vmatpush.bf16.msrb.mxu3 %v9323_v42  ;;  %v9322_v42 = vld [vmem:[%s13319_s7 + $0x170] sm:$0xff]  ;;  %3790 = vmatpush.bf16.msrb.mxu2 %v9314_v28 }
 0x37e   :  { %v2130_v36 = vpop.f32.mrf.mxu2  ;;  %v2179_v7 = vpop.f32.mrf.mxu3  ;;  %v9338_v28 = vld [vmem:[%s13319_s7 + $0x1f0] sm:$0xff] }
 0x37f   :  { %v9331_v7 = vld [vmem:[%s13319_s7 + $0x1b8] sm:$0xff] }
 0x380   :  { %3887 = vmatpush.bf16.msra.mxu0 %v9331_v7 }
 0x381   :  { %v2230_v24 = vpop.f32.mrf.mxu0  ;;  %v2279_v14 = vpop.f32.mrf.mxu1  ;;  %3839 = vmatpush.bf16.msrb.mxu3 %v9322_v42 }
 0x382   :  { %v9339_v24 = vld [vmem:[%s13319_s7 + $0x1f8] sm:$0xff] }
 0x383   :  { %3936 = vmatpush.bf16.msra.mxu1 %v9339_v24 }
 0x386   :  { %v2132_v0 = vpop.f32.mrf.mxu2  ;;  %v2181_v63 = vpop.f32.mrf.mxu3 }
 0x387   :  { %3937 = vmatpush.bf16.msra.mxu1 %v9338_v28 }
 0x389   :  { %v2233_v54 = vpop.f32.mrf.mxu0  ;;  %v2282_v3 = vpop.f32.mrf.mxu1 }
 0x38a   :  { %v11553_v54 = vld [vmem:[%s13320_s5] sm:$0xf]  ;;  %v13353_v3 = vld [vmem:[#allocation4_spill] sm:$0xff] }
 0x38b   :  { %2715 = vmatmul.bf16.gmra.mxu2 %v10739_v40  ;;  %2764 = vmatmul.bf16.gmra.mxu3 %v13352_v47 }
 0x38c   :  { %2813 = vmatmul.bf16.gmra.mxu0 %v10739_v40  ;;  %2862 = vmatmul.bf16.gmra.mxu1 %v13352_v47 }
 0x38e   :  { %v2135_v38 = vpop.f32.mrf.mxu2  ;;  %v2184_v31 = vpop.f32.mrf.mxu3 }
 0x38f   :  { %v11561_v31 = vperm.slane %v11553_v54, 1 }
 0x391   :  { %v2235_v17 = vpop.f32.mrf.mxu0  ;;  %v2284_v34 = vpop.f32.mrf.mxu1 }
 0x396   :  { %v2137_v1 = vpop.f32.mrf.mxu2  ;;  %v2186_v36 = vpop.f32.mrf.mxu3 }
 0x397   :  { %v11572_v1 = vld [vmem:[%s13321_s6] sm:$0xf] }
 0x399   :  { %v2779_v14 = vpop.f32.mrf.mxu0  ;;  %v2828_v0 = vpop.f32.mrf.mxu1 }
 0x39a   :  { %v2829_v63 = vadd.f32 %v2828_v0, %v2779_v14  ;;  %v11577_v14 = vperm.slane %v11572_v1, 1 }
 0x39b   :  { %2876 = vmatmul.bf16.vlgmr.msra.gmra.mxu2 %v10164_v29  ;;  %2925 = vmatmul.bf16.vlgmr.msra.gmra.mxu3 %v10166_v41 }
 0x39c   :  { %v3065_v38 = vadd.f32 %v2829_v63, %v13353_v3  ;;  %2974 = vmatmul.bf16.vlgmr.msrb.gmra.mxu0 %v10164_v29  ;;  %3023 = vmatmul.bf16.vlgmr.msrb.gmra.mxu1 %v10166_v41  ;;  %v11580_v63 = vperm.slane %v11553_v54, 0 }
 0x39e   :  { %v2681_v17 = vpop.f32.mrf.mxu2  ;;  %v2730_v34 = vpop.f32.mrf.mxu3  ;;  %v3139_v24 = vmul.f32 %v11561_v31, %v3065_v38  ;;  %v9330_v38 = vld [vmem:[%s13319_s7 + $0x1b0] sm:$0xff] }
 0x39f   :  { %v2731_v29 = vadd.f32 %v2730_v34, %v2681_v17  ;;  %3888 = vmatpush.bf16.msra.mxu0 %v9330_v38 }
 0x3a0   :  { %v11584_v25 = vadd.f32 %v11577_v14, %v3139_v24 }
 0x3a1   :  { %v3064_v41 = vadd.f32 %v2731_v29, %v11038_v57  ;;  %v2781_v36 = vpop.f32.mrf.mxu0  ;;  %v2830_v7 = vpop.f32.mrf.mxu1  ;;  %v11595_v29 = vperm.slane %v11572_v1, 0 }
 0x3a2   :  { %v2831_v0 = vadd.f32 %v2830_v7, %v2781_v36  ;;  %13354 = vst [vmem:[#allocation2_spill] sm:$0xff] %v11584_v25 }
 0x3a3   :  { %v3138_v42 = vmul.f32 %v11580_v63, %v3064_v41 }
 0x3a4   :  { %v3069_v3 = vadd.f32 %v2831_v0, %v11041_v55 }
 0x3a5   :  { %v11601_v9 = vadd.f32 %v11595_v29, %v3138_v42  ;;  %v9313_v42 = vld [vmem:[%s13319_s7 + $0x128] sm:$0xff] }
 0x3a6   :  { %v3143_v17 = vmul.f32 %v11561_v31, %v3069_v3  ;;  %v2683_v34 = vpop.f32.mrf.mxu2  ;;  %v2732_v57 = vpop.f32.mrf.mxu3  ;;  %v13337_v3 = vmax.f32 %v11584_v25, 0.0  ;;  %3791 = vmatpush.bf16.msrb.mxu2 %v9313_v42 }
 0x3a7   :  { %v2733_v55 = vadd.f32 %v2732_v57, %v2683_v34 }
 0x3a8   :  { %v3217_v36 = vadd.f32 %v11577_v14, %v3143_v17 }
 0x3a9   :  { %v3068_v7 = vadd.f32 %v2733_v55, %v11056_v46  ;;  %v2784_v24 = vpop.f32.mrf.mxu0  ;;  %v2833_v0 = vpop.f32.mrf.mxu1  ;;  %v9321_v55 = vld [vmem:[%s13319_s7 + $0x168] sm:$0xff] }
 0x3aa   :  { %v3281_v58 = vmax.f32 %v3217_v36, 0.0  ;;  %v2834_v4 = vadd.f32 %v2833_v0, %v2784_v24  ;;  %3840 = vmatpush.bf16.msrb.mxu3 %v9321_v55  ;;  %v9337_v55 = vld [vmem:[%s13319_s7 + $0x1e8] sm:$0xff] }
 0x3ab   :  { %v3142_v41 = vmul.f32 %v11580_v63, %v3068_v7  ;;  %2881 = vmatmul.bf16.gmra.mxu2 %v10214_v30  ;;  %2930 = vmatmul.bf16.gmra.mxu3 %v10216_v21 }
 0x3ac   :  { %v11608_v17 = vpack.c.bf16 %v3281_v58, %v13337_v3  ;;  %v3073_v46 = vadd.f32 %v2834_v4, %v11061_v45  ;;  %2979 = vmatmul.bf16.gmra.mxu0 %v10214_v30  ;;  %3028 = vmatmul.bf16.gmra.mxu1 %v10216_v21  ;;  %v3276_v45 = vmax.f32 %v11601_v9, 0.0 }
 0x3ad   :  { %v3216_v34 = vadd.f32 %v11595_v29, %v3142_v41  ;;  %3938 = vmatpush.bf16.msra.mxu1 %v9337_v55 }
 0x3ae   :  { %v3147_v57 = vmul.f32 %v11561_v31, %v3073_v46  ;;  %v2686_v38 = vpop.f32.mrf.mxu2  ;;  %v2735_v28 = vpop.f32.mrf.mxu3 }
 0x3af   :  { %v3280_v4 = vmax.f32 %v3216_v34, 0.0  ;;  %v2736_v30 = vadd.f32 %v2735_v28, %v2686_v38 }
 0x3b0   :  { %v3221_v21 = vadd.f32 %v11577_v14, %v3147_v57 }
 0x3b1   :  { %v11625_v36 = vpack.c.bf16 %v3280_v4, %v3276_v45  ;;  %v3072_v7 = vadd.f32 %v2736_v30, %v11078_v2  ;;  %v2786_v24 = vpop.f32.mrf.mxu0  ;;  %v2835_v0 = vpop.f32.mrf.mxu1  ;;  %v9329_v2 = vld [vmem:[%s13319_s7 + $0x1a8] sm:$0xff] }
 0x3b2   :  { %v2836_v41 = vadd.f32 %v2835_v0, %v2786_v24  ;;  %v3285_v46 = vmax.f32 %v3221_v21, 0.0  ;;  %3889 = vmatpush.bf16.msra.mxu0 %v9329_v2  ;;  %v9312_v2 = vld [vmem:[%s13319_s7 + $0x120] sm:$0xff] }
 0x3b3   :  { %v3146_v3 = vmul.f32 %v11580_v63, %v3072_v7  ;;  %3792 = vmatpush.bf16.msrb.mxu2 %v9312_v2 }
 0x3b4   :  { %v3077_v25 = vadd.f32 %v2836_v41, %v11081_v22  ;;  %v11630_v34 = vpack.c.bf16 %v3285_v46, %v3281_v58 }
 0x3b5   :  { %v3220_v38 = vadd.f32 %v11595_v29, %v3146_v3 }
 0x3b6   :  { %v3151_v57 = vmul.f32 %v11561_v31, %v3077_v25  ;;  %v2688_v28 = vpop.f32.mrf.mxu2  ;;  %v2737_v42 = vpop.f32.mrf.mxu3 }
 0x3b7   :  { %v2738_v30 = vadd.f32 %v2737_v42, %v2688_v28  ;;  %v3284_v21 = vmax.f32 %v3220_v38, 0.0 }
 0x3b8   :  { %v3225_v22 = vadd.f32 %v11577_v14, %v3151_v57 }
 0x3b9   :  { %v3076_v58 = vadd.f32 %v2738_v30, %v11096_v48  ;;  %v2789_v3 = vpop.f32.mrf.mxu0  ;;  %v2838_v25 = vpop.f32.mrf.mxu1  ;;  %v11642_v7 = vpack.c.bf16 %v3284_v21, %v3280_v4 }
 0x3ba   :  { %v2839_v24 = vadd.f32 %v2838_v25, %v2789_v3  ;;  %v3289_v0 = vmax.f32 %v3225_v22, 0.0 }
 0x3bb   :  { %v3150_v41 = vmul.f32 %v11580_v63, %v3076_v58  ;;  %2886 = vmatmul.bf16.gmra.mxu2 %v10288_v27  ;;  %2935 = vmatmul.bf16.gmra.mxu3 %v10290_v39 }
 0x3bc   :  { %v3081_v38 = vadd.f32 %v2839_v24, %v11101_v43  ;;  %2984 = vmatmul.bf16.gmra.mxu0 %v10288_v27  ;;  %3033 = vmatmul.bf16.gmra.mxu1 %v10290_v39  ;;  %v11650_v57 = vpack.c.bf16 %v3289_v0, %v3285_v46  ;;  %v9320_v43 = vld [vmem:[%s13319_s7 + $0x160] sm:$0xff] }
 0x3bd   :  { %v3224_v48 = vadd.f32 %v11595_v29, %v3150_v41  ;;  %3841 = vmatpush.bf16.msrb.mxu3 %v9320_v43 }
 0x3be   :  { %v3155_v4 = vmul.f32 %v11561_v31, %v3081_v38  ;;  %v2691_v28 = vpop.f32.mrf.mxu2  ;;  %v2740_v42 = vpop.f32.mrf.mxu3 }
 0x3bf   :  { %v2741_v55 = vadd.f32 %v2740_v42, %v2691_v28  ;;  %v3288_v27 = vmax.f32 %v3224_v48, 0.0 }
 0x3c0   :  { %v3229_v39 = vadd.f32 %v11577_v14, %v3155_v4 }
 0x3c1   :  { %v3080_v46 = vadd.f32 %v2741_v55, %v11118_v20  ;;  %v2791_v30 = vpop.f32.mrf.mxu0  ;;  %v2840_v22 = vpop.f32.mrf.mxu1  ;;  %v11662_v58 = vpack.c.bf16 %v3288_v27, %v3284_v21  ;;  %v9328_v20 = vld [vmem:[%s13319_s7 + $0x1a0] sm:$0xff] }
 0x3c2   :  { %v2841_v3 = vadd.f32 %v2840_v22, %v2791_v30  ;;  %v3293_v25 = vmax.f32 %v3229_v39, 0.0  ;;  %v9336_v21 = vld [vmem:[%s13319_s7 + $0x1e0] sm:$0xff]  ;;  %3890 = vmatpush.bf16.msra.mxu0 %v9328_v20 }
 0x3c3   :  { %v3154_v24 = vmul.f32 %v11580_v63, %v3080_v46  ;;  %3939 = vmatpush.bf16.msra.mxu1 %v9336_v21 }
 0x3c4   :  { %v3085_v41 = vadd.f32 %v2841_v3, %v11121_v13  ;;  %v11666_v38 = vpack.c.bf16 %v3293_v25, %v3289_v0 }
 0x3c5   :  { %v3228_v48 = vadd.f32 %v11595_v29, %v3154_v24  ;;  %v13355_v24 = vld [vmem:[#allocation5_spill] sm:$0xff] }
 0x3c6   :  { %v3159_v28 = vmul.f32 %v11561_v31, %v3085_v41  ;;  %v2693_v42 = vpop.f32.mrf.mxu2  ;;  %v2742_v4 = vpop.f32.mrf.mxu3 }
 0x3c7   :  { %v2743_v2 = vadd.f32 %v2742_v4, %v2693_v42  ;;  %v3292_v43 = vmax.f32 %v3228_v48, 0.0 }
 0x3c8   :  { %v3233_v13 = vadd.f32 %v11577_v14, %v3159_v28 }
 0x3c9   :  { %v3084_v0 = vadd.f32 %v2743_v2, %v11136_v61  ;;  %v2794_v55 = vpop.f32.mrf.mxu0  ;;  %v2843_v39 = vpop.f32.mrf.mxu1  ;;  %v11678_v46 = vpack.c.bf16 %v3292_v43, %v3288_v27  ;;  %v9311_v61 = vld [vmem:[%s13319_s7 + $0x118] sm:$0xff]  ;;  %v13356_v2 = vld [vmem:[#allocation6_spill] sm:$0xff] }
 0x3ca   :  { %v2844_v30 = vadd.f32 %v2843_v39, %v2794_v55  ;;  %v3297_v22 = vmax.f32 %v3233_v13, 0.0  ;;  %v9319_v27 = vld [vmem:[%s13319_s7 + $0x158] sm:$0xff]  ;;  %3793 = vmatpush.bf16.msrb.mxu2 %v9311_v61 }
 0x3cb   :  { %v3158_v3 = vmul.f32 %v11580_v63, %v3084_v0  ;;  %2891 = vmatmul.bf16.gmra.mxu2 %v10338_v37  ;;  %2940 = vmatmul.bf16.gmra.mxu3 %v10340_v5  ;;  %v9335_v39 = vld [vmem:[%s13319_s7 + $0x1d8] sm:$0xff] }
 0x3cc   :  { %v3089_v41 = vadd.f32 %v2844_v30, %v13355_v24  ;;  %2989 = vmatmul.bf16.gmra.mxu0 %v10338_v37  ;;  %3038 = vmatmul.bf16.gmra.mxu1 %v10340_v5  ;;  %v11692_v48 = vpack.c.bf16 %v3297_v22, %v3293_v25  ;;  %v9327_v25 = vld [vmem:[%s13319_s7 + $0x198] sm:$0xff] }
 0x3cd   :  { %v3232_v28 = vadd.f32 %v11595_v29, %v3158_v3  ;;  %3842 = vmatpush.bf16.msrb.mxu3 %v9319_v27  ;;  %3891 = vmatpush.bf16.msra.mxu0 %v9327_v25 }
 0x3ce   :  { %v3163_v42 = vmul.f32 %v11561_v31, %v3089_v41  ;;  %v2696_v4 = vpop.f32.mrf.mxu2  ;;  %v2745_v20 = vpop.f32.mrf.mxu3  ;;  %3940 = vmatpush.bf16.msra.mxu1 %v9335_v39 }
 0x3cf   :  { %v2746_v37 = vadd.f32 %v2745_v20, %v2696_v4  ;;  %v3296_v5 = vmax.f32 %v3232_v28, 0.0 }
 0x3d0   :  { %v3237_v21 = vadd.f32 %v11577_v14, %v3163_v42 }
 0x3d1   :  { %v3088_v13 = vadd.f32 %v2746_v37, %v13356_v2  ;;  %v2796_v0 = vpop.f32.mrf.mxu0  ;;  %v2845_v55 = vpop.f32.mrf.mxu1  ;;  %v11704_v30 = vpack.c.bf16 %v3296_v5, %v3292_v43 }
 0x3d2   :  { %v2846_v3 = vadd.f32 %v2845_v55, %v2796_v0  ;;  %v3301_v24 = vmax.f32 %v3237_v21, 0.0 }
 0x3d3   :  { %v3162_v41 = vmul.f32 %v11580_v63, %v3088_v13 }
 0x3d4   :  { %v3093_v61 = vadd.f32 %v2846_v3, %v11173_v15  ;;  %v11708_v27 = vpack.c.bf16 %v3301_v24, %v3297_v22 }
 0x3d5   :  { %v3236_v28 = vadd.f32 %v11595_v29, %v3162_v41 }
 0x3d6   :  { %v3167_v42 = vmul.f32 %v11561_v31, %v3093_v61  ;;  %v2698_v4 = vpop.f32.mrf.mxu2  ;;  %v2747_v20 = vpop.f32.mrf.mxu3 }
 0x3d7   :  { %v2748_v37 = vadd.f32 %v2747_v20, %v2698_v4  ;;  %v3300_v2 = vmax.f32 %v3236_v28, 0.0 }
 0x3d8   :  { %v3241_v43 = vadd.f32 %v11577_v14, %v3167_v42 }
 0x3d9   :  { %v3092_v21 = vadd.f32 %v2748_v37, %v11176_v16  ;;  %v2799_v0 = vpop.f32.mrf.mxu0  ;;  %v2848_v13 = vpop.f32.mrf.mxu1  ;;  %v11714_v55 = vpack.c.bf16 %v3300_v2, %v3296_v5  ;;  %v9310_v16 = vld [vmem:[%s13319_s7 + $0x110] sm:$0xff] }
 0x3da   :  { %v2849_v25 = vadd.f32 %v2848_v13, %v2799_v0  ;;  %v3305_v15 = vmax.f32 %v3241_v43, 0.0  ;;  %v9318_v5 = vld [vmem:[%s13319_s7 + $0x150] sm:$0xff]  ;;  %3794 = vmatpush.bf16.msrb.mxu2 %v9310_v16 }
 0x3db   :  { %v3166_v22 = vmul.f32 %v11580_v63, %v3092_v21  ;;  %2896 = vmatmul.bf16.gmra.mxu2 %v10928_v33  ;;  %2945 = vmatmul.bf16.gmra.mxu3 %v10932_v18  ;;  %v9334_v43 = vld [vmem:[%s13319_s7 + $0x1d0] sm:$0xff] }
 0x3dc   :  { %v3097_v39 = vadd.f32 %v2849_v25, %v11181_v32  ;;  %2994 = vmatmul.bf16.gmra.mxu0 %v10928_v33  ;;  %3043 = vmatmul.bf16.gmra.mxu1 %v10932_v18  ;;  %v11728_v3 = vpack.c.bf16 %v3305_v15, %v3301_v24  ;;  %v9326_v24 = vld [vmem:[%s13319_s7 + $0x190] sm:$0xff] }
 0x3dd   :  { %v3240_v41 = vadd.f32 %v11595_v29, %v3166_v22  ;;  %3843 = vmatpush.bf16.msrb.mxu3 %v9318_v5  ;;  %3892 = vmatpush.bf16.msra.mxu0 %v9326_v24 }
 0x3de   :  { %v3171_v61 = vmul.f32 %v11561_v31, %v3097_v39  ;;  %v2701_v28 = vpop.f32.mrf.mxu2  ;;  %v2750_v32 = vpop.f32.mrf.mxu3  ;;  %3941 = vmatpush.bf16.msra.mxu1 %v9334_v43 }
 0x3df   :  { %v2751_v33 = vadd.f32 %v2750_v32, %v2701_v28  ;;  %v3304_v18 = vmax.f32 %v3240_v41, 0.0 }
 0x3e0   :  { %v3245_v42 = vadd.f32 %v11577_v14, %v3171_v61 }
 0x3e1   :  { %v3096_v4 = vadd.f32 %v2751_v33, %v11198_v62  ;;  %v2801_v20 = vpop.f32.mrf.mxu0  ;;  %v2850_v37 = vpop.f32.mrf.mxu1  ;;  %v11740_v21 = vpack.c.bf16 %v3304_v18, %v3300_v2 }
 0x3e2   :  { %v2851_v0 = vadd.f32 %v2850_v37, %v2801_v20  ;;  %v3309_v13 = vmax.f32 %v3245_v42, 0.0 }
 0x3e3   :  { %v3170_v25 = vmul.f32 %v11580_v63, %v3096_v4 }
 0x3e4   :  { %v3101_v62 = vadd.f32 %v2851_v0, %v11213_v56  ;;  %v11744_v22 = vpack.c.bf16 %v3309_v13, %v3305_v15  ;;  %v9325_v0 = vld [vmem:[%s13319_s7 + $0x188] sm:$0xff] }
 0x3e5   :  { %v3244_v39 = vadd.f32 %v11595_v29, %v3170_v25  ;;  %3893 = vmatpush.bf16.msra.mxu0 %v9325_v0 }
 0x3e6   :  { %v3175_v16 = vmul.f32 %v11561_v31, %v3101_v62  ;;  %v2703_v5 = vpop.f32.mrf.mxu2  ;;  %v2752_v41 = vpop.f32.mrf.mxu3  ;;  %v9317_v31 = vld [vmem:[%s13319_s7 + $0x148] sm:$0xff] }
 0x3e7   :  { %v2753_v61 = vadd.f32 %v2752_v41, %v2703_v5  ;;  %v3308_v28 = vmax.f32 %v3244_v39, 0.0  ;;  %3844 = vmatpush.bf16.msrb.mxu3 %v9317_v31  ;;  %v9308_v39 = vld [vmem:[%s13319_s7 + $0x100] sm:$0xff] }
 0x3e8   :  { %v11749_v2 = vadd.f32 %v11577_v14, %v3175_v16  ;;  %v9316_v16 = vld [vmem:[%s13319_s7 + $0x140] sm:$0xff] }
 0x3e9   :  { %v3100_v32 = vadd.f32 %v2753_v61, %v11216_v59  ;;  %v2804_v33 = vpop.f32.mrf.mxu0  ;;  %v2853_v42 = vpop.f32.mrf.mxu1  ;;  %v11752_v4 = vpack.c.bf16 %v3308_v28, %v3304_v18  ;;  %v9309_v59 = vld [vmem:[%s13319_s7 + $0x108] sm:$0xff] }
 0x3ea   :  { %v3313_v56 = vmax.f32 %v11749_v2, 0.0  ;;  %3795 = vmatpush.bf16.msrb.mxu2 %v9309_v59 }
 0x3eb   :  { %v3174_v15 = vmul.f32 %v11580_v63, %v3100_v32  ;;  %2901 = vmatmul.bf16.gmra.mxu2 %v13342_v49  ;;  %2950 = vmatmul.bf16.gmra.mxu3 %v13342_v49 }
 0x3ec   :  { %2999 = vmatmul.bf16.gmra.mxu0 %v13342_v49  ;;  %3048 = vmatmul.bf16.gmra.mxu1 %v13342_v49  ;;  %v11768_v14 = vpack.c.bf16 %v3313_v56, %v3309_v13  ;;  %v9333_v13 = vld [vmem:[%s13319_s7 + $0x1c8] sm:$0xff] }
 0x3ed   :  { %v11771_v63 = vadd.f32 %v11595_v29, %v3174_v15  ;;  %3942 = vmatpush.bf16.msra.mxu1 %v9333_v13  ;;  %3845 = vmatpush.bf16.msrb.mxu3 %v9316_v16  ;;  %v9307_v16 = vld [vmem:[%s13319_s7 + $0xf8] sm:$0xff] }
 0x3ee   :  { %v2706_v18 = vpop.f32.mrf.mxu2  ;;  %v2755_v20 = vpop.f32.mrf.mxu3  ;;  %3796 = vmatpush.bf16.msrb.mxu2 %v9308_v39  ;;  %v9299_v39 = vld [vmem:[%s13319_s7 + $0xb8] sm:$0xff] }
 0x3ef   :  { %v3312_v37 = vmax.f32 %v11771_v63, 0.0  ;;  %v9332_v18 = vld [vmem:[%s13319_s7 + $0x1c0] sm:$0xff] }
 0x3f0   :  { %v9324_v20 = vld [vmem:[%s13319_s7 + $0x180] sm:$0xff] }
 0x3f1   :  { %v2806_v24 = vpop.f32.mrf.mxu0  ;;  %v2855_v43 = vpop.f32.mrf.mxu1  ;;  %v11782_v29 = vpack.c.bf16 %v3312_v37, %v3308_v28  ;;  %3943 = vmatpush.bf16.msra.mxu1 %v9332_v18  ;;  %3894 = vmatpush.bf16.msra.mxu0 %v9324_v20  ;;  %v11830_v18 = vperm.slane %v11572_v1, 3 }
 0x3f5   :  { %4275 = vmatpush.bf16.msrb.mxu0 %v9299_v39  ;;  %4324 = vmatpush.bf16.msrb.mxu1 %v9307_v16  ;;  %v11849_v39 = vperm.slane %v11572_v1, 2 }
 0x3f6   :  { %v2708_v25 = vpop.f32.mrf.mxu2  ;;  %v2757_v62 = vpop.f32.mrf.mxu3 }
 0x3f7   :  { %v9283_v25 = vld [vmem:[%s13319_s7 + $0x38] sm:$0xff] }
 0x3f8   :  { %4177 = vmatpush.bf16.msra.mxu2 %v9283_v25 }
 0x3f9   :  { %v2809_v5 = vpop.f32.mrf.mxu0  ;;  %v2858_v41 = vpop.f32.mrf.mxu1 }
 0x3fb   :  { %2906 = vmatmul.bf16.gmra.mxu2 %v13342_v49  ;;  %2955 = vmatmul.bf16.gmra.mxu3 %v13342_v49 }
 0x3fc   :  { %3004 = vmatmul.bf16.gmra.mxu0 %v13342_v49  ;;  %3053 = vmatmul.bf16.gmra.mxu1 %v13342_v49 }
 0x3fe   :  { %v2711_v61 = vpop.f32.mrf.mxu2  ;;  %v2760_v28 = vpop.f32.mrf.mxu3 }
 0x401   :  { %v2811_v32 = vpop.f32.mrf.mxu0  ;;  %v2860_v33 = vpop.f32.mrf.mxu1 }
 0x402   :  { %v11820_v32 = vperm.slane %v11553_v54, 3 }
 0x406   :  { %v2713_v42 = vpop.f32.mrf.mxu2  ;;  %v2762_v15 = vpop.f32.mrf.mxu3 }
 0x407   :  { %v9282_v15 = vld [vmem:[%s13319_s7 + $0x30] sm:$0xff] }
 0x408   :  { %4178 = vmatpush.bf16.msra.mxu2 %v9282_v15 }
 0x409   :  { %v2814_v59 = vpop.f32.mrf.mxu0  ;;  %v2863_v31 = vpop.f32.mrf.mxu1 }
 0x40a   :  { %v9290_v59 = vld [vmem:[%s13319_s7 + $0x70] sm:$0xff] }
 0x40b   :  { %2911 = vmatmul.bf16.gmra.mxu2 %v10739_v40  ;;  %2960 = vmatmul.bf16.gmra.mxu3 %v13352_v47 }
 0x40c   :  { %3009 = vmatmul.bf16.gmra.mxu0 %v10739_v40  ;;  %3058 = vmatmul.bf16.gmra.mxu1 %v13352_v47  ;;  %v9291_v40 = vld [vmem:[%s13319_s7 + $0x78] sm:$0xff] }
 0x40d   :  { %4226 = vmatpush.bf16.msra.mxu3 %v9291_v40 }
 0x40e   :  { %v2716_v24 = vpop.f32.mrf.mxu2  ;;  %v2765_v43 = vpop.f32.mrf.mxu3 }
 0x40f   :  { %v11834_v43 = vperm.slane %v11553_v54, 2 }
 0x411   :  { %v2816_v0 = vpop.f32.mrf.mxu0  ;;  %v2865_v13 = vpop.f32.mrf.mxu1  ;;  %4227 = vmatpush.bf16.msra.mxu3 %v9290_v59 }
 0x416   :  { %v2718_v47 = vpop.f32.mrf.mxu2  ;;  %v2767_v62 = vpop.f32.mrf.mxu3 }
 0x417   :  { %v9298_v62 = vld [vmem:[%s13319_s7 + $0xb0] sm:$0xff] }
 0x418   :  { %4276 = vmatpush.bf16.msrb.mxu0 %v9298_v62 }
 0x419   :  { %v2975_v5 = vpop.f32.mrf.mxu0  ;;  %v3024_v41 = vpop.f32.mrf.mxu1 }
 0x41a   :  { %v3025_v61 = vadd.f32 %v3024_v41, %v2975_v5 }
 0x41b   :  { %3797 = vmatmul.bf16.vlgmr.msrb.gmra.mxu2 %v11625_v36  ;;  %3846 = vmatmul.bf16.vlgmr.msrb.gmra.mxu3 %v11608_v17 }
 0x41c   :  { %v3067_v28 = vadd.f32 %v3025_v61, %v11305_v11 }
 0x41e   :  { %v2877_v33 = vpop.f32.mrf.mxu2  ;;  %v2926_v42 = vpop.f32.mrf.mxu3  ;;  %v3141_v11 = vmul.f32 %v11820_v32, %v3067_v28 }
 0x41f   :  { %v2927_v31 = vadd.f32 %v2926_v42, %v2877_v33 }
 0x420   :  { %v11838_v13 = vadd.f32 %v11830_v18, %v3141_v11 }
 0x421   :  { %v2977_v36 = vpop.f32.mrf.mxu0  ;;  %v3026_v17 = vpop.f32.mrf.mxu1  ;;  %v3066_v24 = vadd.f32 %v2927_v31, %v11322_v50  ;;  %v9306_v50 = vld [vmem:[%s13319_s7 + $0xf0] sm:$0xff] }
 0x422   :  { %v3027_v20 = vadd.f32 %v3026_v17, %v2977_v36  ;;  %4325 = vmatpush.bf16.msrb.mxu1 %v9306_v50  ;;  %v3279_v28 = vmax.f32 %v11838_v13, 0.0  ;;  %v9361_v13 = vld [vmem:[%s13319_s7 + $0x2a8] sm:$0xff] }
 0x423   :  { %v3140_v54 = vmul.f32 %v11834_v43, %v3066_v24 }
 0x424   :  { %v3071_v0 = vadd.f32 %v3027_v20, %v11325_v6  ;;  %v9281_v20 = vld [vmem:[%s13319_s7 + $0x28] sm:$0xff] }
 0x425   :  { %v11855_v15 = vadd.f32 %v11849_v39, %v3140_v54  ;;  %4179 = vmatpush.bf16.msra.mxu2 %v9281_v20 }
 0x426   :  { %v3145_v25 = vmul.f32 %v11820_v32, %v3071_v0  ;;  %v2879_v40 = vpop.f32.mrf.mxu2  ;;  %v2928_v47 = vpop.f32.mrf.mxu3 }
 0x427   :  { %v2929_v6 = vadd.f32 %v2928_v47, %v2879_v40 }
 0x428   :  { %v3219_v16 = vadd.f32 %v11830_v18, %v3145_v25 }
 0x429   :  { %v3070_v5 = vadd.f32 %v2929_v6, %v11340_v60  ;;  %v2980_v41 = vpop.f32.mrf.mxu0  ;;  %v3029_v61 = vpop.f32.mrf.mxu1 }
 0x42a   :  { %v3283_v33 = vmax.f32 %v3219_v16, 0.0  ;;  %v3030_v42 = vadd.f32 %v3029_v61, %v2980_v41 }
 0x42b   :  { %v3144_v59 = vmul.f32 %v11834_v43, %v3070_v5  ;;  %3802 = vmatmul.bf16.gmra.mxu2 %v11662_v58  ;;  %3851 = vmatmul.bf16.gmra.mxu3 %v11650_v57  ;;  %v9289_v57 = vld [vmem:[%s13319_s7 + $0x68] sm:$0xff]  ;;  %v3278_v58 = vmax.f32 %v11855_v15, 0.0 }
 0x42c   :  { %v3503_v1 = vpack.c.bf16 %v3283_v33, %v3279_v28  ;;  %v3075_v60 = vadd.f32 %v3030_v42, %v11345_v10  ;;  %4228 = vmatpush.bf16.msra.mxu3 %v9289_v57 }
 0x42d   :  { %v3218_v31 = vadd.f32 %v11849_v39, %v3144_v59 }
 0x42e   :  { %v3149_v36 = vmul.f32 %v11820_v32, %v3075_v60  ;;  %3944 = vmatmul.bf16.vlgmr.msra.gmra.mxu1 %v3503_v1  ;;  %v2882_v17 = vpop.f32.mrf.mxu2  ;;  %v2931_v11 = vpop.f32.mrf.mxu3  ;;  %v9305_v1 = vld [vmem:[%s13319_s7 + $0xe8] sm:$0xff] }
 0x42f   :  { %v3282_v24 = vmax.f32 %v3218_v31, 0.0  ;;  %v2932_v0 = vadd.f32 %v2931_v11, %v2882_v17  ;;  %4326 = vmatpush.bf16.msrb.mxu1 %v9305_v1 }
 0x430   :  { %v3223_v10 = vadd.f32 %v11830_v18, %v3149_v36 }
 0x431   :  { %v3502_v25 = vpack.c.bf16 %v3282_v24, %v3278_v58  ;;  %v3074_v40 = vadd.f32 %v2932_v0, %v11362_v12  ;;  %v2982_v47 = vpop.f32.mrf.mxu0  ;;  %v3031_v62 = vpop.f32.mrf.mxu1  ;;  %v9297_v12 = vld [vmem:[%s13319_s7 + $0xa8] sm:$0xff] }
 0x432   :  { %v3032_v50 = vadd.f32 %v3031_v62, %v2982_v47  ;;  %v3287_v54 = vmax.f32 %v3223_v10, 0.0  ;;  %4277 = vmatpush.bf16.msrb.mxu0 %v9297_v12 }
 0x433   :  { %v3148_v6 = vmul.f32 %v11834_v43, %v3074_v40  ;;  %3895 = vmatmul.bf16.vlgmr.msra.gmra.mxu0 %v3502_v25 }
 0x434   :  { %v3079_v16 = vadd.f32 %v3032_v50, %v11365_v51  ;;  %v11878_v5 = vpack.c.bf16 %v3287_v54, %v3283_v33 }
 0x435   :  { %v3222_v41 = vadd.f32 %v11849_v39, %v3148_v6 }
 0x436   :  { %v3153_v61 = vmul.f32 %v11820_v32, %v3079_v16  ;;  %v2884_v42 = vpop.f32.mrf.mxu2  ;;  %v2933_v59 = vpop.f32.mrf.mxu3 }
 0x437   :  { %v2934_v60 = vadd.f32 %v2933_v59, %v2884_v42  ;;  %v3286_v31 = vmax.f32 %v3222_v41, 0.0 }
 0x438   :  { %v3227_v51 = vadd.f32 %v11830_v18, %v3153_v61 }
 0x439   :  { %v3078_v33 = vadd.f32 %v2934_v60, %v11380_v44  ;;  %v2985_v36 = vpop.f32.mrf.mxu0  ;;  %v3034_v17 = vpop.f32.mrf.mxu1  ;;  %v11890_v11 = vpack.c.bf16 %v3286_v31, %v3282_v24  ;;  %v9280_v24 = vld [vmem:[%s13319_s7 + $0x20] sm:$0xff] }
 0x43a   :  { %v3035_v20 = vadd.f32 %v3034_v17, %v2985_v36  ;;  %v3291_v57 = vmax.f32 %v3227_v51, 0.0  ;;  %4180 = vmatpush.bf16.msra.mxu2 %v9280_v24 }
 0x43b   :  { %v3152_v0 = vmul.f32 %v11834_v43, %v3078_v33  ;;  %3807 = vmatmul.bf16.gmra.mxu2 %v11704_v30  ;;  %3856 = vmatmul.bf16.gmra.mxu3 %v11692_v48  ;;  %v9288_v30 = vld [vmem:[%s13319_s7 + $0x60] sm:$0xff] }
 0x43c   :  { %v3083_v10 = vadd.f32 %v3035_v20, %v11385_v26  ;;  %v3507_v25 = vpack.c.bf16 %v3291_v57, %v3287_v54  ;;  %4229 = vmatpush.bf16.msra.mxu3 %v9288_v30 }
 0x43d   :  { %v3226_v40 = vadd.f32 %v11849_v39, %v3152_v0 }
 0x43e   :  { %v3157_v47 = vmul.f32 %v11820_v32, %v3083_v10  ;;  %3949 = vmatmul.bf16.gmra.mxu1 %v3507_v25  ;;  %v2887_v44 = vpop.f32.mrf.mxu2  ;;  %v2936_v62 = vpop.f32.mrf.mxu3 }
 0x43f   :  { %v2937_v50 = vadd.f32 %v2936_v62, %v2887_v44  ;;  %v3290_v48 = vmax.f32 %v3226_v40, 0.0  ;;  %v9279_v62 = vld [vmem:[%s13319_s7 + $0x18] sm:$0xff] }
 0x440   :  { %v3231_v26 = vadd.f32 %v11830_v18, %v3157_v47  ;;  %4181 = vmatpush.bf16.msra.mxu2 %v9279_v62 }
 0x441   :  { %v3082_v54 = vadd.f32 %v2937_v50, %v11402_v35  ;;  %v2987_v6 = vpop.f32.mrf.mxu0  ;;  %v3036_v16 = vpop.f32.mrf.mxu1  ;;  %v3506_v41 = vpack.c.bf16 %v3290_v48, %v3286_v31  ;;  %v9296_v35 = vld [vmem:[%s13319_s7 + $0xa0] sm:$0xff] }
 0x442   :  { %v3037_v61 = vadd.f32 %v3036_v16, %v2987_v6  ;;  %v3295_v42 = vmax.f32 %v3231_v26, 0.0  ;;  %v9304_v31 = vld [vmem:[%s13319_s7 + $0xe0] sm:$0xff]  ;;  %4278 = vmatpush.bf16.msrb.mxu0 %v9296_v35 }
 0x443   :  { %v3156_v59 = vmul.f32 %v11834_v43, %v3082_v54  ;;  %3900 = vmatmul.bf16.gmra.mxu0 %v3506_v41  ;;  %4327 = vmatpush.bf16.msrb.mxu1 %v9304_v31 }
 0x444   :  { %v3087_v12 = vadd.f32 %v3037_v61, %v11405_v52  ;;  %v11908_v1 = vpack.c.bf16 %v3295_v42, %v3291_v57 }
 0x445   :  { %v3230_v60 = vadd.f32 %v11849_v39, %v3156_v59 }
 0x446   :  { %v3161_v51 = vmul.f32 %v11820_v32, %v3087_v12  ;;  %v2889_v33 = vpop.f32.mrf.mxu2  ;;  %v2938_v36 = vpop.f32.mrf.mxu3 }
 0x447   :  { %v2939_v17 = vadd.f32 %v2938_v36, %v2889_v33  ;;  %v3294_v20 = vmax.f32 %v3230_v60, 0.0  ;;  %v9295_v60 = vld [vmem:[%s13319_s7 + $0x98] sm:$0xff] }
 0x448   :  { %v3235_v52 = vadd.f32 %v11830_v18, %v3161_v51  ;;  %v9303_v51 = vld [vmem:[%s13319_s7 + $0xd8] sm:$0xff]  ;;  %4279 = vmatpush.bf16.msrb.mxu0 %v9295_v60 }
 0x449   :  { %v3086_v57 = vadd.f32 %v2939_v17, %v11420_v8  ;;  %v2990_v0 = vpop.f32.mrf.mxu0  ;;  %v3039_v10 = vpop.f32.mrf.mxu1  ;;  %v11920_v25 = vpack.c.bf16 %v3294_v20, %v3290_v48  ;;  %v9287_v8 = vld [vmem:[%s13319_s7 + $0x58] sm:$0xff]  ;;  %4328 = vmatpush.bf16.msrb.mxu1 %v9303_v51 }
 0x44a   :  { %v3040_v40 = vadd.f32 %v3039_v10, %v2990_v0  ;;  %v3299_v47 = vmax.f32 %v3235_v52, 0.0  ;;  %4230 = vmatpush.bf16.msra.mxu3 %v9287_v8  ;;  %v13357_v0 = vld [vmem:[#allocation7_spill] sm:$0xff] }
 0x44b   :  { %v3160_v44 = vmul.f32 %v11834_v43, %v3086_v57  ;;  %3812 = vmatmul.bf16.gmra.mxu2 %v11740_v21  ;;  %3861 = vmatmul.bf16.gmra.mxu3 %v11728_v3 }
 0x44c   :  { %v3091_v24 = vadd.f32 %v3040_v40, %v11425_v53  ;;  %v3511_v30 = vpack.c.bf16 %v3299_v47, %v3295_v42 }
 0x44d   :  { %v3234_v50 = vadd.f32 %v11849_v39, %v3160_v44 }
 0x44e   :  { %v3165_v48 = vmul.f32 %v11820_v32, %v3091_v24  ;;  %3954 = vmatmul.bf16.gmra.mxu1 %v3511_v30  ;;  %v2892_v21 = vpop.f32.mrf.mxu2  ;;  %v2941_v3 = vpop.f32.mrf.mxu3  ;;  %v9278_v24 = vld [vmem:[%s13319_s7 + $0x10] sm:$0xff] }
 0x44f   :  { %v2942_v26 = vadd.f32 %v2941_v3, %v2892_v21  ;;  %v3298_v54 = vmax.f32 %v3234_v50, 0.0  ;;  %v9286_v30 = vld [vmem:[%s13319_s7 + $0x50] sm:$0xff]  ;;  %4182 = vmatpush.bf16.msra.mxu2 %v9278_v24 }
 0x450   :  { %v3239_v6 = vadd.f32 %v11830_v18, %v3165_v48  ;;  %v13358_v50 = vld [vmem:[#allocation8_spill] sm:$0xff]  ;;  %4231 = vmatpush.bf16.msra.mxu3 %v9286_v30 }
 0x451   :  { %v3090_v16 = vadd.f32 %v2942_v26, %v11442_v19  ;;  %v2992_v41 = vpop.f32.mrf.mxu0  ;;  %v3041_v61 = vpop.f32.mrf.mxu1  ;;  %v3510_v59 = vpack.c.bf16 %v3298_v54, %v3294_v20 }
 0x452   :  { %v3042_v53 = vadd.f32 %v3041_v61, %v2992_v41  ;;  %v3303_v42 = vmax.f32 %v3239_v6, 0.0  ;;  %v13359_v41 = vld [vmem:[#allocation3_spill] sm:$0xff] }
 0x453   :  { %v3164_v12 = vmul.f32 %v11834_v43, %v3090_v16  ;;  %3905 = vmatmul.bf16.gmra.mxu0 %v3510_v59 }
 0x454   :  { %v3095_v33 = vadd.f32 %v3042_v53, %v11457_v23  ;;  %v11944_v36 = vpack.c.bf16 %v3303_v42, %v3299_v47 }
 0x455   :  { %v3238_v19 = vadd.f32 %v11849_v39, %v3164_v12 }
 0x456   :  { %v3169_v35 = vmul.f32 %v11820_v32, %v3095_v33  ;;  %v2894_v31 = vpop.f32.mrf.mxu2  ;;  %v2943_v17 = vpop.f32.mrf.mxu3  ;;  %v9294_v33 = vld [vmem:[%s13319_s7 + $0x90] sm:$0xff] }
 0x457   :  { %v2944_v20 = vadd.f32 %v2943_v17, %v2894_v31  ;;  %v3302_v52 = vmax.f32 %v3238_v19, 0.0  ;;  %v9302_v19 = vld [vmem:[%s13319_s7 + $0xd0] sm:$0xff]  ;;  %4280 = vmatpush.bf16.msrb.mxu0 %v9294_v33 }
 0x458   :  { %v3243_v57 = vadd.f32 %v11830_v18, %v3169_v35  ;;  %v13360_v35 = vld [vmem:[#allocation9_spill] sm:$0xff]  ;;  %4329 = vmatpush.bf16.msrb.mxu1 %v9302_v19 }
 0x459   :  { %v3094_v10 = vadd.f32 %v2944_v20, %v13357_v0  ;;  %v2995_v40 = vpop.f32.mrf.mxu0  ;;  %v3044_v44 = vpop.f32.mrf.mxu1  ;;  %v11950_v62 = vpack.c.bf16 %v3302_v52, %v3298_v54 }
 0x45a   :  { %v3045_v23 = vadd.f32 %v3044_v44, %v2995_v40  ;;  %v3307_v47 = vmax.f32 %v3243_v57, 0.0 }
 0x45b   :  { %v3168_v8 = vmul.f32 %v11834_v43, %v3094_v10  ;;  %3817 = vmatmul.bf16.gmra.mxu2 %v11782_v29  ;;  %3866 = vmatmul.bf16.gmra.mxu3 %v11768_v14 }
 0x45c   :  { %v3099_v48 = vadd.f32 %v3045_v23, %v13358_v50  ;;  %v3515_v21 = vpack.c.bf16 %v3307_v47, %v3303_v42  ;;  %v13361_v23 = vld [vmem:[#allocation10_spill] sm:$0xff] }
 0x45d   :  { %v3242_v3 = vadd.f32 %v11849_v39, %v3168_v8 }
 0x45e   :  { %v3173_v26 = vmul.f32 %v11820_v32, %v3099_v48  ;;  %3959 = vmatmul.bf16.gmra.mxu1 %v3515_v21  ;;  %v2897_v29 = vpop.f32.mrf.mxu2  ;;  %v2946_v14 = vpop.f32.mrf.mxu3 }
 0x45f   :  { %v2947_v54 = vadd.f32 %v2946_v14, %v2897_v29  ;;  %v3306_v6 = vmax.f32 %v3242_v3, 0.0 }
 0x460   :  { %v3247_v16 = vadd.f32 %v11830_v18, %v3173_v26 }
 0x461   :  { %v3098_v61 = vadd.f32 %v2947_v54, %v13359_v41  ;;  %v2997_v59 = vpop.f32.mrf.mxu0  ;;  %v3046_v53 = vpop.f32.mrf.mxu1  ;;  %v3514_v12 = vpack.c.bf16 %v3306_v6, %v3302_v52 }
 0x462   :  { %v3047_v60 = vadd.f32 %v3046_v53, %v2997_v59  ;;  %v3311_v42 = vmax.f32 %v3247_v16, 0.0  ;;  %v9293_v16 = vld [vmem:[%s13319_s7 + $0x88] sm:$0xff]  ;;  %v9276_v59 = vld [vmem:[%s13319_s7] sm:$0xff] }
 0x463   :  { %v3172_v51 = vmul.f32 %v11834_v43, %v3098_v61  ;;  %3910 = vmatmul.bf16.gmra.mxu0 %v3514_v12  ;;  %v9284_v53 = vld [vmem:[%s13319_s7 + $0x40] sm:$0xff] }
 0x464   :  { %v3103_v31 = vadd.f32 %v3047_v60, %v13360_v35  ;;  %v11974_v17 = vpack.c.bf16 %v3311_v42, %v3307_v47  ;;  %4281 = vmatpush.bf16.msrb.mxu0 %v9293_v16  ;;  %v9292_v35 = vld [vmem:[%s13319_s7 + $0x80] sm:$0xff]  ;;  %v9346_v16 = vld [vmem:[%s13319_s7 + $0x230] sm:$0xff] }
 0x465   :  { %v3246_v20 = vadd.f32 %v11849_v39, %v3172_v51 }
 0x466   :  { %v3177_v52 = vmul.f32 %v11820_v32, %v3103_v31  ;;  %v2899_v57 = vpop.f32.mrf.mxu2  ;;  %v2948_v0 = vpop.f32.mrf.mxu3  ;;  %v9277_v32 = vld [vmem:[%s13319_s7 + $0x8] sm:$0xff]  ;;  %v9300_v31 = vld [vmem:[%s13319_s7 + $0xc0] sm:$0xff] }
 0x467   :  { %v2949_v10 = vadd.f32 %v2948_v0, %v2899_v57  ;;  %v3310_v40 = vmax.f32 %v3246_v20, 0.0  ;;  %4183 = vmatpush.bf16.msra.mxu2 %v9277_v32  ;;  %v9371_v32 = vld [vmem:[%s13319_s7 + $0x2f8] sm:$0xff] }
 0x468   :  { %v11979_v44 = vadd.f32 %v11830_v18, %v3177_v52  ;;  %v9285_v18 = vld [vmem:[%s13319_s7 + $0x48] sm:$0xff]  ;;  %4282 = vmatpush.bf16.msrb.mxu0 %v9292_v35 }
 0x469   :  { %v3102_v8 = vadd.f32 %v2949_v10, %v13361_v23  ;;  %v3000_v24 = vpop.f32.mrf.mxu0  ;;  %v3049_v30 = vpop.f32.mrf.mxu1  ;;  %v11982_v50 = vpack.c.bf16 %v3310_v40, %v3306_v6  ;;  %4232 = vmatpush.bf16.msra.mxu3 %v9285_v18  ;;  %v9347_v10 = vld [vmem:[%s13319_s7 + $0x238] sm:$0xff] }
 0x46a   :  { %v3315_v47 = vmax.f32 %v11979_v44, 0.0  ;;  %v9364_v44 = vld [vmem:[%s13319_s7 + $0x2c0] sm:$0xff] }
 0x46b   :  { %v3176_v48 = vmul.f32 %v11834_v43, %v3102_v8  ;;  %3822 = vmatmul.bf16.gmra.mxu2 %v13342_v49  ;;  %3871 = vmatmul.bf16.gmra.mxu3 %v13342_v49 }
 0x46c   :  { %v3519_v21 = vpack.c.bf16 %v3315_v47, %v3311_v42  ;;  %4184 = vmatpush.bf16.msra.mxu2 %v9276_v59  ;;  %v9370_v59 = vld [vmem:[%s13319_s7 + $0x2f0] sm:$0xff] }
 0x46d   :  { %v11997_v3 = vadd.f32 %v11849_v39, %v3176_v48  ;;  %v9301_v39 = vld [vmem:[%s13319_s7 + $0xc8] sm:$0xff]  ;;  %4233 = vmatpush.bf16.msra.mxu3 %v9284_v53  ;;  %v9363_v48 = vld [vmem:[%s13319_s7 + $0x2b8] sm:$0xff] }
 0x46e   :  { %3964 = vmatmul.bf16.gmra.mxu1 %v3519_v21  ;;  %v2902_v43 = vpop.f32.mrf.mxu2  ;;  %v2951_v26 = vpop.f32.mrf.mxu3  ;;  %4728 = vmatpush.bf16.msra.mxu0 %v9363_v48  ;;  %v9344_v48 = vld [vmem:[%s13319_s7 + $0x220] sm:$0xff] }
 0x46f   :  { %v3314_v29 = vmax.f32 %v11997_v3, 0.0  ;;  %4330 = vmatpush.bf16.msrb.mxu1 %v9301_v39  ;;  %v13362_v43 = vmov 0.0   ;;  %v13363_v26 = vld [vmem:[#allocation2_spill] sm:$0xff]  ;;  %v9354_v39 = vld [vmem:[%s13319_s7 + $0x270] sm:$0xff] }
 0x470   :  { %4630 = vmatpush.bf16.msrb.mxu2 %v9347_v10 }
 0x471   :  { %v3002_v14 = vpop.f32.mrf.mxu0  ;;  %v3051_v54 = vpop.f32.mrf.mxu1  ;;  %v3518_v6 = vpack.c.bf16 %v3314_v29, %v3310_v40  ;;  %v9355_v40 = vld [vmem:[%s13319_s7 + $0x278] sm:$0xff] }
 0x472   :  { %4679 = vmatpush.bf16.msrb.mxu3 %v9355_v40  ;;  %v13364_v14 = vmax.f32 %v13363_v26, 0.0 }
 0x473   :  { %3915 = vmatmul.bf16.gmra.mxu0 %v3518_v6  ;;  %4331 = vmatpush.bf16.msrb.mxu1 %v9300_v31  ;;  %v12048_v6 = vpack.c.bf16 %v3276_v45, %v13362_v43 }
 0x474   :  { %v12043_v54 = vpack.c.bf16 %v13364_v14, %v13362_v43  ;;  %4631 = vmatpush.bf16.msrb.mxu2 %v9346_v16 }
 0x476   :  { %v2904_v41 = vpop.f32.mrf.mxu2  ;;  %v2953_v61 = vpop.f32.mrf.mxu3  ;;  %4680 = vmatpush.bf16.msrb.mxu3 %v9354_v39 }
 0x477   :  { %4777 = vmatpush.bf16.msra.mxu1 %v9371_v32  ;;  %v9362_v61 = vld [vmem:[%s13319_s7 + $0x2b0] sm:$0xff]  ;;  %v9352_v32 = vld [vmem:[%s13319_s7 + $0x260] sm:$0xff] }
 0x478   :  { %4729 = vmatpush.bf16.msra.mxu0 %v9362_v61 }
 0x479   :  { %v3005_v12 = vpop.f32.mrf.mxu0  ;;  %v3054_v60 = vpop.f32.mrf.mxu1 }
 0x47b   :  { %3827 = vmatmul.bf16.gmra.mxu2 %v13342_v49  ;;  %3876 = vmatmul.bf16.gmra.mxu3 %v13342_v49 }
 0x47c   :  { %4778 = vmatpush.bf16.msra.mxu1 %v9370_v59  ;;  %4730 = vmatpush.bf16.msra.mxu0 %v9361_v13 }
 0x47e   :  { %3969 = vmatmul.bf16.gmra.mxu1 %v13342_v49  ;;  %v2907_v42 = vpop.f32.mrf.mxu2  ;;  %v2956_v51 = vpop.f32.mrf.mxu3 }
 0x47f   :  { %v9345_v51 = vld [vmem:[%s13319_s7 + $0x228] sm:$0xff] }
 0x480   :  { %4632 = vmatpush.bf16.msrb.mxu2 %v9345_v51 }
 0x481   :  { %v3007_v33 = vpop.f32.mrf.mxu0  ;;  %v3056_v19 = vpop.f32.mrf.mxu1 }
 0x482   :  { %v9353_v33 = vld [vmem:[%s13319_s7 + $0x268] sm:$0xff]  ;;  %v12077_v19 = vpack.c.bf16 %v3279_v28, %v13362_v43 }
 0x483   :  { %3920 = vmatmul.bf16.gmra.mxu0 %v13342_v49  ;;  %4681 = vmatpush.bf16.msrb.mxu3 %v9353_v33  ;;  %v9369_v28 = vld [vmem:[%s13319_s7 + $0x2e8] sm:$0xff]  ;;  %v9343_v33 = vld [vmem:[%s13319_s7 + $0x218] sm:$0xff] }
 0x484   :  { %4779 = vmatpush.bf16.msra.mxu1 %v9369_v28  ;;  %4633 = vmatpush.bf16.msrb.mxu2 %v9344_v48 }
 0x486   :  { %v2909_v20 = vpop.f32.mrf.mxu2  ;;  %v2958_v52 = vpop.f32.mrf.mxu3 }
 0x487   :  { %4682 = vmatpush.bf16.msrb.mxu3 %v9352_v32 }
 0x488   :  { %4634 = vmatpush.bf16.msrb.mxu2 %v9343_v33 }
 0x489   :  { %v3010_v57 = vpop.f32.mrf.mxu0  ;;  %v3059_v0 = vpop.f32.mrf.mxu1 }
 0x48a   :  { %v12083_v57 = vpack.c.bf16 %v3278_v58, %v13362_v43 }
 0x48b   :  { %3832 = vmatmul.bf16.gmra.mxu2 %v13342_v49  ;;  %3881 = vmatmul.bf16.gmra.mxu3 %v13342_v49 }
 0x48e   :  { %3974 = vmatmul.bf16.gmra.mxu1 %v13342_v49  ;;  %v2912_v23 = vpop.f32.mrf.mxu2  ;;  %v2961_v8 = vpop.f32.mrf.mxu3 }
 0x491   :  { %v3012_v24 = vpop.f32.mrf.mxu0  ;;  %v3061_v30 = vpop.f32.mrf.mxu1 }
 0x493   :  { %3925 = vmatmul.bf16.gmra.mxu0 %v13342_v49 }
 0x496   :  { %v2914_v18 = vpop.f32.mrf.mxu2  ;;  %v2963_v21 = vpop.f32.mrf.mxu3 }
 0x49b   :  { %4185 = vmatmul.bf16.vlgmr.msra.gmra.mxu2 %v12048_v6  ;;  %4234 = vmatmul.bf16.vlgmr.msra.gmra.mxu3 %v12043_v54 }
 0x49e   :  { %3979 = vmatmul.bf16.gmra.mxu1 %v13342_v49  ;;  %v3798_v41 = vpop.f32.mrf.mxu2  ;;  %v3847_v9 = vpop.f32.mrf.mxu3 }
 0x49f   :  { %v3848_v45 = vadd.f32 %v3847_v9, %v3798_v41  ;;  %v9360_v9 = vld [vmem:[%s13319_s7 + $0x2a0] sm:$0xff] }
 0x4a0   :  { %4731 = vmatpush.bf16.msra.mxu0 %v9360_v9 }
 0x4a3   :  { %3930 = vmatmul.bf16.gmra.mxu0 %v13342_v49 }
 0x4a6   :  { %v3800_v53 = vpop.f32.mrf.mxu2  ;;  %v3849_v12 = vpop.f32.mrf.mxu3 }
 0x4a7   :  { %v3850_v60 = vadd.f32 %v3849_v12, %v3800_v53 }
 0x4ab   :  { %v3945_v42 = vpop.f32.mrf.mxu1  ;;  %4190 = vmatmul.bf16.gmra.mxu2 %v11642_v7  ;;  %4239 = vmatmul.bf16.gmra.mxu3 %v11630_v34 }
 0x4ae   :  { %4332 = vmatmul.bf16.vlgmr.msrb.gmra.mxu1 %v12077_v19  ;;  %v3803_v35 = vpop.f32.mrf.mxu2  ;;  %v3852_v31 = vpop.f32.mrf.mxu3 }
 0x4af   :  { %v3853_v20 = vadd.f32 %v3852_v31, %v3803_v35  ;;  %v9351_v35 = vld [vmem:[%s13319_s7 + $0x258] sm:$0xff] }
 0x4b0   :  { %v3896_v52 = vpop.f32.mrf.mxu0  ;;  %4683 = vmatpush.bf16.msrb.mxu3 %v9351_v35 }
 0x4b1   :  { %v3897_v0 = vadd.f32 %v3896_v52, %v3848_v45  ;;  %v9368_v45 = vld [vmem:[%s13319_s7 + $0x2e0] sm:$0xff] }
 0x4b2   :  { %4780 = vmatpush.bf16.msra.mxu1 %v9368_v45 }
 0x4b3   :  { %v3947_v10 = vpop.f32.mrf.mxu1  ;;  %4283 = vmatmul.bf16.vlgmr.msrb.gmra.mxu0 %v12083_v57  ;;  %v12092_v40 = vadd.f32 %v3945_v42, %v3897_v0 }
 0x4b6   :  { %v3805_v23 = vpop.f32.mrf.mxu2  ;;  %v3854_v15 = vpop.f32.mrf.mxu3 }
 0x4b7   :  { %v3855_v58 = vadd.f32 %v3854_v15, %v3805_v23  ;;  %v9359_v23 = vld [vmem:[%s13319_s7 + $0x298] sm:$0xff] }
 0x4b8   :  { %v3898_v8 = vpop.f32.mrf.mxu0  ;;  %v9367_v15 = vld [vmem:[%s13319_s7 + $0x2d8] sm:$0xff]  ;;  %4732 = vmatpush.bf16.msra.mxu0 %v9359_v23  ;;  %v9349_v23 = vld [vmem:[%s13319_s7 + $0x248] sm:$0xff] }
 0x4b9   :  { %v3899_v24 = vadd.f32 %v3898_v8, %v3850_v60  ;;  %4781 = vmatpush.bf16.msra.mxu1 %v9367_v15 }
 0x4bb   :  { %v3950_v30 = vpop.f32.mrf.mxu1  ;;  %4195 = vmatmul.bf16.gmra.mxu2 %v11678_v46  ;;  %4244 = vmatmul.bf16.gmra.mxu3 %v11666_v38  ;;  %v12102_v18 = vadd.f32 %v3947_v10, %v3899_v24 }
 0x4be   :  { %4337 = vmatmul.bf16.gmra.mxu1 %v11878_v5  ;;  %v3808_v21 = vpop.f32.mrf.mxu2  ;;  %v3857_v26 = vpop.f32.mrf.mxu3 }
 0x4bf   :  { %v3858_v14 = vadd.f32 %v3857_v26, %v3808_v21  ;;  %v9342_v26 = vld [vmem:[%s13319_s7 + $0x210] sm:$0xff] }
 0x4c0   :  { %v3901_v16 = vpop.f32.mrf.mxu0  ;;  %4635 = vmatpush.bf16.msrb.mxu2 %v9342_v26  ;;  %v9340_v26 = vld [vmem:[%s13319_s7 + $0x200] sm:$0xff] }
 0x4c1   :  { %v3902_v39 = vadd.f32 %v3901_v16, %v3853_v20 }
 0x4c3   :  { %v3952_v41 = vpop.f32.mrf.mxu1  ;;  %4288 = vmatmul.bf16.gmra.mxu0 %v11890_v11  ;;  %v12112_v61 = vadd.f32 %v3950_v30, %v3902_v39 }
 0x4c6   :  { %v3810_v59 = vpop.f32.mrf.mxu2  ;;  %v3859_v53 = vpop.f32.mrf.mxu3 }
 0x4c7   :  { %v3860_v12 = vadd.f32 %v3859_v53, %v3810_v59 }
 0x4c8   :  { %v3903_v60 = vpop.f32.mrf.mxu0 }
 0x4c9   :  { %v3904_v42 = vadd.f32 %v3903_v60, %v3855_v58  ;;  %v9366_v60 = vld [vmem:[%s13319_s7 + $0x2d0] sm:$0xff] }
 0x4ca   :  { %4782 = vmatpush.bf16.msra.mxu1 %v9366_v60 }
 0x4cb   :  { %v3955_v51 = vpop.f32.mrf.mxu1  ;;  %4200 = vmatmul.bf16.gmra.mxu2 %v11714_v55  ;;  %4249 = vmatmul.bf16.gmra.mxu3 %v11708_v27  ;;  %v12122_v31 = vadd.f32 %v3952_v41, %v3904_v42 }
 0x4ce   :  { %4342 = vmatmul.bf16.gmra.mxu1 %v11908_v1  ;;  %v3813_v20 = vpop.f32.mrf.mxu2  ;;  %v3862_v52 = vpop.f32.mrf.mxu3 }
 0x4cf   :  { %v3863_v0 = vadd.f32 %v3862_v52, %v3813_v20 }
 0x4d0   :  { %v3906_v10 = vpop.f32.mrf.mxu0 }
 0x4d1   :  { %v3907_v13 = vadd.f32 %v3906_v10, %v3858_v14  ;;  %v9350_v14 = vld [vmem:[%s13319_s7 + $0x250] sm:$0xff]  ;;  %v12160_v10 = vpack.c.bf16 0.0, %v3313_v56 }
 0x4d2   :  { %4684 = vmatpush.bf16.msrb.mxu3 %v9350_v14  ;;  %v9348_v14 = vld [vmem:[%s13319_s7 + $0x240] sm:$0xff] }
 0x4d3   :  { %v3957_v28 = vpop.f32.mrf.mxu1  ;;  %4293 = vmatmul.bf16.gmra.mxu0 %v11920_v25  ;;  %v12132_v58 = vadd.f32 %v3955_v51, %v3907_v13 }
 0x4d6   :  { %v3815_v8 = vpop.f32.mrf.mxu2  ;;  %v3864_v24 = vpop.f32.mrf.mxu3  ;;  %4685 = vmatpush.bf16.msrb.mxu3 %v9349_v23 }
 0x4d7   :  { %v3865_v30 = vadd.f32 %v3864_v24, %v3815_v8  ;;  %v9357_v24 = vld [vmem:[%s13319_s7 + $0x288] sm:$0xff] }
 0x4d8   :  { %v3908_v48 = vpop.f32.mrf.mxu0 }
 0x4d9   :  { %v3909_v32 = vadd.f32 %v3908_v48, %v3860_v12  ;;  %v9358_v12 = vld [vmem:[%s13319_s7 + $0x290] sm:$0xff] }
 0x4da   :  { %4733 = vmatpush.bf16.msra.mxu0 %v9358_v12  ;;  %4686 = vmatpush.bf16.msrb.mxu3 %v9348_v14 }
 0x4db   :  { %v3960_v21 = vpop.f32.mrf.mxu1  ;;  %4205 = vmatmul.bf16.gmra.mxu2 %v11752_v4  ;;  %4254 = vmatmul.bf16.gmra.mxu3 %v11744_v22  ;;  %v12142_v16 = vadd.f32 %v3957_v28, %v3909_v32  ;;  %v9341_v28 = vld [vmem:[%s13319_s7 + $0x208] sm:$0xff] }
 0x4dc   :  { %4636 = vmatpush.bf16.msrb.mxu2 %v9341_v28 }
 0x4de   :  { %4347 = vmatmul.bf16.gmra.mxu1 %v11944_v36  ;;  %v3818_v39 = vpop.f32.mrf.mxu2  ;;  %v3867_v41 = vpop.f32.mrf.mxu3  ;;  %4734 = vmatpush.bf16.msra.mxu0 %v9357_v24 }
 0x4df   :  { %v3868_v9 = vadd.f32 %v3867_v41, %v3818_v39 }
 0x4e0   :  { %v3911_v45 = vpop.f32.mrf.mxu0  ;;  %4637 = vmatpush.bf16.msrb.mxu2 %v9340_v26 }
 0x4e1   :  { %v3912_v59 = vadd.f32 %v3911_v45, %v3863_v0  ;;  %v12156_v0 = vpack.c.bf16 0.0, %v3312_v37 }
 0x4e3   :  { %v3962_v53 = vpop.f32.mrf.mxu1  ;;  %4298 = vmatmul.bf16.gmra.mxu0 %v11950_v62  ;;  %v12152_v42 = vadd.f32 %v3960_v21, %v3912_v59  ;;  %v12194_v59 = vpack.c.bf16 0.0, %v3315_v47 }
 0x4e6   :  { %v3820_v51 = vpop.f32.mrf.mxu2  ;;  %v3869_v33 = vpop.f32.mrf.mxu3 }
 0x4e7   :  { %v3870_v35 = vadd.f32 %v3869_v33, %v3820_v51  ;;  %v12199_v51 = vpack.c.bf16 0.0, %v3314_v29 }
 0x4e8   :  { %v3913_v20 = vpop.f32.mrf.mxu0 }
 0x4e9   :  { %v3914_v52 = vadd.f32 %v3913_v20, %v3865_v30  ;;  %v9365_v30 = vld [vmem:[%s13319_s7 + $0x2c8] sm:$0xff] }
 0x4ea   :  { %4783 = vmatpush.bf16.msra.mxu1 %v9365_v30 }
 0x4eb   :  { %v3965_v13 = vpop.f32.mrf.mxu1  ;;  %4210 = vmatmul.bf16.gmra.mxu2 %v12156_v0  ;;  %4259 = vmatmul.bf16.gmra.mxu3 %v12160_v10  ;;  %v12170_v63 = vadd.f32 %v3962_v53, %v3914_v52 }
 0x4ee   :  { %4352 = vmatmul.bf16.gmra.mxu1 %v11974_v17  ;;  %v3823_v2 = vpop.f32.mrf.mxu2  ;;  %v3872_v56 = vpop.f32.mrf.mxu3 }
 0x4ef   :  { %4784 = vmatpush.bf16.msra.mxu1 %v9364_v44 }
 0x4f0   :  { %v3916_v37 = vpop.f32.mrf.mxu0 }
 0x4f1   :  { %v3917_v15 = vadd.f32 %v3916_v37, %v3868_v9 }
 0x4f3   :  { %v3967_v8 = vpop.f32.mrf.mxu1  ;;  %4303 = vmatmul.bf16.gmra.mxu0 %v11982_v50  ;;  %v12180_v48 = vadd.f32 %v3965_v13, %v3917_v15 }
 0x4f6   :  { %v3825_v32 = vpop.f32.mrf.mxu2  ;;  %v3874_v21 = vpop.f32.mrf.mxu3 }
 0x4f8   :  { %v3918_v39 = vpop.f32.mrf.mxu0 }
 0x4f9   :  { %v3919_v41 = vadd.f32 %v3918_v39, %v3870_v35  ;;  %v9356_v35 = vld [vmem:[%s13319_s7 + $0x280] sm:$0xff] }
 0x4fa   :  { %4735 = vmatpush.bf16.msra.mxu0 %v9356_v35 }
 0x4fb   :  { %v3970_v9 = vpop.f32.mrf.mxu1  ;;  %4215 = vmatmul.bf16.gmra.mxu2 %v13342_v49  ;;  %4264 = vmatmul.bf16.gmra.mxu3 %v13342_v49  ;;  %v12190_v45 = vadd.f32 %v3967_v8, %v3919_v41 }
 0x4fe   :  { %4357 = vmatmul.bf16.gmra.mxu1 %v12194_v59  ;;  %v3828_v53 = vpop.f32.mrf.mxu2  ;;  %v3877_v12 = vpop.f32.mrf.mxu3 }
 0x500   :  { %v3921_v60 = vpop.f32.mrf.mxu0 }
 0x503   :  { %v3972_v33 = vpop.f32.mrf.mxu1  ;;  %4308 = vmatmul.bf16.gmra.mxu0 %v12199_v51 }
 0x506   :  { %v3830_v47 = vpop.f32.mrf.mxu2  ;;  %v3879_v20 = vpop.f32.mrf.mxu3 }
 0x507   :  { %v9395_v47 = vld [vmem:[%s13322_s10 + $0xb8] sm:$0xff] }
 0x508   :  { %v3923_v52 = vpop.f32.mrf.mxu0  ;;  %5210 = vmatpush.bf16.msrb.mxu0 %v9395_v47  ;;  %v9376_v47 = vld [vmem:[%s13322_s10 + $0x20] sm:$0xff] }
 0x50b   :  { %v3975_v13 = vpop.f32.mrf.mxu1  ;;  %4220 = vmatmul.bf16.gmra.mxu2 %v13342_v49  ;;  %4269 = vmatmul.bf16.gmra.mxu3 %v13342_v49 }
 0x50e   :  { %4362 = vmatmul.bf16.gmra.mxu1 %v13342_v49  ;;  %v3833_v3 = vpop.f32.mrf.mxu2  ;;  %v3882_v29 = vpop.f32.mrf.mxu3 }
 0x510   :  { %v3926_v28 = vpop.f32.mrf.mxu0 }
 0x513   :  { %v3977_v23 = vpop.f32.mrf.mxu1  ;;  %4313 = vmatmul.bf16.gmra.mxu0 %v13342_v49 }
 0x514   :  { %v9378_v23 = vld [vmem:[%s13322_s10 + $0x30] sm:$0xff] }
 0x516   :  { %v3835_v2 = vpop.f32.mrf.mxu2  ;;  %v3884_v56 = vpop.f32.mrf.mxu3 }
 0x518   :  { %v3928_v37 = vpop.f32.mrf.mxu0 }
 0x51b   :  { %v3980_v15 = vpop.f32.mrf.mxu1  ;;  %4638 = vmatmul.bf16.vlgmr.msrb.gmra.mxu2 %v11642_v7  ;;  %4687 = vmatmul.bf16.vlgmr.msrb.gmra.mxu3 %v11630_v34  ;;  %v9387_v34 = vld [vmem:[%s13322_s10 + $0x78] sm:$0xff] }
 0x51c   :  { %5011 = vmatpush.bf16.msra.mxu2 %v9387_v34 }
 0x51e   :  { %4367 = vmatmul.bf16.gmra.mxu1 %v13342_v49  ;;  %v4186_v8 = vpop.f32.mrf.mxu2  ;;  %v4235_v24 = vpop.f32.mrf.mxu3 }
 0x51f   :  { %v4187_v30 = vadd.f32 %v4186_v8, %v12092_v40  ;;  %v9379_v40 = vld [vmem:[%s13322_s10 + $0x38] sm:$0xff] }
 0x520   :  { %v3931_v32 = vpop.f32.mrf.mxu0  ;;  %5102 = vmatpush.bf16.msra.mxu3 %v9379_v40 }
 0x521   :  { %v4236_v21 = vadd.f32 %v4235_v24, %v4187_v30  ;;  %v9394_v24 = vld [vmem:[%s13322_s10 + $0xb0] sm:$0xff] }
 0x522   :  { %5211 = vmatpush.bf16.msrb.mxu0 %v9394_v24 }
 0x523   :  { %v3982_v26 = vpop.f32.mrf.mxu1  ;;  %4318 = vmatmul.bf16.gmra.mxu0 %v13342_v49 }
 0x524   :  { %5103 = vmatpush.bf16.msra.mxu3 %v9378_v23 }
 0x526   :  { %v4188_v14 = vpop.f32.mrf.mxu2  ;;  %v4237_v39 = vpop.f32.mrf.mxu3 }
 0x527   :  { %v4189_v41 = vadd.f32 %v4188_v14, %v12102_v18 }
 0x528   :  { %v3933_v9 = vpop.f32.mrf.mxu0 }
 0x529   :  { %v4238_v53 = vadd.f32 %v4237_v39, %v4189_v41  ;;  %v9377_v41 = vld [vmem:[%s13322_s10 + $0x28] sm:$0xff] }
 0x52a   :  { %5104 = vmatpush.bf16.msra.mxu3 %v9377_v41 }
 0x52b   :  { %v4333_v7 = vpop.f32.mrf.mxu1  ;;  %4643 = vmatmul.bf16.gmra.mxu2 %v11678_v46  ;;  %4692 = vmatmul.bf16.gmra.mxu3 %v11666_v38 }
 0x52e   :  { %4785 = vmatmul.bf16.vlgmr.msra.gmra.mxu1 %v11878_v5  ;;  %v4191_v18 = vpop.f32.mrf.mxu2  ;;  %v4240_v12 = vpop.f32.mrf.mxu3  ;;  %5105 = vmatpush.bf16.msra.mxu3 %v9376_v47 }
 0x52f   :  { %v4192_v60 = vadd.f32 %v4191_v18, %v12112_v61  ;;  %v9393_v18 = vld [vmem:[%s13322_s10 + $0xa8] sm:$0xff] }
 0x530   :  { %v4284_v33 = vpop.f32.mrf.mxu0  ;;  %5212 = vmatpush.bf16.msrb.mxu0 %v9393_v18 }
 0x531   :  { %v4241_v46 = vadd.f32 %v4240_v12, %v4192_v60  ;;  %v4285_v35 = vadd.f32 %v4284_v33, %v4236_v21 }
 0x533   :  { %v12228_v38 = vadd.f32 %v4333_v7, %v4285_v35  ;;  %v4335_v44 = vpop.f32.mrf.mxu1  ;;  %4736 = vmatmul.bf16.vlgmr.msra.gmra.mxu0 %v11890_v11  ;;  %v9386_v11 = vld [vmem:[%s13322_s10 + $0x70] sm:$0xff] }
 0x534   :  { %5012 = vmatpush.bf16.msra.mxu2 %v9386_v11 }
 0x536   :  { %v4193_v20 = vpop.f32.mrf.mxu2  ;;  %v4242_v52 = vpop.f32.mrf.mxu3 }
 0x537   :  { %v4194_v5 = vadd.f32 %v4193_v20, %v12122_v31 }
 0x538   :  { %v4286_v13 = vpop.f32.mrf.mxu0 }
 0x539   :  { %v4243_v3 = vadd.f32 %v4242_v52, %v4194_v5  ;;  %v4287_v61 = vadd.f32 %v4286_v13, %v4238_v53 }
 0x53b   :  { %v12235_v29 = vadd.f32 %v4335_v44, %v4287_v61  ;;  %v4338_v28 = vpop.f32.mrf.mxu1  ;;  %4648 = vmatmul.bf16.gmra.mxu2 %v11714_v55  ;;  %4697 = vmatmul.bf16.gmra.mxu3 %v11708_v27  ;;  %v9392_v61 = vld [vmem:[%s13322_s10 + $0xa0] sm:$0xff] }
 0x53c   :  { %5213 = vmatpush.bf16.msrb.mxu0 %v9392_v61 }
 0x53e   :  { %4790 = vmatmul.bf16.gmra.mxu1 %v11908_v1  ;;  %v4196_v31 = vpop.f32.mrf.mxu2  ;;  %v4245_v2 = vpop.f32.mrf.mxu3 }
 0x53f   :  { %v4197_v56 = vadd.f32 %v4196_v31, %v12132_v58 }
 0x540   :  { %v4289_v37 = vpop.f32.mrf.mxu0 }
 0x541   :  { %v4246_v55 = vadd.f32 %v4245_v2, %v4197_v56  ;;  %v4290_v15 = vadd.f32 %v4289_v37, %v4241_v46  ;;  %v9375_v2 = vld [vmem:[%s13322_s10 + $0x18] sm:$0xff] }
 0x542   :  { %5106 = vmatpush.bf16.msra.mxu3 %v9375_v2  ;;  %v12356_v2 = vld [vmem:[%s13323_s8] ss:$0 sm:$0xff] }
 0x543   :  { %v12247_v27 = vadd.f32 %v4338_v28, %v4290_v15  ;;  %v4340_v8 = vpop.f32.mrf.mxu1  ;;  %4741 = vmatmul.bf16.gmra.mxu0 %v11920_v25  ;;  %v9385_v25 = vld [vmem:[%s13322_s10 + $0x68] sm:$0xff] }
 0x544   :  { %5013 = vmatpush.bf16.msra.mxu2 %v9385_v25 }
 0x546   :  { %v4198_v30 = vpop.f32.mrf.mxu2  ;;  %v4247_v32 = vpop.f32.mrf.mxu3 }
 0x547   :  { %v4199_v1 = vadd.f32 %v4198_v30, %v12142_v16  ;;  %v9391_v30 = vld [vmem:[%s13322_s10 + $0x98] sm:$0xff] }
 0x548   :  { %v4291_v21 = vpop.f32.mrf.mxu0  ;;  %5214 = vmatpush.bf16.msrb.mxu0 %v9391_v30 }
 0x549   :  { %v4248_v26 = vadd.f32 %v4247_v32, %v4199_v1  ;;  %v4292_v58 = vadd.f32 %v4291_v21, %v4243_v3 }
 0x54b   :  { %v12254_v14 = vadd.f32 %v4340_v8, %v4292_v58  ;;  %v4343_v39 = vpop.f32.mrf.mxu1  ;;  %4653 = vmatmul.bf16.gmra.mxu2 %v11752_v4  ;;  %4702 = vmatmul.bf16.gmra.mxu3 %v11744_v22 }
 0x54e   :  { %4795 = vmatmul.bf16.gmra.mxu1 %v11944_v36  ;;  %v4201_v16 = vpop.f32.mrf.mxu2  ;;  %v4250_v9 = vpop.f32.mrf.mxu3 }
 0x54f   :  { %v4202_v53 = vadd.f32 %v4201_v16, %v12152_v42  ;;  %v9390_v16 = vld [vmem:[%s13322_s10 + $0x90] sm:$0xff] }
 0x550   :  { %v4294_v7 = vpop.f32.mrf.mxu0  ;;  %5215 = vmatpush.bf16.msrb.mxu0 %v9390_v16 }
 0x551   :  { %v4251_v4 = vadd.f32 %v4250_v9, %v4202_v53  ;;  %v4295_v34 = vadd.f32 %v4294_v7, %v4246_v55 }
 0x553   :  { %v12266_v22 = vadd.f32 %v4343_v39, %v4295_v34  ;;  %v4345_v40 = vpop.f32.mrf.mxu1  ;;  %4746 = vmatmul.bf16.gmra.mxu0 %v11950_v62  ;;  %v9384_v62 = vld [vmem:[%s13322_s10 + $0x60] sm:$0xff]  ;;  %v9381_v34 = vld [vmem:[%s13322_s10 + $0x48] sm:$0xff] }
 0x554   :  { %5014 = vmatpush.bf16.msra.mxu2 %v9384_v62 }
 0x556   :  { %v4203_v12 = vpop.f32.mrf.mxu2  ;;  %v4252_v60 = vpop.f32.mrf.mxu3 }
 0x557   :  { %v4204_v36 = vadd.f32 %v4203_v12, %v12170_v63 }
 0x558   :  { %v4296_v33 = vpop.f32.mrf.mxu0 }
 0x559   :  { %v4253_v46 = vadd.f32 %v4252_v60, %v4204_v36  ;;  %v4297_v42 = vadd.f32 %v4296_v33, %v4248_v26  ;;  %v9382_v26 = vld [vmem:[%s13322_s10 + $0x50] sm:$0xff] }
 0x55b   :  { %v12273_v35 = vadd.f32 %v4345_v40, %v4297_v42  ;;  %v4348_v44 = vpop.f32.mrf.mxu1  ;;  %4658 = vmatmul.bf16.gmra.mxu2 %v12156_v0  ;;  %4707 = vmatmul.bf16.gmra.mxu3 %v12160_v10  ;;  %v9373_v40 = vld [vmem:[%s13322_s10 + $0x8] sm:$0xff] }
 0x55c   :  { %v9389_v42 = vld [vmem:[%s13322_s10 + $0x88] sm:$0xff] }
 0x55d   :  { %5216 = vmatpush.bf16.msrb.mxu0 %v9389_v42 }
 0x55e   :  { %4800 = vmatmul.bf16.gmra.mxu1 %v11974_v17  ;;  %v4206_v63 = vpop.f32.mrf.mxu2  ;;  %v4255_v20 = vpop.f32.mrf.mxu3 }
 0x55f   :  { %v4207_v52 = vadd.f32 %v4206_v63, %v12180_v48  ;;  %v9372_v63 = vld [vmem:[%s13322_s10] sm:$0xff] }
 0x560   :  { %v4299_v5 = vpop.f32.mrf.mxu0 }
 0x561   :  { %v4256_v0 = vadd.f32 %v4255_v20, %v4207_v52  ;;  %v4300_v13 = vadd.f32 %v4299_v5, %v4251_v4  ;;  %v9380_v52 = vld [vmem:[%s13322_s10 + $0x40] sm:$0xff] }
 0x563   :  { %v12285_v10 = vadd.f32 %v4348_v44, %v4300_v13  ;;  %v4350_v3 = vpop.f32.mrf.mxu1  ;;  %4751 = vmatmul.bf16.gmra.mxu0 %v11982_v50  ;;  %v9383_v50 = vld [vmem:[%s13322_s10 + $0x58] sm:$0xff] }
 0x564   :  { %5015 = vmatpush.bf16.msra.mxu2 %v9383_v50 }
 0x566   :  { %v12291_v28 = vpop.f32.mrf.mxu2  ;;  %v12293_v17 = vpop.f32.mrf.mxu3 }
 0x568   :  { %v4301_v11 = vpop.f32.mrf.mxu0  ;;  %5016 = vmatpush.bf16.msra.mxu2 %v9382_v26 }
 0x569   :  { %v4302_v23 = vadd.f32 %v4301_v11, %v4253_v46 }
 0x56b   :  { %v12295_v48 = vadd.f32 %v4350_v3, %v4302_v23  ;;  %v4353_v31 = vpop.f32.mrf.mxu1  ;;  %4663 = vmatmul.bf16.gmra.mxu2 %v13342_v49  ;;  %4712 = vmatmul.bf16.gmra.mxu3 %v13342_v49  ;;  %v9388_v3 = vld [vmem:[%s13322_s10 + $0x80] sm:$0xff] }
 0x56c   :  { %5017 = vmatpush.bf16.msra.mxu2 %v9381_v34  ;;  %5217 = vmatpush.bf16.msrb.mxu0 %v9388_v3 }
 0x56e   :  { %4805 = vmatmul.bf16.gmra.mxu1 %v12194_v59  ;;  %v4211_v56 = vpop.f32.mrf.mxu2  ;;  %v4260_v37 = vpop.f32.mrf.mxu3 }
 0x570   :  { %v4304_v55 = vpop.f32.mrf.mxu0  ;;  %5018 = vmatpush.bf16.msra.mxu2 %v9380_v52 }
 0x571   :  { %v4305_v15 = vadd.f32 %v4304_v55, %v4256_v0  ;;  %v12362_v55 = vld [vmem:[%s13324_s9] ss:$0 sm:$0xff] }
 0x573   :  { %v12306_v8 = vadd.f32 %v4353_v31, %v4305_v15  ;;  %v12308_v24 = vpop.f32.mrf.mxu1  ;;  %4756 = vmatmul.bf16.gmra.mxu0 %v12199_v51  ;;  %v9374_v51 = vld [vmem:[%s13322_s10 + $0x10] sm:$0xff] }
 0x574   :  { %5107 = vmatpush.bf16.msra.mxu3 %v9374_v51 }
 0x576   :  { %v4213_v32 = vpop.f32.mrf.mxu2  ;;  %v4262_v1 = vpop.f32.mrf.mxu3 }
 0x578   :  { %v12314_v21 = vpop.f32.mrf.mxu0  ;;  %5108 = vmatpush.bf16.msra.mxu3 %v9373_v40 }
 0x57b   :  { %v4358_v59 = vpop.f32.mrf.mxu1  ;;  %4668 = vmatmul.bf16.gmra.mxu2 %v13342_v49  ;;  %4717 = vmatmul.bf16.gmra.mxu3 %v13342_v49 }
 0x57c   :  { %5109 = vmatpush.bf16.msra.mxu3 %v9372_v63  ;;  %v8403_v63 = vld [vmem:[%s13325_s11 + $0xa8] sm:$0xf] }
 0x57e   :  { %4810 = vmatmul.bf16.gmra.mxu1 %v13342_v49  ;;  %v4216_v58 = vpop.f32.mrf.mxu2  ;;  %v4265_v39 = vpop.f32.mrf.mxu3 }
 0x580   :  { %v4309_v25 = vpop.f32.mrf.mxu0 }
 0x583   :  { %v4360_v41 = vpop.f32.mrf.mxu1  ;;  %4761 = vmatmul.bf16.gmra.mxu0 %v13342_v49 }
 0x586   :  { %v4218_v9 = vpop.f32.mrf.mxu2  ;;  %v4267_v53 = vpop.f32.mrf.mxu3 }
 0x588   :  { %v4311_v7 = vpop.f32.mrf.mxu0 }
 0x58b   :  { %v4363_v4 = vpop.f32.mrf.mxu1  ;;  %4673 = vmatmul.bf16.gmra.mxu2 %v12048_v6  ;;  %4722 = vmatmul.bf16.gmra.mxu3 %v12043_v54 }
 0x58e   :  { %4815 = vmatmul.bf16.gmra.mxu1 %v13342_v49  ;;  %v4221_v18 = vpop.f32.mrf.mxu2  ;;  %v4270_v12 = vpop.f32.mrf.mxu3 }
 0x590   :  { %v4314_v60 = vpop.f32.mrf.mxu0 }
 0x593   :  { %v4365_v36 = vpop.f32.mrf.mxu1  ;;  %4766 = vmatmul.bf16.gmra.mxu0 %v13342_v49 }
 0x596   :  { %v4223_v6 = vpop.f32.mrf.mxu2  ;;  %v4272_v54 = vpop.f32.mrf.mxu3 }
 0x598   :  { %v4316_v33 = vpop.f32.mrf.mxu0 }
 0x59b   :  { %v4368_v46 = vpop.f32.mrf.mxu1 }
 0x59e   :  { %4820 = vmatmul.bf16.gmra.mxu1 %v12077_v19  ;;  %v4639_v44 = vpop.f32.mrf.mxu2  ;;  %v4688_v62 = vpop.f32.mrf.mxu3 }
 0x59f   :  { %v4689_v23 = vadd.f32 %v4688_v62, %v4639_v44 }
 0x5a0   :  { %v4319_v47 = vpop.f32.mrf.mxu0 }
 0x5a3   :  { %v4370_v20 = vpop.f32.mrf.mxu1  ;;  %4771 = vmatmul.bf16.gmra.mxu0 %v12083_v57 }
 0x5a4   :  { %v8411_v20 = vld [vmem:[%s13325_s11 + $0xb0] sm:$0xf] }
 0x5a6   :  { %v4641_v5 = vpop.f32.mrf.mxu2  ;;  %v4690_v0 = vpop.f32.mrf.mxu3 }
 0x5a7   :  { %v4691_v32 = vadd.f32 %v4690_v0, %v4641_v5  ;;  %v9419_v5 = vld [vmem:[%s13325_s11 + $0xb8] sm:$0xf0] }
 0x5a8   :  { %v4321_v13 = vpop.f32.mrf.mxu0 }
 0x5a9   :  { %v8412_v13 = vor.u32 %v9419_v5, %v8411_v20 }
 0x5ab   :  { %v4786_v19 = vpop.f32.mrf.mxu1  ;;  %5406 = vmatpush.bf16.msrb.mxu3 %v8412_v13  ;;  %v8393_v13 = vld [vmem:[%s13325_s11 + $0x9c] sm:$0xf0] }
 0x5ae   :  { %v4644_v61 = vpop.f32.mrf.mxu2  ;;  %v4693_v11 = vpop.f32.mrf.mxu3 }
 0x5af   :  { %v4694_v16 = vadd.f32 %v4693_v11, %v4644_v61 }
 0x5b0   :  { %v4737_v31 = vpop.f32.mrf.mxu0 }
 0x5b1   :  { %v4738_v50 = vadd.f32 %v4737_v31, %v4689_v23 }
 0x5b3   :  { %v4787_v57 = vadd.f32 %v4786_v19, %v4738_v50  ;;  %v4788_v56 = vpop.f32.mrf.mxu1 }
 0x5b5   :  { %v4826_v37 = vadd.f32 %v4787_v57, %v12228_v38 }
 0x5b6   :  { %v4646_v15 = vpop.f32.mrf.mxu2  ;;  %v4695_v30 = vpop.f32.mrf.mxu3 }
 0x5b7   :  { %v4846_v1 = vmul.f32 %v12356_v2, %v4826_v37  ;;  %v4696_v6 = vadd.f32 %v4695_v30, %v4646_v15  ;;  %v8405_v30 = vld [vmem:[%s13325_s11 + $0xb4] sm:$0xf0] }
 0x5b8   :  { %v4739_v59 = vpop.f32.mrf.mxu0 }
 0x5b9   :  { %v4866_v26 = vadd.f32 %v12362_v55, %v4846_v1  ;;  %v4740_v51 = vadd.f32 %v4739_v59, %v4691_v32 }
 0x5bb   :  { %9541 = vtanh.f32 %v4866_v26  ;;  %v4789_v58 = vadd.f32 %v4788_v56, %v4740_v51  ;;  %v4791_v39 = vpop.f32.mrf.mxu1 }
 0x5bd   :  { %v4827_v25 = vadd.f32 %v4789_v58, %v12235_v29 }
 0x5be   :  { %v4649_v38 = vpop.f32.mrf.mxu2  ;;  %v4698_v41 = vpop.f32.mrf.mxu3 }
 0x5bf   :  { %v4847_v9 = vmul.f32 %v12356_v2, %v4827_v25  ;;  %v4699_v61 = vadd.f32 %v4698_v41, %v4649_v38 }
 0x5c0   :  { %v4742_v53 = vpop.f32.mrf.mxu0 }
 0x5c1   :  { %v9542_v7 = vpop.eup %9541  ;;  %v4867_v4 = vadd.f32 %v12362_v55, %v4847_v9  ;;  %v4743_v34 = vadd.f32 %v4742_v53, %v4694_v16 }
 0x5c2   :  { %v12370_v40 = vpack.c.bf16 %v9542_v7, %v13362_v43 }
 0x5c3   :  { %9543 = vtanh.f32 %v4867_v4  ;;  %v4792_v18 = vadd.f32 %v4791_v39, %v4743_v34  ;;  %v4793_v12 = vpop.f32.mrf.mxu1 }
 0x5c4   :  { %5110 = vmatmul.bf16.vlgmr.msra.gmra.mxu3 %v12370_v40 }
 0x5c5   :  { %v4828_v29 = vadd.f32 %v4792_v18, %v12247_v27  ;;  %v9418_v27 = vld [vmem:[%s13325_s11 + $0xb0] sm:$0xf0] }
 0x5c6   :  { %v4651_v60 = vpop.f32.mrf.mxu2  ;;  %v4700_v36 = vpop.f32.mrf.mxu3  ;;  %v8404_v52 = vor.u32 %v9418_v27, %v8403_v63 }
 0x5c7   :  { %v4848_v54 = vmul.f32 %v12356_v2, %v4828_v29  ;;  %v4701_v51 = vadd.f32 %v4700_v36, %v4651_v60 }
 0x5c8   :  { %v4744_v33 = vpop.f32.mrf.mxu0  ;;  %5380 = vmatpush.bf16.msrb.mxu1 %v8404_v52 }
 0x5c9   :  { %v9544_v46 = vpop.eup %9543  ;;  %v4868_v42 = vadd.f32 %v12362_v55, %v4848_v54  ;;  %v4745_v44 = vadd.f32 %v4744_v33, %v4696_v6 }
 0x5ca   :  { %v4938_v62 = vpack.c.bf16 %v9544_v46, %v9542_v7 }
 0x5cb   :  { %9545 = vtanh.f32 %v4868_v42  ;;  %v4794_v43 = vadd.f32 %v4793_v12, %v4745_v44  ;;  %v4796_v47 = vpop.f32.mrf.mxu1  ;;  %v8399_v42 = vld [vmem:[%s13325_s11 + $0x98] sm:$0xf] }
 0x5cc   :  { %5019 = vmatmul.bf16.vlgmr.msra.gmra.mxu2 %v4938_v62  ;;  %v9416_v62 = vld [vmem:[%s13325_s11 + $0xa0] sm:$0xf0] }
 0x5cd   :  { %v4829_v0 = vadd.f32 %v4794_v43, %v12254_v14  ;;  %v9417_v14 = vld [vmem:[%s13325_s11 + $0xac] sm:$0xf] }
 0x5ce   :  { %v4654_v19 = vpop.f32.mrf.mxu2  ;;  %v4703_v3 = vpop.f32.mrf.mxu3  ;;  %v8408_v32 = vor.u32 %v9417_v14, %v8405_v30 }
 0x5cf   :  { %v4849_v11 = vmul.f32 %v12356_v2, %v4829_v0  ;;  %v4704_v34 = vadd.f32 %v4703_v3, %v4654_v19  ;;  %v9414_v0 = vld [vmem:[%s13325_s11 + $0x94] sm:$0xf] }
 0x5d0   :  { %v4747_v23 = vpop.f32.mrf.mxu0  ;;  %5393 = vmatpush.bf16.msrb.mxu2 %v8408_v32  ;;  %v4209_v32 = vadd.f32 %v12291_v28, %v12190_v45 }
 0x5d1   :  { %v9546_v31 = vpop.eup %9545  ;;  %v4869_v50 = vadd.f32 %v12362_v55, %v4849_v11  ;;  %v4748_v57 = vadd.f32 %v4747_v23, %v4699_v61  ;;  %v8396_v61 = vor.u32 %v9414_v0, %v8393_v13 }
 0x5d2   :  { %v4915_v56 = vpack.c.bf16 %v9546_v31, %v9544_v46  ;;  %v8391_v46 = vld [vmem:[%s13325_s11 + $0x90] sm:$0xf] }
 0x5d3   :  { %9547 = vtanh.f32 %v4869_v50  ;;  %v4797_v37 = vadd.f32 %v4796_v47, %v4748_v57  ;;  %v4798_v15 = vpop.f32.mrf.mxu1  ;;  %v8400_v47 = vor.u32 %v9416_v62, %v8399_v42 }
 0x5d4   :  { %5115 = vmatmul.bf16.gmra.mxu3 %v4915_v56  ;;  %5218 = vmatmul.bf16.vlgmr.msrb.gmra.mxu0 %v4915_v56 }
 0x5d5   :  { %v4830_v1 = vadd.f32 %v4797_v37, %v12266_v22  ;;  %5407 = vmatpush.bf16.msrb.mxu3 %v8400_v47  ;;  %5394 = vmatpush.bf16.msrb.mxu2 %v8396_v61  ;;  %v8381_v47 = vld [vmem:[%s13325_s11 + $0x84] sm:$0xf0]  ;;  %v9409_v61 = vld [vmem:[%s13325_s11 + $0x68] sm:$0xf0] }
 0x5d6   :  { %v4656_v59 = vpop.f32.mrf.mxu2  ;;  %v4705_v26 = vpop.f32.mrf.mxu3 }
 0x5d7   :  { %v4850_v58 = vmul.f32 %v12356_v2, %v4830_v1  ;;  %v4706_v20 = vadd.f32 %v4705_v26, %v4656_v59 }
 0x5d8   :  { %v4749_v39 = vpop.f32.mrf.mxu0 }
 0x5d9   :  { %v9548_v25 = vpop.eup %9547  ;;  %v4870_v38 = vadd.f32 %v12362_v55, %v4850_v58  ;;  %v4750_v41 = vadd.f32 %v4749_v39, %v4701_v51 }
 0x5da   :  { %v4939_v16 = vpack.c.bf16 %v9548_v25, %v9546_v31 }
 0x5db   :  { %9549 = vtanh.f32 %v4870_v38  ;;  %v4799_v9 = vadd.f32 %v4798_v15, %v4750_v41  ;;  %v4801_v53 = vpop.f32.mrf.mxu1 }
 0x5dc   :  { %5024 = vmatmul.bf16.gmra.mxu2 %v4939_v16 }
 0x5dd   :  { %v4831_v7 = vadd.f32 %v4799_v9, %v12273_v35  ;;  %v9415_v35 = vld [vmem:[%s13325_s11 + $0x98] sm:$0xf0] }
 0x5de   :  { %v4659_v4 = vpop.f32.mrf.mxu2  ;;  %v4708_v22 = vpop.f32.mrf.mxu3  ;;  %v8392_v44 = vor.u32 %v9415_v35, %v8391_v46 }
 0x5df   :  { %v4851_v18 = vmul.f32 %v12356_v2, %v4831_v7  ;;  %v4709_v37 = vadd.f32 %v4708_v22, %v4659_v4 }
 0x5e0   :  { %v4752_v12 = vpop.f32.mrf.mxu0  ;;  %5381 = vmatpush.bf16.msrb.mxu1 %v8392_v44 }
 0x5e1   :  { %v9550_v29 = vpop.eup %9549  ;;  %v4871_v60 = vadd.f32 %v12362_v55, %v4851_v18  ;;  %v4753_v36 = vadd.f32 %v4752_v12, %v4704_v34 }
 0x5e2   :  { %v4916_v6 = vpack.c.bf16 %v9550_v29, %v9548_v25 }
 0x5e3   :  { %9551 = vtanh.f32 %v4871_v60  ;;  %v4802_v54 = vadd.f32 %v4801_v53, %v4753_v36  ;;  %v4803_v33 = vpop.f32.mrf.mxu1  ;;  %v8379_v60 = vld [vmem:[%s13325_s11 + $0x78] sm:$0xf]  ;;  %v9412_v36 = vld [vmem:[%s13325_s11 + $0x80] sm:$0xf0] }
 0x5e4   :  { %5120 = vmatmul.bf16.gmra.mxu3 %v4916_v6  ;;  %5223 = vmatmul.bf16.gmra.mxu0 %v4916_v6 }
 0x5e5   :  { %v4832_v43 = vadd.f32 %v4802_v54, %v12285_v10 }
 0x5e6   :  { %v4661_v63 = vpop.f32.mrf.mxu2  ;;  %v4710_v27 = vpop.f32.mrf.mxu3 }
 0x5e7   :  { %v4852_v52 = vmul.f32 %v12356_v2, %v4832_v43  ;;  %v4711_v16 = vadd.f32 %v4710_v27, %v4661_v63 }
 0x5e8   :  { %v4754_v5 = vpop.f32.mrf.mxu0 }
 0x5e9   :  { %v9552_v19 = vpop.eup %9551  ;;  %v4872_v10 = vadd.f32 %v12362_v55, %v4852_v52  ;;  %v4755_v3 = vadd.f32 %v4754_v5, %v4706_v20 }
 0x5ea   :  { %v4940_v11 = vpack.c.bf16 %v9552_v19, %v9550_v29 }
 0x5eb   :  { %9553 = vtanh.f32 %v4872_v10  ;;  %v4804_v23 = vadd.f32 %v4803_v33, %v4755_v3  ;;  %v4806_v31 = vpop.f32.mrf.mxu1  ;;  %v8380_v33 = vor.u32 %v9412_v36, %v8379_v60  ;;  %v8367_v3 = vld [vmem:[%s13325_s11 + $0x60] sm:$0xf] }
 0x5ec   :  { %5029 = vmatmul.bf16.gmra.mxu2 %v4940_v11  ;;  %v8375_v11 = vld [vmem:[%s13325_s11 + $0x68] sm:$0xf]  ;;  %v8438_v60 = vld [vmem:[%s13325_s11 + $0x20] sm:$0xf] }
 0x5ed   :  { %v4833_v50 = vadd.f32 %v4804_v23, %v12295_v48  ;;  %v4258_v48 = vadd.f32 %v12293_v17, %v4209_v32  ;;  %5382 = vmatpush.bf16.msrb.mxu1 %v8380_v33  ;;  %v8368_v23 = vor.u32 %v9409_v61, %v8367_v3  ;;  %v9408_v32 = vld [vmem:[%s13325_s11 + $0x64] sm:$0xf] }
 0x5ee   :  { %v4664_v57 = vpop.f32.mrf.mxu2  ;;  %v4713_v56 = vpop.f32.mrf.mxu3 }
 0x5ef   :  { %v4853_v15 = vmul.f32 %v12356_v2, %v4833_v50  ;;  %v4307_v41 = vadd.f32 %v12314_v21, %v4258_v48 }
 0x5f0   :  { %v4757_v14 = vpop.f32.mrf.mxu0 }
 0x5f1   :  { %v9554_v30 = vpop.eup %9553  ;;  %v4873_v1 = vadd.f32 %v12362_v55, %v4853_v15  ;;  %v4758_v59 = vadd.f32 %v4757_v14, %v4709_v37  ;;  %v4356_v22 = vadd.f32 %v12308_v24, %v4307_v41  ;;  %v8387_v24 = vld [vmem:[%s13325_s11 + $0x80] sm:$0xf]  ;;  %5383 = vmatpush.bf16.msrb.mxu1 %v8368_v23  ;;  %v8521_v23 = vld [vmem:[%s13325_s11 + $0x108] sm:$0xf] }
 0x5f2   :  { %v4917_v26 = vpack.c.bf16 %v9554_v30, %v9552_v19 }
 0x5f3   :  { %9555 = vtanh.f32 %v4873_v1  ;;  %v4807_v51 = vadd.f32 %v4806_v31, %v4758_v59  ;;  %v4808_v58 = vpop.f32.mrf.mxu1  ;;  %v9410_v31 = vld [vmem:[%s13325_s11 + $0x70] sm:$0xf0]  ;;  %v8369_v1 = vld [vmem:[%s13325_s11 + $0x6c] sm:$0xf0] }
 0x5f4   :  { %5125 = vmatmul.bf16.gmra.mxu3 %v4917_v26  ;;  %5228 = vmatmul.bf16.gmra.mxu0 %v4917_v26  ;;  %v8376_v56 = vor.u32 %v9410_v31, %v8375_v11  ;;  %v8372_v26 = vor.u32 %v9408_v32, %v8369_v1  ;;  %v9430_v31 = vld [vmem:[%s13325_s11 + $0x110] sm:$0xf0] }
 0x5f5   :  { %v4834_v39 = vadd.f32 %v4807_v51, %v12306_v8  ;;  %v8923_v51 = vld [vmem:[%s13325_s11 + $0x348] sm:$0xf] }
 0x5f6   :  { %v4666_v25 = vpop.f32.mrf.mxu2  ;;  %v4715_v38 = vpop.f32.mrf.mxu3 }
 0x5f7   :  { %v4854_v45 = vmul.f32 %v12356_v2, %v4834_v39  ;;  %v8454_v39 = vld [vmem:[%s13325_s11 + $0x48] sm:$0xf]  ;;  %v9406_v25 = vld [vmem:[%s13325_s11 + $0x50] sm:$0xf0]  ;;  %v8462_v38 = vld [vmem:[%s13325_s11 + $0x50] sm:$0xf] }
 0x5f8   :  { %v4759_v28 = vpop.f32.mrf.mxu0  ;;  %v8455_v41 = vor.u32 %v9406_v25, %v8454_v39  ;;  %v9428_v39 = vld [vmem:[%s13325_s11 + $0x100] sm:$0xf0]  ;;  %v9426_v25 = vld [vmem:[%s13325_s11 + $0xf4] sm:$0xf] }
 0x5f9   :  { %v9556_v9 = vpop.eup %9555  ;;  %v4874_v53 = vadd.f32 %v12362_v55, %v4854_v45  ;;  %v4760_v7 = vadd.f32 %v4759_v28, %v4711_v16  ;;  %v9407_v16 = vld [vmem:[%s13325_s11 + $0x58] sm:$0xf0]  ;;  %v8456_v28 = vld [vmem:[%s13325_s11 + $0x54] sm:$0xf0] }
 0x5fa   :  { %v4941_v4 = vpack.c.bf16 %v9556_v9, %v9554_v30  ;;  %v8463_v45 = vor.u32 %v9407_v16, %v8462_v38  ;;  %5486 = vmatpush.bf16.msra.mxu1 %v8455_v41  ;;  %v8511_v38 = vld [vmem:[%s13325_s11 + $0xfc] sm:$0xf0] }
 0x5fb   :  { %9557 = vtanh.f32 %v4874_v53  ;;  %v4809_v34 = vadd.f32 %v4808_v58, %v4760_v7  ;;  %v4811_v17 = vpop.f32.mrf.mxu1  ;;  %v9502_v58 = vld [vmem:[%s13325_s11 + $0x350] sm:$0xf0]  ;;  %v8442_v53 = vld [vmem:[%s13325_s11 + $0x30] sm:$0xf]  ;;  %v9403_v7 = vld [vmem:[%s13325_s11 + $0x38] sm:$0xf0] }
 0x5fc   :  { %5034 = vmatmul.bf16.gmra.mxu2 %v4941_v4  ;;  %v8924_v48 = vor.u32 %v9502_v58, %v8923_v51  ;;  %v8450_v4 = vld [vmem:[%s13325_s11 + $0x38] sm:$0xf]  ;;  %v9402_v17 = vld [vmem:[%s13325_s11 + $0x34] sm:$0xf] }
 0x5fd   :  { %v4835_v8 = vadd.f32 %v4809_v34, %v4356_v22  ;;  %v8443_v22 = vor.u32 %v9403_v7, %v8442_v53  ;;  %v9404_v34 = vld [vmem:[%s13325_s11 + $0x40] sm:$0xf0]  ;;  %v8517_v51 = vld [vmem:[%s13325_s11 + $0xf8] sm:$0xf]  ;;  %v8505_v7 = vld [vmem:[%s13325_s11 + $0xe0] sm:$0xf] }
 0x5fe   :  { %v4669_v18 = vpop.f32.mrf.mxu2  ;;  %v4718_v12 = vpop.f32.mrf.mxu3  ;;  %6372 = vmatpush.bf16.msra.mxu0 %v8924_v48  ;;  %v9424_v53 = vld [vmem:[%s13325_s11 + $0xe0] sm:$0xf0] }
 0x5ff   :  { %v4855_v21 = vmul.f32 %v12356_v2, %v4835_v8  ;;  %v9413_v2 = vld [vmem:[%s13325_s11 + $0x88] sm:$0xf0]  ;;  %v8444_v8 = vld [vmem:[%s13325_s11 + $0x3c] sm:$0xf0]  ;;  %v8451_v18 = vor.u32 %v9404_v34, %v8450_v4  ;;  %5487 = vmatpush.bf16.msra.mxu1 %v8443_v22  ;;  %v9423_v22 = vld [vmem:[%s13325_s11 + $0xdc] sm:$0xf] }
 0x600   :  { %v4762_v29 = vpop.f32.mrf.mxu0  ;;  %v8388_v35 = vor.u32 %v9413_v2, %v8387_v24  ;;  %v8447_v12 = vor.u32 %v9402_v17, %v8444_v8  ;;  %v9401_v24 = vld [vmem:[%s13325_s11 + $0x28] sm:$0xf0]  ;;  %v8499_v34 = vld [vmem:[%s13325_s11 + $0xe4] sm:$0xf0] }
 0x601   :  { %v9558_v6 = vpop.eup %9557  ;;  %v4875_v54 = vadd.f32 %v12362_v55, %v4855_v21  ;;  %v9411_v55 = vld [vmem:[%s13325_s11 + $0x7c] sm:$0xf]  ;;  %v9400_v29 = vld [vmem:[%s13325_s11 + $0x20] sm:$0xf0]  ;;  %v8439_v33 = vor.u32 %v9401_v24, %v8438_v60  ;;  %v9425_v4 = vld [vmem:[%s13325_s11 + $0xe8] sm:$0xf0] }
 0x602   :  { %v4918_v46 = vpack.c.bf16 %v9558_v6, %v9556_v9  ;;  %5408 = vmatpush.bf16.msrb.mxu3 %v8388_v35  ;;  %v8384_v27 = vor.u32 %v9411_v55, %v8381_v47  ;;  %v9397_v35 = vld [vmem:[%s13325_s11 + $0x8] sm:$0xf0]  ;;  %v8420_v55 = vld [vmem:[%s13325_s11 + $0xc] sm:$0xf0]  ;;  %v9422_v24 = vld [vmem:[%s13325_s11 + $0xd0] sm:$0xf0] }
 0x603   :  { %9559 = vtanh.f32 %v4875_v54  ;;  %v4813_v42 = vpop.f32.mrf.mxu1  ;;  %v8432_v54 = vld [vmem:[%s13325_s11 + $0x24] sm:$0xf0] }
 0x604   :  { %5130 = vmatmul.bf16.gmra.mxu3 %v4918_v46  ;;  %5233 = vmatmul.bf16.gmra.mxu0 %v4918_v46  ;;  %v8418_v46 = vld [vmem:[%s13325_s11] sm:$0xf]  ;;  %v8426_v42 = vld [vmem:[%s13325_s11 + $0x8] sm:$0xf] }
 0x605   :  { %5395 = vmatpush.bf16.msrb.mxu2 %v8384_v27 }
 0x606   :  { %v4671_v44 = vpop.f32.mrf.mxu2  ;;  %v4720_v62 = vpop.f32.mrf.mxu3  ;;  %5409 = vmatpush.bf16.msrb.mxu3 %v8376_v56  ;;  %v9429_v56 = vld [vmem:[%s13325_s11 + $0x10c] sm:$0xf] }
 0x607   :  { %v8419_v44 = vor.u32 %v9397_v35, %v8418_v46  ;;  %v9398_v62 = vld [vmem:[%s13325_s11 + $0x10] sm:$0xf0] }
 0x608   :  { %v4764_v43 = vpop.f32.mrf.mxu0  ;;  %v8427_v47 = vor.u32 %v9398_v62, %v8426_v42  ;;  %v9442_v62 = vld [vmem:[%s13325_s11 + $0x170] sm:$0xf0] }
 0x609   :  { %v9560_v63 = vpop.eup %9559  ;;  %5396 = vmatpush.bf16.msrb.mxu2 %v8372_v26  ;;  %v9396_v43 = vld [vmem:[%s13325_s11 + $0x4] sm:$0xf]  ;;  %v9427_v26 = vld [vmem:[%s13325_s11 + $0xf8] sm:$0xf0] }
 0x60a   :  { %v4942_v20 = vpack.c.bf16 %v9560_v63, %v9558_v6  ;;  %v4919_v19 = vpack.c.bf16 0.0, %v9560_v63  ;;  %5512 = vmatpush.bf16.msra.mxu3 %v8463_v45  ;;  %v9399_v6 = vld [vmem:[%s13325_s11 + $0x1c] sm:$0xf]  ;;  %v8423_v63 = vor.u32 %v9396_v43, %v8420_v55  ;;  %v8518_v45 = vor.u32 %v9428_v39, %v8517_v51  ;;  %v8596_v43 = vld [vmem:[%s13325_s11 + $0x170] sm:$0xf] }
 0x60b   :  { %v4816_v52 = vpop.f32.mrf.mxu1  ;;  %v8435_v2 = vor.u32 %v9399_v6, %v8432_v54  ;;  %v9420_v6 = vld [vmem:[%s13325_s11 + $0xc4] sm:$0xf]  ;;  %v8487_v54 = vld [vmem:[%s13325_s11 + $0xcc] sm:$0xf0]  ;;  %v9443_v55 = vld [vmem:[%s13325_s11 + $0x178] sm:$0xf0] }
 0x60c   :  { %5039 = vmatmul.bf16.gmra.mxu2 %v4942_v20  ;;  %v8490_v42 = vor.u32 %v9420_v6, %v8487_v54  ;;  %v9435_v51 = vld [vmem:[%s13325_s11 + $0x13c] sm:$0xf]  ;;  %v8655_v6 = vld [vmem:[%s13325_s11 + $0x1c8] sm:$0xf]  ;;  %v9454_v54 = vld [vmem:[%s13325_s11 + $0x1d0] sm:$0xf0] }
 0x60e   :  { %v4674_v5 = vpop.f32.mrf.mxu2  ;;  %v4723_v0 = vpop.f32.mrf.mxu3  ;;  %5513 = vmatpush.bf16.msra.mxu3 %v8451_v18  ;;  %v8506_v18 = vor.u32 %v9425_v4, %v8505_v7 }
 0x610   :  { %v4767_v13 = vpop.f32.mrf.mxu0 }
 0x612   :  { %5514 = vmatpush.bf16.msra.mxu3 %v8439_v33 }
 0x613   :  { %v4818_v10 = vpop.f32.mrf.mxu1 }
 0x614   :  { %5135 = vmatmul.bf16.gmra.mxu3 %v4919_v19  ;;  %5238 = vmatmul.bf16.gmra.mxu0 %v4919_v19  ;;  %v8911_v19 = vld [vmem:[%s13325_s11 + $0x330] sm:$0xf]  ;;  %v9499_v10 = vld [vmem:[%s13325_s11 + $0x338] sm:$0xf0] }
 0x615   :  { %v8912_v61 = vor.u32 %v9499_v10, %v8911_v19  ;;  %v9439_v19 = vld [vmem:[%s13325_s11 + $0x158] sm:$0xf0]  ;;  %v8584_v10 = vld [vmem:[%s13325_s11 + $0x158] sm:$0xf] }
 0x616   :  { %v4676_v50 = vpop.f32.mrf.mxu2  ;;  %v4725_v57 = vpop.f32.mrf.mxu3  ;;  %5515 = vmatpush.bf16.msra.mxu3 %v8427_v47  ;;  %v9441_v47 = vld [vmem:[%s13325_s11 + $0x16c] sm:$0xf] }
 0x617   :  { %v8529_v50 = vld [vmem:[%s13325_s11 + $0x110] sm:$0xf]  ;;  %v9431_v57 = vld [vmem:[%s13325_s11 + $0x118] sm:$0xf0]  ;;  %6373 = vmatpush.bf16.msra.mxu0 %v8912_v61 }
 0x618   :  { %v4769_v37 = vpop.f32.mrf.mxu0  ;;  %v8530_v32 = vor.u32 %v9431_v57, %v8529_v50 }
 0x619   :  { %v8523_v37 = vld [vmem:[%s13325_s11 + $0x114] sm:$0xf0] }
 0x61a   :  { %v8526_v1 = vor.u32 %v9429_v56, %v8523_v37  ;;  %v8899_v37 = vld [vmem:[%s13325_s11 + $0x318] sm:$0xf] }
 0x61b   :  { %v4821_v15 = vpop.f32.mrf.mxu1 }
 0x61c   :  { %5044 = vmatmul.bf16.gmra.mxu2 %v13342_v49 }
 0x620   :  { %v4772_v14 = vpop.f32.mrf.mxu0 }
 0x621   :  { %v8522_v14 = vor.u32 %v9430_v31, %v8521_v23  ;;  %v9438_v23 = vld [vmem:[%s13325_s11 + $0x154] sm:$0xf]  ;;  %v8578_v31 = vld [vmem:[%s13325_s11 + $0x15c] sm:$0xf0] }
 0x623   :  { %v4823_v30 = vpop.f32.mrf.mxu1 }
 0x624   :  { %5243 = vmatmul.bf16.gmra.mxu0 %v13342_v49  ;;  %5138 = vmatmul.bf16.gmra.mxu3 %v13342_v49 }
 0x628   :  { %v4774_v59 = vpop.f32.mrf.mxu0 }
 0x629   :  { %v8509_v59 = vld [vmem:[%s13325_s11 + $0xf0] sm:$0xf] }
 0x62c   :  { %5047 = vmatmul.bf16.gmra.mxu2 %v13342_v49 }
 0x634   :  { %5246 = vmatmul.bf16.gmra.mxu0 %v13342_v49  ;;  %5141 = vmatmul.bf16.gmra.mxu3 %v13342_v49 }
 0x63c   :  { %5050 = vmatmul.bf16.gmra.mxu2 %v13342_v49  ;;  %v9405_v49 = vld [vmem:[%s13325_s11 + $0x4c] sm:$0xf] }
 0x63d   :  { %v8459_v9 = vor.u32 %v9405_v49, %v8456_v28  ;;  %v8510_v49 = vor.u32 %v9427_v26, %v8509_v59  ;;  %v8514_v28 = vor.u32 %v9426_v25, %v8511_v38  ;;  %v9437_v26 = vld [vmem:[%s13325_s11 + $0x148] sm:$0xf0]  ;;  %v8887_v38 = vld [vmem:[%s13325_s11 + $0x300] sm:$0xf] }
 0x63f   :  { %5499 = vmatpush.bf16.msra.mxu2 %v8459_v9  ;;  %v8497_v9 = vld [vmem:[%s13325_s11 + $0xd8] sm:$0xf] }
 0x640   :  { %v8498_v8 = vor.u32 %v9424_v53, %v8497_v9  ;;  %v8560_v9 = vld [vmem:[%s13325_s11 + $0x128] sm:$0xf] }
 0x643   :  { %5500 = vmatpush.bf16.msra.mxu2 %v8447_v12  ;;  %v8502_v12 = vor.u32 %v9423_v22, %v8499_v34  ;;  %v9434_v22 = vld [vmem:[%s13325_s11 + $0x130] sm:$0xf0]  ;;  %v9432_v34 = vld [vmem:[%s13325_s11 + $0x124] sm:$0xf] }
 0x644   :  { %5249 = vmatmul.bf16.gmra.mxu0 %v12370_v40  ;;  %v8430_v40 = vld [vmem:[%s13325_s11 + $0x18] sm:$0xf] }
 0x645   :  { %v8431_v36 = vor.u32 %v9400_v29, %v8430_v40  ;;  %v9421_v40 = vld [vmem:[%s13325_s11 + $0xc8] sm:$0xf0]  ;;  %v8493_v29 = vld [vmem:[%s13325_s11 + $0xc8] sm:$0xf] }
 0x646   :  { %v8494_v35 = vor.u32 %v9422_v24, %v8493_v29  ;;  %v8561_v29 = vor.u32 %v9434_v22, %v8560_v9  ;;  %v9444_v22 = vld [vmem:[%s13325_s11 + $0x184] sm:$0xf] }
 0x647   :  { %v5111_v21 = vpop.f32.mrf.mxu3  ;;  %5488 = vmatpush.bf16.msra.mxu1 %v8431_v36  ;;  %5501 = vmatpush.bf16.msra.mxu2 %v8435_v2 }
 0x64b   :  { %5489 = vmatpush.bf16.msra.mxu1 %v8419_v44  ;;  %5502 = vmatpush.bf16.msra.mxu2 %v8423_v63  ;;  %v8588_v44 = vld [vmem:[%s13325_s11 + $0x168] sm:$0xf]  ;;  %v8590_v63 = vld [vmem:[%s13325_s11 + $0x174] sm:$0xf0] }
 0x64f   :  { %v5020_v27 = vpop.f32.mrf.mxu2  ;;  %v5113_v20 = vpop.f32.mrf.mxu3 }
 0x650   :  { %v5112_v41 = vadd.f32 %v5111_v21, %v5020_v27  ;;  %v8485_v21 = vld [vmem:[%s13325_s11 + $0xc0] sm:$0xf]  ;;  %v8589_v27 = vor.u32 %v9442_v62, %v8588_v44  ;;  %v8657_v44 = vld [vmem:[%s13325_s11 + $0x1d4] sm:$0xf0]  ;;  %v8656_v62 = vor.u32 %v9454_v54, %v8655_v6  ;;  %v9466_v6 = vld [vmem:[%s13325_s11 + $0x230] sm:$0xf0] }
 0x651   :  { %v5219_v52 = vpop.f32.mrf.mxu0  ;;  %v8486_v46 = vor.u32 %v9421_v40, %v8485_v21  ;;  %v9513_v21 = vld [vmem:[%s13325_s11 + $0x3ac] sm:$0xf]  ;;  %v8992_v40 = vld [vmem:[%s13325_s11 + $0x3b4] sm:$0xf0]  ;;  %v8730_v54 = vld [vmem:[%s13325_s11 + $0x230] sm:$0xf] }
 0x652   :  { %v5253_v17 = vadd.f32 %v5219_v52, %v5112_v41  ;;  %v8597_v52 = vor.u32 %v9443_v55, %v8596_v43  ;;  %v9493_v41 = vld [vmem:[%s13325_s11 + $0x308] sm:$0xf0]  ;;  %v9510_v43 = vld [vmem:[%s13325_s11 + $0x394] sm:$0xf]  ;;  %v8980_v55 = vld [vmem:[%s13325_s11 + $0x39c] sm:$0xf0] }
 0x653   :  { %v8888_v53 = vor.u32 %v9493_v41, %v8887_v38 }
 0x654   :  { %v5263_v33 = vmax.f32 %v5253_v17, 0.0  ;;  %v8554_v17 = vld [vmem:[%s13325_s11 + $0x12c] sm:$0xf0] }
 0x655   :  { %v8557_v24 = vor.u32 %v9432_v34, %v8554_v17  ;;  %v8621_v34 = vld [vmem:[%s13325_s11 + $0x18c] sm:$0xf0] }
 0x657   :  { %v5022_v5 = vpop.f32.mrf.mxu2  ;;  %v12559_v0 = vpop.f32.mrf.mxu3 }
 0x658   :  { %v5114_v13 = vadd.f32 %v5113_v20, %v5022_v5  ;;  %v5273_v20 = vpack.c.bf16 %v5263_v33, %v5263_v33  ;;  %v8593_v5 = vor.u32 %v9441_v47, %v8590_v63  ;;  %v8663_v33 = vld [vmem:[%s13325_s11 + $0x1d0] sm:$0xf] }
 0x659   :  { %v5221_v3 = vpop.f32.mrf.mxu0 }
 0x65a   :  { %v5254_v11 = vadd.f32 %v5221_v3, %v5114_v13  ;;  %v8576_v13 = vld [vmem:[%s13325_s11 + $0x150] sm:$0xf] }
 0x65b   :  { %v8577_v56 = vor.u32 %v9439_v19, %v8576_v13 }
 0x65c   :  { %v5264_v15 = vmax.f32 %v5254_v11, 0.0  ;;  %v9440_v11 = vld [vmem:[%s13325_s11 + $0x160] sm:$0xf0] }
 0x65e   :  { %v5290_v30 = vpack.c.bf16 %v5264_v15, %v5264_v15  ;;  %v9496_v15 = vld [vmem:[%s13325_s11 + $0x320] sm:$0xf0] }
 0x65f   :  { %v12594_v58 = vpop.f32.mrf.mxu2  ;;  %v12596_v48 = vpop.f32.mrf.mxu3  ;;  %v8900_v59 = vor.u32 %v9496_v15, %v8899_v37  ;;  %v9507_v15 = vld [vmem:[%s13325_s11 + $0x37c] sm:$0xf] }
 0x660   :  { %8413 = vmatmul.msk.bf16.vlgmr.msrb.gmra.mxu1 %vm5372_vm2, %v5290_v30  ;;  %8414 = vmatmul.msk.bf16.vlgmr.msrb.gmra.mxu2 %vm5372_vm2, %v5290_v30  ;;  %v5117_v50 = vadd.f32 %v12559_v0, %v12594_v58  ;;  %v8564_v0 = vld [vmem:[%s13325_s11 + $0x138] sm:$0xf]  ;;  %v8566_v58 = vld [vmem:[%s13325_s11 + $0x144] sm:$0xf0] }
 0x661   :  { %8415 = vmatmul.msk.bf16.vlgmr.msrb.gmra.mxu3 %vm5372_vm2, %v5290_v30  ;;  %v12610_v16 = vpop.f32.mrf.mxu0  ;;  %5610 = vmatpush.bf16.msrb.mxu1 %v8522_v14  ;;  %v8585_v14 = vor.u32 %v9440_v11, %v8584_v10  ;;  %v8581_v30 = vor.u32 %v9438_v23, %v8578_v31  ;;  %v9452_v10 = vld [vmem:[%s13325_s11 + $0x1c0] sm:$0xf0]  ;;  %v9450_v11 = vld [vmem:[%s13325_s11 + $0x1b4] sm:$0xf]  ;;  %v8645_v23 = vld [vmem:[%s13325_s11 + $0x1bc] sm:$0xf0]  ;;  %v8983_v31 = vor.u32 %v9510_v43, %v8980_v55 }
 0x662   :  { %5636 = vmatpush.bf16.msrb.mxu3 %v8530_v32  ;;  %5623 = vmatpush.bf16.msrb.mxu2 %v8526_v1  ;;  %v9436_v32 = vld [vmem:[%s13325_s11 + $0x140] sm:$0xf0]  ;;  %v8572_v1 = vld [vmem:[%s13325_s11 + $0x140] sm:$0xf]  ;;  %v5255_v39 = vadd.f32 %v12610_v16, %v5117_v50  ;;  %v9433_v16 = vld [vmem:[%s13325_s11 + $0x128] sm:$0xf0] }
 0x663   :  { %6374 = vmatpush.bf16.msra.mxu0 %v8900_v59  ;;  %v8565_v25 = vor.u32 %v9436_v32, %v8564_v0  ;;  %v8648_v0 = vor.u32 %v9450_v11, %v8645_v23  ;;  %v8639_v32 = vld [vmem:[%s13325_s11 + $0x1a0] sm:$0xf]  ;;  %v9447_v59 = vld [vmem:[%s13325_s11 + $0x19c] sm:$0xf]  ;;  %v8710_v55 = vld [vmem:[%s13325_s11 + $0x210] sm:$0xf] }
 0x665   :  { %5611 = vmatpush.bf16.msrb.mxu1 %v8510_v49  ;;  %v8573_v49 = vor.u32 %v9437_v26, %v8572_v1  ;;  %v9449_v1 = vld [vmem:[%s13325_s11 + $0x1a8] sm:$0xf0]  ;;  %v8633_v26 = vld [vmem:[%s13325_s11 + $0x1a4] sm:$0xf0] }
 0x666   :  { %5637 = vmatpush.bf16.msrb.mxu3 %v8518_v45  ;;  %5624 = vmatpush.bf16.msrb.mxu2 %v8514_v28  ;;  %v8569_v45 = vor.u32 %v9435_v51, %v8566_v58  ;;  %v8552_v28 = vld [vmem:[%s13325_s11 + $0x120] sm:$0xf]  ;;  %v9504_v58 = vld [vmem:[%s13325_s11 + $0x364] sm:$0xf]  ;;  %v8640_v41 = vor.u32 %v9449_v1, %v8639_v32 }
 0x667   :  { %v12639_v60 = vpop.f32.mrf.mxu2  ;;  %v12641_v36 = vpop.f32.mrf.mxu3  ;;  %6375 = vmatpush.bf16.msra.mxu0 %v8888_v53  ;;  %v9446_v53 = vld [vmem:[%s13325_s11 + $0x190] sm:$0xf0] }
 0x668   :  { %v5119_v50 = vadd.f32 %v12596_v48, %v12639_v60  ;;  %v8631_v48 = vld [vmem:[%s13325_s11 + $0x198] sm:$0xf]  ;;  %v9448_v60 = vld [vmem:[%s13325_s11 + $0x1a0] sm:$0xf0] }
 0x669   :  { %v12652_v2 = vpop.f32.mrf.mxu0  ;;  %5612 = vmatpush.bf16.msrb.mxu1 %v8498_v8  ;;  %v5265_v8 = vmax.f32 %v5255_v39, 0.0  ;;  %v8956_v39 = vld [vmem:[%s13325_s11 + $0x36c] sm:$0xf0]  ;;  %v8632_v38 = vor.u32 %v9448_v60, %v8631_v48  ;;  %v9459_v48 = vld [vmem:[%s13325_s11 + $0x1fc] sm:$0xf] }
 0x66a   :  { %5638 = vmatpush.bf16.msrb.mxu3 %v8506_v18  ;;  %5625 = vmatpush.bf16.msrb.mxu2 %v8502_v12  ;;  %v8553_v12 = vor.u32 %v9433_v16, %v8552_v28  ;;  %v9445_v28 = vld [vmem:[%s13325_s11 + $0x188] sm:$0xf0]  ;;  %v8627_v16 = vld [vmem:[%s13325_s11 + $0x188] sm:$0xf]  ;;  %v8959_v17 = vor.u32 %v9504_v58, %v8956_v39  ;;  %v8686_v39 = vld [vmem:[%s13325_s11 + $0x1e0] sm:$0xf] }
 0x66b   :  { %v5521_v47 = vpack.c.bf16 %v5265_v8, %v5265_v8  ;;  %v8700_v60 = vld [vmem:[%s13325_s11 + $0x204] sm:$0xf0] }
 0x66c   :  { %v8703_v58 = vor.u32 %v9459_v48, %v8700_v60  ;;  %v8753_v60 = vld [vmem:[%s13325_s11 + $0x240] sm:$0xf] }
 0x66d   :  { %5613 = vmatpush.bf16.msrb.mxu1 %v8486_v46  ;;  %v8995_v46 = vor.u32 %v9513_v21, %v8992_v40  ;;  %v8628_v40 = vor.u32 %v9446_v53, %v8627_v16 }
 0x66e   :  { %5639 = vmatpush.bf16.msrb.mxu3 %v8494_v35  ;;  %5626 = vmatpush.bf16.msrb.mxu2 %v8490_v42  ;;  %v9455_v35 = vld [vmem:[%s13325_s11 + $0x1d8] sm:$0xf0]  ;;  %v9453_v42 = vld [vmem:[%s13325_s11 + $0x1cc] sm:$0xf] }
 0x66f   :  { %v12681_v3 = vpop.f32.mrf.mxu2  ;;  %v12683_v61 = vpop.f32.mrf.mxu3  ;;  %6512 = vmatpush.bf16.msrb.mxu0 %v8995_v46  ;;  %v8664_v63 = vor.u32 %v9455_v35, %v8663_v33  ;;  %v9467_v33 = vld [vmem:[%s13325_s11 + $0x238] sm:$0xf0]  ;;  %v9465_v46 = vld [vmem:[%s13325_s11 + $0x22c] sm:$0xf]  ;;  %v8724_v35 = vld [vmem:[%s13325_s11 + $0x234] sm:$0xf0] }
 0x670   :  { %8464 = vmatmul.msk.bf16.vlgmr.msra.gmra.mxu1 %vm5372_vm2, %v5273_v20  ;;  %8465 = vmatmul.msk.bf16.vlgmr.msra.gmra.mxu2 %vm5372_vm2, %v5273_v20  ;;  %v8727_v43 = vor.u32 %v9465_v46, %v8724_v35  ;;  %v5122_v23 = vadd.f32 %v12641_v36, %v12681_v3  ;;  %v8706_v36 = vld [vmem:[%s13325_s11 + $0x200] sm:$0xf]  ;;  %v9461_v3 = vld [vmem:[%s13325_s11 + $0x208] sm:$0xf0] }
 0x671   :  { %8466 = vmatmul.msk.bf16.vlgmr.msra.gmra.mxu3 %vm5372_vm2, %v5273_v20  ;;  %v12699_v57 = vpop.f32.mrf.mxu0  ;;  %5737 = vmatpush.bf16.msra.mxu1 %v8589_v27  ;;  %v8660_v27 = vor.u32 %v9453_v42, %v8657_v44  ;;  %v8643_v20 = vld [vmem:[%s13325_s11 + $0x1b0] sm:$0xf] }
 0x672   :  { %5763 = vmatpush.bf16.msra.mxu3 %v8597_v52  ;;  %5750 = vmatpush.bf16.msra.mxu2 %v8593_v5  ;;  %v9451_v52 = vld [vmem:[%s13325_s11 + $0x1b8] sm:$0xf0]  ;;  %v8651_v5 = vld [vmem:[%s13325_s11 + $0x1b8] sm:$0xf]  ;;  %v5257_v1 = vadd.f32 %v12699_v57, %v5122_v23  ;;  %v8694_v57 = vld [vmem:[%s13325_s11 + $0x1e8] sm:$0xf] }
 0x673   :  { %v8644_v37 = vor.u32 %v9451_v52, %v8643_v20  ;;  %6513 = vmatpush.bf16.msrb.mxu0 %v8983_v31  ;;  %v9464_v52 = vld [vmem:[%s13325_s11 + $0x220] sm:$0xf0] }
 0x674   :  { %v5267_v16 = vmax.f32 %v5257_v1, 0.0 }
 0x675   :  { %5738 = vmatpush.bf16.msra.mxu1 %v8577_v56 }
 0x676   :  { %5764 = vmatpush.bf16.msra.mxu3 %v8585_v14  ;;  %5751 = vmatpush.bf16.msra.mxu2 %v8581_v30  ;;  %v8968_v14 = vld [vmem:[%s13325_s11 + $0x384] sm:$0xf0]  ;;  %v8652_v30 = vor.u32 %v9452_v10, %v8651_v5  ;;  %v9462_v5 = vld [vmem:[%s13325_s11 + $0x214] sm:$0xf]  ;;  %v8712_v10 = vld [vmem:[%s13325_s11 + $0x21c] sm:$0xf0] }
 0x677   :  { %v12741_v7 = vpop.f32.mrf.mxu2  ;;  %v12743_v4 = vpop.f32.mrf.mxu3  ;;  %v8971_v51 = vor.u32 %v9507_v15, %v8968_v14  ;;  %v8715_v14 = vor.u32 %v9462_v5, %v8712_v10 }
 0x679   :  { %v12754_v18 = vpop.f32.mrf.mxu0  ;;  %5739 = vmatpush.bf16.msra.mxu1 %v8565_v25  ;;  %v5256_v25 = vadd.f32 %v12652_v2, %v5119_v50  ;;  %6514 = vmatpush.bf16.msrb.mxu0 %v8971_v51  ;;  %v8707_v51 = vor.u32 %v9461_v3, %v8706_v36 }
 0x67a   :  { %5765 = vmatpush.bf16.msra.mxu3 %v8573_v49  ;;  %5752 = vmatpush.bf16.msra.mxu2 %v8569_v45  ;;  %v8636_v49 = vor.u32 %v9447_v59, %v8633_v26  ;;  %v8619_v45 = vld [vmem:[%s13325_s11 + $0x180] sm:$0xf] }
 0x67b   :  { %v5266_v8 = vmax.f32 %v5256_v25, 0.0  ;;  %v8620_v21 = vor.u32 %v9445_v28, %v8619_v45  ;;  %v9457_v25 = vld [vmem:[%s13325_s11 + $0x1e8] sm:$0xf0]  ;;  %v9456_v45 = vld [vmem:[%s13325_s11 + $0x1e4] sm:$0xf] }
 0x67c   :  { %v8688_v28 = vld [vmem:[%s13325_s11 + $0x1ec] sm:$0xf0]  ;;  %v8687_v53 = vor.u32 %v9457_v25, %v8686_v39 }
 0x67d   :  { %5740 = vmatpush.bf16.msra.mxu1 %v8553_v12  ;;  %6515 = vmatpush.bf16.msrb.mxu0 %v8959_v17  ;;  %v5648_v44 = vpack.c.bf16 %v5266_v8, %v5266_v8  ;;  %v8691_v17 = vor.u32 %v9456_v45, %v8688_v28  ;;  %v8789_v8 = vld [vmem:[%s13325_s11 + $0x288] sm:$0xf]  ;;  %v8755_v39 = vld [vmem:[%s13325_s11 + $0x24c] sm:$0xf0]  ;;  %v9490_v28 = vld [vmem:[%s13325_s11 + $0x2f0] sm:$0xf0] }
 0x67e   :  { %5766 = vmatpush.bf16.msra.mxu3 %v8561_v29  ;;  %5753 = vmatpush.bf16.msra.mxu2 %v8557_v24  ;;  %v8624_v29 = vor.u32 %v9444_v22, %v8621_v34  ;;  %v8722_v24 = vld [vmem:[%s13325_s11 + $0x228] sm:$0xf] }
 0x67f   :  { %v12795_v13 = vpop.f32.mrf.mxu2  ;;  %v12797_v19 = vpop.f32.mrf.mxu3  ;;  %v8723_v42 = vor.u32 %v9466_v6, %v8722_v24  ;;  %v9477_v24 = vld [vmem:[%s13325_s11 + $0x28c] sm:$0xf]  ;;  %v8791_v6 = vld [vmem:[%s13325_s11 + $0x294] sm:$0xf0]  ;;  %v8856_v45 = vld [vmem:[%s13325_s11 + $0x2e8] sm:$0xf] }
 0x680   :  { %8531 = vmatmul.msk.bf16.vlgmr.msrb.gmra.mxu1 %vm5372_vm2, %v5521_v47  ;;  %8532 = vmatmul.msk.bf16.vlgmr.msrb.gmra.mxu2 %vm5372_vm2, %v5521_v47 }
 0x681   :  { %8533 = vmatmul.msk.bf16.vlgmr.msrb.gmra.mxu3 %vm5372_vm2, %v5521_v47  ;;  %v12813_v56 = vpop.f32.mrf.mxu0  ;;  %5864 = vmatpush.bf16.msrb.mxu1 %v8656_v62  ;;  %v8731_v62 = vor.u32 %v9467_v33, %v8730_v54  ;;  %v9463_v47 = vld [vmem:[%s13325_s11 + $0x218] sm:$0xf0]  ;;  %v5775_v54 = vpack.c.bf16 %v5267_v16, %v5267_v16  ;;  %v8864_v16 = vld [vmem:[%s13325_s11 + $0x2f0] sm:$0xf] }
 0x682   :  { %5890 = vmatpush.bf16.msrb.mxu3 %v8664_v63  ;;  %5877 = vmatpush.bf16.msrb.mxu2 %v8660_v27  ;;  %v8718_v63 = vld [vmem:[%s13325_s11 + $0x218] sm:$0xf]  ;;  %v8711_v50 = vor.u32 %v9463_v47, %v8710_v55 }
 0x683   :  { %v8719_v15 = vor.u32 %v9464_v52, %v8718_v63  ;;  %v9476_v63 = vld [vmem:[%s13325_s11 + $0x280] sm:$0xf0]  ;;  %v5124_v52 = vadd.f32 %v12683_v61, %v12741_v7  ;;  %v8773_v61 = vld [vmem:[%s13325_s11 + $0x260] sm:$0xf]  ;;  %v9473_v7 = vld [vmem:[%s13325_s11 + $0x268] sm:$0xf0] }
 0x684   :  { %v8774_v3 = vor.u32 %v9473_v7, %v8773_v61  ;;  %v9482_v61 = vld [vmem:[%s13325_s11 + $0x2b0] sm:$0xf0]  ;;  %v9480_v7 = vld [vmem:[%s13325_s11 + $0x2a4] sm:$0xf] }
 0x685   :  { %5865 = vmatpush.bf16.msrb.mxu1 %v8644_v37 }
 0x686   :  { %5891 = vmatpush.bf16.msrb.mxu3 %v8652_v30  ;;  %5878 = vmatpush.bf16.msrb.mxu2 %v8648_v0  ;;  %v8698_v30 = vld [vmem:[%s13325_s11 + $0x1f8] sm:$0xf]  ;;  %v9460_v0 = vld [vmem:[%s13325_s11 + $0x200] sm:$0xf0] }
 0x687   :  { %v12855_v9 = vpop.f32.mrf.mxu2  ;;  %v5131_v2 = vpop.f32.mrf.mxu3  ;;  %v8699_v59 = vor.u32 %v9460_v0, %v8698_v30  ;;  %v5258_v30 = vadd.f32 %v12754_v18, %v5124_v52  ;;  %v8761_v18 = vld [vmem:[%s13325_s11 + $0x248] sm:$0xf] }
 0x689   :  { %v12866_v12 = vpop.f32.mrf.mxu0  ;;  %5866 = vmatpush.bf16.msrb.mxu1 %v8632_v38  ;;  %v5268_v25 = vmax.f32 %v5258_v30, 0.0 }
 0x68a   :  { %5892 = vmatpush.bf16.msrb.mxu3 %v8640_v41  ;;  %5879 = vmatpush.bf16.msrb.mxu2 %v8636_v49  ;;  %v9458_v49 = vld [vmem:[%s13325_s11 + $0x1f0] sm:$0xf0] }
 0x68b   :  { %v8695_v34 = vor.u32 %v9458_v49, %v8694_v57 }
 0x68d   :  { %5867 = vmatpush.bf16.msrb.mxu1 %v8620_v21  ;;  %v9478_v21 = vld [vmem:[%s13325_s11 + $0x290] sm:$0xf0] }
 0x68e   :  { %5893 = vmatpush.bf16.msrb.mxu3 %v8628_v40  ;;  %5880 = vmatpush.bf16.msrb.mxu2 %v8624_v29  ;;  %v8797_v40 = vld [vmem:[%s13325_s11 + $0x290] sm:$0xf]  ;;  %v9479_v29 = vld [vmem:[%s13325_s11 + $0x298] sm:$0xf0]  ;;  %v8790_v33 = vor.u32 %v9478_v21, %v8789_v8 }
 0x68f   :  { %v5040_v27 = vpop.f32.mrf.mxu2  ;;  %v5133_v20 = vpop.f32.mrf.mxu3  ;;  %v8798_v35 = vor.u32 %v9479_v29, %v8797_v40  ;;  %v8844_v40 = vld [vmem:[%s13325_s11 + $0x2d0] sm:$0xf]  ;;  %v9487_v29 = vld [vmem:[%s13325_s11 + $0x2d8] sm:$0xf0] }
 0x690   :  { %v5132_v11 = vadd.f32 %v5131_v2, %v5040_v27  ;;  %8598 = vmatmul.msk.bf16.vlgmr.msra.gmra.mxu1 %vm5372_vm2, %v5648_v44  ;;  %8599 = vmatmul.msk.bf16.vlgmr.msra.gmra.mxu2 %vm5372_vm2, %v5648_v44  ;;  %v9474_v27 = vld [vmem:[%s13325_s11 + $0x274] sm:$0xf] }
 0x691   :  { %8600 = vmatmul.msk.bf16.vlgmr.msra.gmra.mxu3 %vm5372_vm2, %v5648_v44  ;;  %v5239_v31 = vpop.f32.mrf.mxu0  ;;  %5991 = vmatpush.bf16.msra.mxu1 %v8723_v42  ;;  %v8794_v42 = vor.u32 %v9477_v24, %v8791_v6  ;;  %v8777_v44 = vld [vmem:[%s13325_s11 + $0x270] sm:$0xf]  ;;  %v8852_v24 = vld [vmem:[%s13325_s11 + $0x2d8] sm:$0xf] }
 0x692   :  { %v5261_v37 = vadd.f32 %v5239_v31, %v5132_v11  ;;  %6017 = vmatpush.bf16.msra.mxu3 %v8731_v62  ;;  %6004 = vmatpush.bf16.msra.mxu2 %v8727_v43  ;;  %v9475_v62 = vld [vmem:[%s13325_s11 + $0x278] sm:$0xf0]  ;;  %v8785_v43 = vld [vmem:[%s13325_s11 + $0x278] sm:$0xf] }
 0x693   :  { %v8778_v10 = vor.u32 %v9475_v62, %v8777_v44  ;;  %v8765_v11 = vld [vmem:[%s13325_s11 + $0x258] sm:$0xf]  ;;  %v8786_v31 = vor.u32 %v9476_v63, %v8785_v43  ;;  %v8845_v62 = vor.u32 %v9487_v29, %v8844_v40  ;;  %v9484_v63 = vld [vmem:[%s13325_s11 + $0x2c0] sm:$0xf0]  ;;  %v9495_v40 = vld [vmem:[%s13325_s11 + $0x31c] sm:$0xf] }
 0x694   :  { %v5271_v32 = vmax.f32 %v5261_v37, 0.0  ;;  %v9472_v37 = vld [vmem:[%s13325_s11 + $0x260] sm:$0xf0]  ;;  %v8901_v29 = vld [vmem:[%s13325_s11 + $0x324] sm:$0xf0] }
 0x695   :  { %5992 = vmatpush.bf16.msra.mxu1 %v8711_v50  ;;  %v8766_v0 = vor.u32 %v9472_v37, %v8765_v11 }
 0x696   :  { %v12928_v26 = vpack.c.bf16 %v5271_v32, %v5271_v32  ;;  %6018 = vmatpush.bf16.msra.mxu3 %v8719_v15  ;;  %6005 = vmatpush.bf16.msra.mxu2 %v8715_v14  ;;  %v9471_v15 = vld [vmem:[%s13325_s11 + $0x25c] sm:$0xf]  ;;  %v8767_v14 = vld [vmem:[%s13325_s11 + $0x264] sm:$0xf0]  ;;  %v9469_v32 = vld [vmem:[%s13325_s11 + $0x248] sm:$0xf0] }
 0x697   :  { %v5042_v38 = vpop.f32.mrf.mxu2  ;;  %v5136_v41 = vpop.f32.mrf.mxu3  ;;  %v8770_v48 = vor.u32 %v9471_v15, %v8767_v14  ;;  %v8822_v15 = vld [vmem:[%s13325_s11 + $0x2ac] sm:$0xf0] }
 0x698   :  { %8933 = vmatmul.msk.bf16.vlgmr.msra.gmra.mxu0 %vm5372_vm2, %v12928_v26  ;;  %v5134_v22 = vadd.f32 %v5133_v20, %v5042_v38  ;;  %v8779_v20 = vld [vmem:[%s13325_s11 + $0x27c] sm:$0xf0]  ;;  %v8754_v38 = vor.u32 %v9469_v32, %v8753_v60  ;;  %v9501_v60 = vld [vmem:[%s13325_s11 + $0x34c] sm:$0xf]  ;;  %v8925_v32 = vld [vmem:[%s13325_s11 + $0x354] sm:$0xf0] }
 0x699   :  { %v5241_v2 = vpop.f32.mrf.mxu0  ;;  %5993 = vmatpush.bf16.msra.mxu1 %v8699_v59  ;;  %v8782_v50 = vor.u32 %v9474_v27, %v8779_v20  ;;  %v9483_v27 = vld [vmem:[%s13325_s11 + $0x2bc] sm:$0xf]  ;;  %v8834_v20 = vld [vmem:[%s13325_s11 + $0x2c4] sm:$0xf0] }
 0x69a   :  { %6019 = vmatpush.bf16.msra.mxu3 %v8707_v51  ;;  %6006 = vmatpush.bf16.msra.mxu2 %v8703_v58  ;;  %v5262_v46 = vadd.f32 %v5241_v2, %v5134_v22  ;;  %v9470_v51 = vld [vmem:[%s13325_s11 + $0x250] sm:$0xf0]  ;;  %v9468_v58 = vld [vmem:[%s13325_s11 + $0x244] sm:$0xf]  ;;  %v9491_v2 = vld [vmem:[%s13325_s11 + $0x2f8] sm:$0xf0]  ;;  %v8837_v11 = vor.u32 %v9483_v27, %v8834_v20 }
 0x69b   :  { %v8762_v41 = vor.u32 %v9470_v51, %v8761_v18  ;;  %v8758_v49 = vor.u32 %v9468_v58, %v8755_v39  ;;  %v8858_v22 = vld [vmem:[%s13325_s11 + $0x2f4] sm:$0xf0]  ;;  %v8865_v8 = vor.u32 %v9491_v2, %v8864_v16  ;;  %v8990_v18 = vld [vmem:[%s13325_s11 + $0x3a8] sm:$0xf]  ;;  %v9503_v51 = vld [vmem:[%s13325_s11 + $0x358] sm:$0xf0]  ;;  %v8928_v58 = vor.u32 %v9501_v60, %v8925_v32 }
 0x69c   :  { %v5272_v23 = vmax.f32 %v5262_v46, 0.0  ;;  %v9486_v46 = vld [vmem:[%s13325_s11 + $0x2d4] sm:$0xf]  ;;  %v9511_v16 = vld [vmem:[%s13325_s11 + $0x398] sm:$0xf0] }
 0x69d   :  { %5994 = vmatpush.bf16.msra.mxu1 %v8687_v53  ;;  %v9489_v53 = vld [vmem:[%s13325_s11 + $0x2ec] sm:$0xf]  ;;  %v8919_v2 = vld [vmem:[%s13325_s11 + $0x338] sm:$0xf] }
 0x69e   :  { %6020 = vmatpush.bf16.msra.mxu3 %v8695_v34  ;;  %6007 = vmatpush.bf16.msra.mxu2 %v8691_v17  ;;  %v13010_v36 = vpack.c.bf16 %v5272_v23, %v5272_v23  ;;  %v8857_v34 = vor.u32 %v9490_v28, %v8856_v45  ;;  %v5902_v17 = vpack.c.bf16 %v5268_v25, %v5268_v25  ;;  %v8820_v23 = vld [vmem:[%s13325_s11 + $0x2a0] sm:$0xf] }
 0x69f   :  { %v5137_v55 = vpop.f32.mrf.mxu3  ;;  %v5045_v47 = vpop.f32.mrf.mxu2  ;;  %v8861_v21 = vor.u32 %v9489_v53, %v8858_v22  ;;  %v9500_v53 = vld [vmem:[%s13325_s11 + $0x340] sm:$0xf0] }
 0x6a0   :  { %8665 = vmatmul.msk.bf16.vlgmr.msrb.gmra.mxu1 %vm5372_vm2, %v5775_v54  ;;  %8666 = vmatmul.msk.bf16.vlgmr.msrb.gmra.mxu2 %vm5372_vm2, %v5775_v54  ;;  %v8832_v47 = vld [vmem:[%s13325_s11 + $0x2b8] sm:$0xf] }
 0x6a1   :  { %8667 = vmatmul.msk.bf16.vlgmr.msrb.gmra.mxu3 %vm5372_vm2, %v5775_v54  ;;  %v5244_v5 = vpop.f32.mrf.mxu0  ;;  %6118 = vmatpush.bf16.msrb.mxu1 %v8790_v33  ;;  %v9488_v33 = vld [vmem:[%s13325_s11 + $0x2e0] sm:$0xf0] }
 0x6a2   :  { %6144 = vmatpush.bf16.msrb.mxu3 %v8798_v35  ;;  %6131 = vmatpush.bf16.msrb.mxu2 %v8794_v42  ;;  %v8846_v35 = vld [vmem:[%s13325_s11 + $0x2dc] sm:$0xf0]  ;;  %v5127_v42 = vadd.f32 %v12743_v4, %v12795_v13  ;;  %v8853_v43 = vor.u32 %v9488_v33, %v8852_v24  ;;  %v9485_v13 = vld [vmem:[%s13325_s11 + $0x2c8] sm:$0xf0]  ;;  %v8833_v5 = vor.u32 %v9484_v63, %v8832_v47  ;;  %v8966_v24 = vld [vmem:[%s13325_s11 + $0x378] sm:$0xf] }
 0x6a3   :  { %v8849_v55 = vor.u32 %v9486_v46, %v8846_v35  ;;  %v8840_v4 = vld [vmem:[%s13325_s11 + $0x2c0] sm:$0xf]  ;;  %v9494_v47 = vld [vmem:[%s13325_s11 + $0x310] sm:$0xf0] }
 0x6a4   :  { %v5259_v52 = vadd.f32 %v12813_v56, %v5127_v42  ;;  %v9492_v42 = vld [vmem:[%s13325_s11 + $0x304] sm:$0xf] }
 0x6a5   :  { %6119 = vmatpush.bf16.msrb.mxu1 %v8778_v10  ;;  %v8841_v10 = vor.u32 %v9485_v13, %v8840_v4 }
 0x6a6   :  { %6145 = vmatpush.bf16.msrb.mxu3 %v8786_v31  ;;  %6132 = vmatpush.bf16.msrb.mxu2 %v8782_v50  ;;  %v9481_v31 = vld [vmem:[%s13325_s11 + $0x2a8] sm:$0xf0]  ;;  %v8828_v50 = vld [vmem:[%s13325_s11 + $0x2a8] sm:$0xf]  ;;  %v5269_v14 = vmax.f32 %v5259_v52, 0.0 }
 0x6a7   :  { %v5046_v1 = vpop.f32.mrf.mxu2  ;;  %v5139_v59 = vpop.f32.mrf.mxu3  ;;  %v8998_v52 = vld [vmem:[%s13325_s11 + $0x3b0] sm:$0xf] }
 0x6a8   :  { %9001 = vmatmul.msk.bf16.vlgmr.msrb.gmra.mxu0 %vm5372_vm2, %v13010_v36  ;;  %v9514_v1 = vld [vmem:[%s13325_s11 + $0x3b0] sm:$0xf0]  ;;  %v8931_v59 = vld [vmem:[%s13325_s11 + $0x350] sm:$0xf]  ;;  %v6029_v39 = vpack.c.bf16 %v5269_v14, %v5269_v14 }
 0x6a9   :  { %v5245_v57 = vpop.f32.mrf.mxu0  ;;  %6120 = vmatpush.bf16.msrb.mxu1 %v8766_v0  ;;  %v8821_v0 = vor.u32 %v9481_v31, %v8820_v23  ;;  %v8991_v25 = vor.u32 %v9514_v1, %v8990_v18  ;;  %v8986_v23 = vld [vmem:[%s13325_s11 + $0x398] sm:$0xf]  ;;  %v9512_v31 = vld [vmem:[%s13325_s11 + $0x3a0] sm:$0xf0] }
 0x6aa   :  { %6146 = vmatpush.bf16.msrb.mxu3 %v8774_v3  ;;  %6133 = vmatpush.bf16.msrb.mxu2 %v8770_v48  ;;  %v8829_v3 = vor.u32 %v9482_v61, %v8828_v50  ;;  %v8825_v48 = vor.u32 %v9480_v7, %v8822_v15  ;;  %v8932_v57 = vor.u32 %v9503_v51, %v8931_v59  ;;  %v8962_v7 = vld [vmem:[%s13325_s11 + $0x368] sm:$0xf]  ;;  %v9506_v15 = vld [vmem:[%s13325_s11 + $0x370] sm:$0xf0] }
 0x6ab   :  { %v8987_v50 = vor.u32 %v9512_v31, %v8986_v23  ;;  %v8963_v14 = vor.u32 %v9506_v15, %v8962_v7  ;;  %v9527_v23 = vld [vmem:[%s13326_s13 + $0x58] sm:$0xff]  ;;  %v9518_v7 = vld [vmem:[%s13326_s13 + $0x10] sm:$0xff]  ;;  %v9525_v15 = vld [vmem:[%s13326_s13 + $0x48] sm:$0xff] }
 0x6ac   :  { %v9519_v31 = vld [vmem:[%s13326_s13 + $0x18] sm:$0xff] }
 0x6ad   :  { %6121 = vmatpush.bf16.msrb.mxu1 %v8754_v38  ;;  %v9498_v38 = vld [vmem:[%s13325_s11 + $0x334] sm:$0xf] }
 0x6ae   :  { %6147 = vmatpush.bf16.msrb.mxu3 %v8762_v41  ;;  %6134 = vmatpush.bf16.msrb.mxu2 %v8758_v49  ;;  %v8913_v41 = vld [vmem:[%s13325_s11 + $0x33c] sm:$0xf0]  ;;  %v8978_v49 = vld [vmem:[%s13325_s11 + $0x390] sm:$0xf] }
 0x6af   :  { %v5048_v6 = vpop.f32.mrf.mxu2  ;;  %v5140_v54 = vpop.f32.mrf.mxu3 }
 0x6b0   :  { %8732 = vmatmul.msk.bf16.vlgmr.msra.gmra.mxu1 %vm5372_vm2, %v5902_v17  ;;  %8733 = vmatmul.msk.bf16.vlgmr.msra.gmra.mxu2 %vm5372_vm2, %v5902_v17  ;;  %v9497_v6 = vld [vmem:[%s13325_s11 + $0x328] sm:$0xf0]  ;;  %v8904_v54 = vor.u32 %v9495_v40, %v8901_v29 }
 0x6b1   :  { %8734 = vmatmul.msk.bf16.vlgmr.msra.gmra.mxu3 %vm5372_vm2, %v5902_v17  ;;  %v5247_v44 = vpop.f32.mrf.mxu0  ;;  %6245 = vmatpush.bf16.msra.mxu1 %v8857_v34  ;;  %v8916_v34 = vor.u32 %v9498_v38, %v8913_v41  ;;  %v5129_v17 = vadd.f32 %v12797_v19, %v12855_v9  ;;  %v9508_v19 = vld [vmem:[%s13325_s11 + $0x380] sm:$0xf0]  ;;  %v8907_v9 = vld [vmem:[%s13325_s11 + $0x320] sm:$0xf] }
 0x6b2   :  { %6271 = vmatpush.bf16.msra.mxu3 %v8865_v8  ;;  %6258 = vmatpush.bf16.msra.mxu2 %v8861_v21  ;;  %v8979_v8 = vor.u32 %v9511_v16, %v8978_v49  ;;  %v8920_v21 = vor.u32 %v9500_v53, %v8919_v2  ;;  %v8967_v46 = vor.u32 %v9508_v19, %v8966_v24  ;;  %v8889_v44 = vld [vmem:[%s13325_s11 + $0x30c] sm:$0xf0] }
 0x6b3   :  { %v5260_v33 = vadd.f32 %v12866_v12, %v5129_v17  ;;  %v8908_v35 = vor.u32 %v9497_v6, %v8907_v9  ;;  %v9505_v12 = vld [vmem:[%s13325_s11 + $0x368] sm:$0xf0]  ;;  %v8892_v4 = vor.u32 %v9492_v42, %v8889_v44  ;;  %v9531_v44 = vld [vmem:[%s13326_s13 + $0x78] sm:$0xff] }
 0x6b5   :  { %6246 = vmatpush.bf16.msra.mxu1 %v8845_v62  ;;  %v8954_v62 = vld [vmem:[%s13325_s11 + $0x360] sm:$0xf]  ;;  %v5270_v13 = vmax.f32 %v5260_v33, 0.0 }
 0x6b6   :  { %6272 = vmatpush.bf16.msra.mxu3 %v8853_v43  ;;  %6259 = vmatpush.bf16.msra.mxu2 %v8849_v55  ;;  %v8895_v55 = vld [vmem:[%s13325_s11 + $0x308] sm:$0xf]  ;;  %v8955_v27 = vor.u32 %v9505_v12, %v8954_v62  ;;  %v9523_v62 = vld [vmem:[%s13326_s13 + $0x38] sm:$0xff] }
 0x6b7   :  { %v5049_v37 = vpop.f32.mrf.mxu2  ;;  %v5142_v56 = vpop.f32.mrf.mxu3  ;;  %v8896_v20 = vor.u32 %v9494_v47, %v8895_v55 }
 0x6b8   :  { %v8974_v37 = vld [vmem:[%s13325_s11 + $0x380] sm:$0xf]  ;;  %v9509_v56 = vld [vmem:[%s13325_s11 + $0x388] sm:$0xf0] }
 0x6b9   :  { %v5248_v30 = vpop.f32.mrf.mxu0  ;;  %6247 = vmatpush.bf16.msra.mxu1 %v8833_v5  ;;  %v9515_v5 = vld [vmem:[%s13325_s11 + $0x3b8] sm:$0xf0]  ;;  %v8975_v61 = vor.u32 %v9509_v56, %v8974_v37 }
 0x6ba   :  { %6273 = vmatpush.bf16.msra.mxu3 %v8841_v10  ;;  %6260 = vmatpush.bf16.msra.mxu2 %v8837_v11  ;;  %v8999_v10 = vor.u32 %v9515_v5, %v8998_v52  ;;  %v6156_v11 = vpack.c.bf16 %v5270_v13, %v5270_v13  ;;  %v9529_v13 = vld [vmem:[%s13326_s13 + $0x68] sm:$0xff] }
 0x6bd   :  { %6248 = vmatpush.bf16.msra.mxu1 %v8821_v0 }
 0x6be   :  { %6274 = vmatpush.bf16.msra.mxu3 %v8829_v3  ;;  %6261 = vmatpush.bf16.msra.mxu2 %v8825_v48 }
 0x6bf   :  { %v5051_v45 = vpop.f32.mrf.mxu2  ;;  %v5143_v28 = vpop.f32.mrf.mxu3 }
 0x6c0   :  { %8799 = vmatmul.msk.bf16.vlgmr.msrb.gmra.mxu1 %vm5372_vm2, %v6029_v39  ;;  %8800 = vmatmul.msk.bf16.vlgmr.msrb.gmra.mxu2 %vm5372_vm2, %v6029_v39 }
 0x6c1   :  { %8801 = vmatmul.msk.bf16.vlgmr.msrb.gmra.mxu3 %vm5372_vm2, %v6029_v39  ;;  %v5250_v22 = vpop.f32.mrf.mxu0  ;;  %6385 = vmatpush.bf16.msrb.mxu1 %v8928_v58 }
 0x6c2   :  { %6499 = vmatpush.bf16.msrb.mxu3 %v8991_v25  ;;  %6398 = vmatpush.bf16.msrb.mxu2 %v8932_v57 }
 0x6c5   :  { %6386 = vmatpush.bf16.msrb.mxu1 %v8916_v34 }
 0x6c6   :  { %6500 = vmatpush.bf16.msrb.mxu3 %v8979_v8  ;;  %6399 = vmatpush.bf16.msrb.mxu2 %v8920_v21 }
 0x6c7   :  { %v5052_v43 = vpop.f32.mrf.mxu2 }
 0x6c8   :  { %v9530_v43 = vld [vmem:[%s13326_s13 + $0x70] sm:$0xff] }
 0x6c9   :  { %v5251_v63 = vpop.f32.mrf.mxu0  ;;  %6387 = vmatpush.bf16.msrb.mxu1 %v8904_v54 }
 0x6ca   :  { %6501 = vmatpush.bf16.msrb.mxu3 %v8967_v46  ;;  %6400 = vmatpush.bf16.msrb.mxu2 %v8908_v35 }
 0x6cd   :  { %6388 = vmatpush.bf16.msrb.mxu1 %v8892_v4  ;;  %v9522_v4 = vld [vmem:[%s13326_s13 + $0x30] sm:$0xff] }
 0x6ce   :  { %6502 = vmatpush.bf16.msrb.mxu3 %v8955_v27  ;;  %6401 = vmatpush.bf16.msrb.mxu2 %v8896_v20  ;;  %v9521_v27 = vld [vmem:[%s13326_s13 + $0x28] sm:$0xff]  ;;  %v9528_v20 = vld [vmem:[%s13326_s13 + $0x60] sm:$0xff] }
 0x6d0   :  { %8866 = vmatmul.msk.bf16.vlgmr.msra.gmra.mxu1 %vm5372_vm2, %v6156_v11  ;;  %8867 = vmatmul.msk.bf16.vlgmr.msra.gmra.mxu2 %vm5372_vm2, %v6156_v11 }
 0x6d1   :  { %8868 = vmatmul.msk.bf16.vlgmr.msra.gmra.mxu3 %vm5372_vm2, %v6156_v11  ;;  %6525 = vmatpush.bf16.msra.mxu1 %v8999_v10  ;;  %v9520_v11 = vld [vmem:[%s13326_s13 + $0x20] sm:$0xff] }
 0x6d2   :  { %6731 = vmatpush.bf16.msra.mxu3 %v9531_v44  ;;  %6718 = vmatpush.bf16.msra.mxu2 %v9523_v62 }
 0x6d5   :  { %6526 = vmatpush.bf16.msra.mxu1 %v8987_v50  ;;  %v9526_v50 = vld [vmem:[%s13326_s13 + $0x50] sm:$0xff] }
 0x6d6   :  { %6732 = vmatpush.bf16.msra.mxu3 %v9530_v43  ;;  %6719 = vmatpush.bf16.msra.mxu2 %v9522_v4 }
 0x6d9   :  { %6527 = vmatpush.bf16.msra.mxu1 %v8975_v61 }
 0x6da   :  { %6733 = vmatpush.bf16.msra.mxu3 %v9529_v13  ;;  %6720 = vmatpush.bf16.msra.mxu2 %v9521_v27 }
 0x6dd   :  { %v5385_v30 = vpop.f32.mrf.mxu1  ;;  %6528 = vmatpush.bf16.msra.mxu1 %v8963_v14  ;;  %v9517_v14 = vld [vmem:[%s13326_s13 + $0x8] sm:$0xff] }
 0x6de   :  { %6734 = vmatpush.bf16.msra.mxu3 %v9528_v20  ;;  %6721 = vmatpush.bf16.msra.mxu2 %v9520_v11 }
 0x6e0   :  { %8934 = vmatmul.msk.bf16.vlgmr.msrb.gmra.mxu1 %vm5372_vm2, %v12928_v26  ;;  %8935 = vmatmul.msk.bf16.vlgmr.msrb.gmra.mxu2 %vm5372_vm2, %v12928_v26 }
 0x6e1   :  { %9000 = vmatmul.msk.bf16.vlgmr.msrb.gmra.mxu3 %vm5372_vm2, %v13010_v36 }
 0x6e2   :  { %6735 = vmatpush.bf16.msra.mxu3 %v9527_v23  ;;  %6722 = vmatpush.bf16.msra.mxu2 %v9519_v31 }
 0x6e3   :  { %v5398_v0 = vpop.f32.mrf.mxu2 }
 0x6e4   :  { %v5411_v3 = vpop.f32.mrf.mxu3 }
 0x6e5   :  { %v5387_v48 = vpop.f32.mrf.mxu1 }
 0x6e6   :  { %6736 = vmatpush.bf16.msra.mxu3 %v9526_v50  ;;  %6723 = vmatpush.bf16.msra.mxu2 %v9518_v7  ;;  %v9535_v48 = vld [vmem:[%s13326_s13 + $0x98] sm:$0xff] }
 0x6e7   :  { %6748 = vmatpush.bf16.msra.mxu0 %v9535_v48 }
 0x6ea   :  { %6737 = vmatpush.bf16.msra.mxu3 %v9525_v15  ;;  %6724 = vmatpush.bf16.msra.mxu2 %v9517_v14 }
 0x6eb   :  { %v5400_v60 = vpop.f32.mrf.mxu2 }
 0x6ec   :  { %v5413_v32 = vpop.f32.mrf.mxu3 }
 0x6ed   :  { %v5491_v18 = vpop.f32.mrf.mxu1  ;;  %v9516_v32 = vld [vmem:[%s13326_s13] sm:$0xff] }
 0x6ee   :  { %v5492_v1 = vadd.f32 %v5491_v18, %v5385_v30  ;;  %v9524_v30 = vld [vmem:[%s13326_s13 + $0x40] sm:$0xff]  ;;  %6725 = vmatpush.bf16.msra.mxu2 %v9516_v32 }
 0x6ef   :  { %6738 = vmatpush.bf16.msra.mxu3 %v9524_v30 }
 0x6f0   :  { %9002 = vmatmul.msk.bf16.vlgmr.msra.gmra.mxu1 %vm5372_vm2, %v13010_v36 }
 0x6f3   :  { %v5504_v59 = vpop.f32.mrf.mxu2 }
 0x6f4   :  { %v5505_v51 = vadd.f32 %v5504_v59, %v5398_v0  ;;  %v5517_v58 = vpop.f32.mrf.mxu3 }
 0x6f5   :  { %v5518_v39 = vadd.f32 %v5517_v58, %v5411_v3  ;;  %v5493_v25 = vpop.f32.mrf.mxu1 }
 0x6f6   :  { %v9533_v25 = vld [vmem:[%s13326_s13 + $0x88] sm:$0xff] }
 0x6fb   :  { %v5506_v57 = vpop.f32.mrf.mxu2 }
 0x6fc   :  { %v5519_v26 = vpop.f32.mrf.mxu3 }
 0x6fd   :  { %v5615_v38 = vpop.f32.mrf.mxu1 }
 0x6fe   :  { %v5645_v41 = vadd.f32 %v5615_v38, %v5492_v1  ;;  %v9534_v1 = vld [vmem:[%s13326_s13 + $0x90] sm:$0xff] }
 0x6ff   :  { %6749 = vmatpush.bf16.msra.mxu0 %v9534_v1 }
 0x703   :  { %v5628_v49 = vpop.f32.mrf.mxu2  ;;  %6750 = vmatpush.bf16.msra.mxu0 %v9533_v25 }
 0x704   :  { %v5646_v45 = vadd.f32 %v5628_v49, %v5505_v51  ;;  %v5641_v28 = vpop.f32.mrf.mxu3 }
 0x705   :  { %v5647_v16 = vadd.f32 %v5641_v28, %v5518_v39  ;;  %v5617_v2 = vpop.f32.mrf.mxu1 }
 0x70b   :  { %v5630_v53 = vpop.f32.mrf.mxu2 }
 0x70c   :  { %v5643_v22 = vpop.f32.mrf.mxu3 }
 0x70d   :  { %v5742_v34 = vpop.f32.mrf.mxu1 }
 0x70e   :  { %v5772_v17 = vadd.f32 %v5742_v34, %v5645_v41  ;;  %v9532_v41 = vld [vmem:[%s13326_s13 + $0x80] sm:$0xff] }
 0x70f   :  { %6751 = vmatpush.bf16.msra.mxu0 %v9532_v41  ;;  %v6537_v34 = vld [vmem:[%s13327_s12] sm:$0x7] }
 0x710   :  { %v6541_v27 = vperm.slane %v6537_v34, 2 }
 0x713   :  { %v5755_v8 = vpop.f32.mrf.mxu2 }
 0x714   :  { %v13223_v36 = vadd.f32 %v5755_v8, %v5646_v45  ;;  %v5768_v21 = vpop.f32.mrf.mxu3 }
 0x715   :  { %v13225_v40 = vadd.f32 %v5768_v21, %v5647_v16  ;;  %v5744_v29 = vpop.f32.mrf.mxu1  ;;  %v13227_v24 = vpop.f32.mrf.mxu0 }
 0x71b   :  { %v5757_v19 = vpop.f32.mrf.mxu2 }
 0x71c   :  { %v5770_v9 = vpop.f32.mrf.mxu3 }
 0x71d   :  { %v5869_v6 = vpop.f32.mrf.mxu1  ;;  %v6379_v54 = vpop.f32.mrf.mxu0 }
 0x71e   :  { %v5899_v18 = vadd.f32 %v5869_v6, %v5772_v17  ;;  %v6539_v54 = vperm.slane %v6537_v34, 0 }
 0x723   :  { %v13229_v33 = vpop.f32.mrf.mxu2 }
 0x724   :  { %v13231_v46 = vpop.f32.mrf.mxu3  ;;  %v5900_v16 = vadd.f32 %v13229_v33, %v13223_v36 }
 0x725   :  { %v5871_v35 = vpop.f32.mrf.mxu1  ;;  %v13233_v42 = vpop.f32.mrf.mxu0  ;;  %v5901_v36 = vadd.f32 %v13231_v46, %v13225_v40 }
 0x72b   :  { %v5884_v12 = vpop.f32.mrf.mxu2 }
 0x72c   :  { %v5897_v55 = vpop.f32.mrf.mxu3 }
 0x72d   :  { %v5996_v47 = vpop.f32.mrf.mxu1  ;;  %v6519_v63 = vpop.f32.mrf.mxu0 }
 0x72e   :  { %v6026_v59 = vadd.f32 %v5996_v47, %v5899_v18 }
 0x733   :  { %v6009_v52 = vpop.f32.mrf.mxu2 }
 0x734   :  { %v13256_v5 = vpop.f32.mrf.mxu3  ;;  %v6027_v2 = vadd.f32 %v6009_v52, %v5900_v16 }
 0x735   :  { %v5998_v10 = vpop.f32.mrf.mxu1  ;;  %v6028_v43 = vadd.f32 %v13256_v5, %v5901_v36  ;;  %v9540_v5 = vld [vmem:[%s13328_s14] ss:$0 sm:$0xff] }
 0x73b   :  { %v6011_v37 = vpop.f32.mrf.mxu2 }
 0x73c   :  { %v6024_v56 = vpop.f32.mrf.mxu3 }
 0x73d   :  { %v6123_v61 = vpop.f32.mrf.mxu1 }
 0x73e   :  { %v6153_v58 = vadd.f32 %v6123_v61, %v6026_v59 }
 0x743   :  { %v6136_v0 = vpop.f32.mrf.mxu2 }
 0x744   :  { %v6149_v3 = vpop.f32.mrf.mxu3  ;;  %v6154_v53 = vadd.f32 %v6136_v0, %v6027_v2 }
 0x745   :  { %v6125_v60 = vpop.f32.mrf.mxu1  ;;  %v6155_v55 = vadd.f32 %v6149_v3, %v6028_v43 }
 0x74b   :  { %v6138_v51 = vpop.f32.mrf.mxu2 }
 0x74c   :  { %v6151_v39 = vpop.f32.mrf.mxu3 }
 0x74d   :  { %v6250_v57 = vpop.f32.mrf.mxu1 }
 0x74e   :  { %v6280_v26 = vadd.f32 %v6250_v57, %v6153_v58 }
 0x750   :  { %v6407_v38 = vadd.f32 %v13227_v24, %v6280_v26  ;;  %v6540_v24 = vperm.slane %v6537_v34, 1 }
 0x753   :  { %v6263_v49 = vpop.f32.mrf.mxu2 }
 0x754   :  { %v6276_v45 = vpop.f32.mrf.mxu3  ;;  %v6281_v17 = vadd.f32 %v6263_v49, %v6154_v53 }
 0x755   :  { %v6252_v28 = vpop.f32.mrf.mxu1  ;;  %v6282_v63 = vadd.f32 %v6276_v45, %v6155_v55 }
 0x75b   :  { %v6265_v22 = vpop.f32.mrf.mxu2 }
 0x75c   :  { %v6278_v8 = vpop.f32.mrf.mxu3 }
 0x75d   :  { %v6390_v21 = vpop.f32.mrf.mxu1 }
 0x75e   :  { %v6408_v29 = vadd.f32 %v6390_v21, %v6281_v17 }
 0x760   :  { %v6535_v19 = vadd.f32 %v13233_v42, %v6408_v29 }
 0x762   :  { %v6546_v9 = vadd.f32 %v6540_v24, %v6535_v19 }
 0x763   :  { %v6403_v6 = vpop.f32.mrf.mxu2 }
 0x764   :  { %v6549_v33 = vpack.c.bf16 %v6546_v9, %v6546_v9  ;;  %v6504_v35 = vpop.f32.mrf.mxu3  ;;  %v6409_v42 = vadd.f32 %v6403_v6, %v6282_v63 }
 0x765   :  { %v6534_v44 = vadd.f32 %v6504_v35, %v6407_v38  ;;  %v6392_v62 = vpop.f32.mrf.mxu1 }
 0x766   :  { %6739 = vmatmul.bf16.vlgmr.msra.gmra.mxu3 %v6549_v33 }
 0x767   :  { %v6545_v12 = vadd.f32 %v6539_v54, %v6534_v44 }
 0x769   :  { %v6548_v47 = vpack.c.bf16 %v6545_v12, %v6545_v12 }
 0x76b   :  { %6726 = vmatmul.bf16.vlgmr.msra.gmra.mxu2 %v6548_v47  ;;  %v6405_v4 = vpop.f32.mrf.mxu2 }
 0x76c   :  { %v6506_v13 = vpop.f32.mrf.mxu3 }
 0x76d   :  { %v6530_v20 = vpop.f32.mrf.mxu1 }
 0x76e   :  { %v6536_v52 = vadd.f32 %v6530_v20, %v6409_v42 }
 0x770   :  { %v6547_v10 = vadd.f32 %v6541_v27, %v6536_v52 }
 0x772   :  { %v6550_v40 = vpack.c.bf16 %v6547_v10, %v6547_v10 }
 0x774   :  { %9083 = vmatmul.msk.bf16.vlgmr.msra.gmra.mxu0 %vm5372_vm2, %v6550_v40 }
 0x775   :  { %v6532_v46 = vpop.f32.mrf.mxu1 }
 0x7e9   :  { %v6740_v11 = vpop.f32.mrf.mxu3 }
 0x7ee   :  { %v6727_v23 = vpop.f32.mrf.mxu2 }
 0x7ef   :  { %v6728_v31 = vadd.f32 %v9540_v5, %v6727_v23 }
 0x7f1   :  { %v6742_v50 = vpop.f32.mrf.mxu3  ;;  %v6741_v37 = vadd.f32 %v6740_v11, %v6728_v31  ;;  %v6753_v56 = vpop.f32.mrf.mxu0 }
 0x7f3   :  { %v6754_v61 = vadd.f32 %v6753_v56, %v6741_v37 }
 0x7f5   :  { %9561 = vtanh.f32 %v6754_v61 }
 0x7f6   :  { %v6729_v7 = vpop.f32.mrf.mxu2 }
 0x7f9   :  { %v6755_v15 = vpop.f32.mrf.mxu0 }
 0x7fb   :  { %v9562_v14 = vpop.eup %9561 }
 0x7fc   :  { %6758 = vst [vmem:[%s13329_s15] sm:$0xff] %v9562_v14 }

</bundles_post_ra>
